<compile_context>
chip_gen: v7x
topology: tpu7x:2x2x1
jax: 0.10.0
libtpu: 0.0.40
codegen_flags: <defaults>
</compile_context>

<pallas_src>
import functools

import jax
import jax.numpy as jnp
from jax.experimental import pallas as pl
from jax.experimental.pallas import tpu as pltpu


# ------------------------------ fused kernel ------------------------------- #

def _fused_deconv_bn_relu_kernel(
    x_ref, w_ref, bcol_ref, gcol_ref, becol_ref,     # inputs
    o_ref,                                           # output
    sum_ref, sumsq_ref, scale_ref, shift_ref,        # VMEM scratch (persistent)
    *, cout, inv_count, eps,
):
    p = pl.program_id(0)   # 0 = stats pass, 1 = normalize/store pass
    i = pl.program_id(1)   # row-tile index

    # Transposed conv as a lane-dense MXU matmul (block-diag folded weight)
    # plus the per-column (per-channel) conv bias.
    y = jnp.dot(x_ref[...], w_ref[...], preferred_element_type=jnp.float32)
    y = y + bcol_ref[...]

    @pl.when((p == 0) & (i == 0))
    def _init_stats():
        sum_ref[...] = jnp.zeros_like(sum_ref)
        sumsq_ref[...] = jnp.zeros_like(sumsq_ref)

    @pl.when(p == 0)
    def _accumulate_stats():
        sum_ref[...] = sum_ref[...] + jnp.sum(y, axis=0, keepdims=True)
        sumsq_ref[...] = sumsq_ref[...] + jnp.sum(y * y, axis=0, keepdims=True)

    @pl.when((p == 1) & (i == 0))
    def _finalize_stats():
        rk = sum_ref.shape[-1]
        # Column c of the folded layout belongs to channel (c % cout).
        sel = (jax.lax.broadcasted_iota(jnp.int32, (rk, cout), 0) % cout
               == jax.lax.broadcasted_iota(jnp.int32, (rk, cout), 1)
               ).astype(jnp.float32)                              # (rk, cout)
        sel_t = (jax.lax.broadcasted_iota(jnp.int32, (cout, rk), 1) % cout
                 == jax.lax.broadcasted_iota(jnp.int32, (cout, rk), 0)
                 ).astype(jnp.float32)                            # (cout, rk)

        ch_sum = jnp.dot(sum_ref[...], sel, preferred_element_type=jnp.float32)
        ch_sumsq = jnp.dot(sumsq_ref[...], sel, preferred_element_type=jnp.float32)
        mean = ch_sum * inv_count
        var = ch_sumsq * inv_count - mean * mean      # biased variance (train mode)
        col_mean = jnp.dot(mean, sel_t, preferred_element_type=jnp.float32)
        col_var = jnp.dot(var, sel_t, preferred_element_type=jnp.float32)
        s = gcol_ref[...] * jax.lax.rsqrt(col_var + eps)
        scale_ref[...] = s
        shift_ref[...] = becol_ref[...] - col_mean * s

    @pl.when(p == 1)
    def _normalize_store():
        o_ref[...] = jnp.maximum(y * scale_ref[...] + shift_ref[...], 0.0)


# ------------------------------ tiling helpers ----------------------------- #

def _pick_fold(m, kcols):
    """Fold factor R: want R | M and R*Kcols a multiple of 128 (lane-dense vst)."""
    for cand in (32, 16, 8, 4, 2, 1):
        if m % cand == 0 and (cand * kcols) % 128 == 0:
            return cand
    for cand in (32, 16, 8, 4, 2, 1):   # fallback: correct, possibly masked stores
        if m % cand == 0:
            return cand
    return 1


def _pick_tile_rows(mr, target=512):
    """Largest divisor of mr that is <=target and a multiple of 8 (else mr)."""
    if mr <= target:
        return mr
    for t in range(min(target, mr - 1), 0, -1):
        if mr % t == 0 and t % 8 == 0:
            return t
    return mr


# --------------------------------- wrapper --------------------------------- #

def deconv2d_bn_forward(x_nchw, w, b, gamma, beta, *, eps=1e-5):
    """ConvTranspose2d(k=2,s=2,bias) + BatchNorm2d(train stats) + ReLU.

    x_nchw: (N, Cin, H, W) f32
    w:      (Cin, Cout, KH, KW) f32  (PyTorch ConvTranspose2d weight layout)
    b, gamma, beta: (Cout,) f32
    returns (N, Cout, KH*H, KW*W) f32
    """
    N, Cin, H, W = x_nchw.shape
    Cin_w, Cout, KH, KW = w.shape
    assert Cin_w == Cin

    M = N * H * W
    Kcols = KH * KW * Cout
    R = _pick_fold(M, Kcols)
    Mr = M // R
    RC = R * Cin
    RK = R * Kcols

    # ---- layout plumbing (cheap XLA glue; x is KH*KW*Cout/Cin smaller than out) ----
    x_rows = jnp.transpose(x_nchw, (0, 2, 3, 1)).reshape(M, Cin)   # NHWC rows
    x_fold = x_rows.reshape(Mr, RC)                                # row-major view
    # column k = ki*KW*Cout + kj*Cout + co  ->  channel = k % Cout
    w_mat = jnp.transpose(w, (0, 2, 3, 1)).reshape(Cin, Kcols)
    w_fold = jnp.kron(jnp.eye(R, dtype=jnp.float32), w_mat)        # (RC, RK) block-diag
    reps = R * KH * KW
    b_col = jnp.tile(b.astype(jnp.float32), reps).reshape(1, RK)
    g_col = jnp.tile(gamma.astype(jnp.float32), reps).reshape(1, RK)
    be_col = jnp.tile(beta.astype(jnp.float32), reps).reshape(1, RK)

    tile_r = _pick_tile_rows(Mr)
    n_tiles = Mr // tile_r
    count = M * KH * KW        # = N * H2 * W2 : BN element count per channel

    kernel = functools.partial(
        _fused_deconv_bn_relu_kernel,
        cout=Cout, inv_count=1.0 / float(count), eps=float(eps))

    out_fold = pl.pallas_call(
        kernel,
        out_shape=jax.ShapeDtypeStruct((Mr, RK), jnp.float32),
        grid=(2, n_tiles),
        in_specs=[
            pl.BlockSpec((tile_r, RC), lambda p, i: (i, 0)),   # x row tile (streamed)
            pl.BlockSpec((RC, RK), lambda p, i: (0, 0)),       # folded weight (resident)
            pl.BlockSpec((1, RK), lambda p, i: (0, 0)),        # conv bias   (resident)
            pl.BlockSpec((1, RK), lambda p, i: (0, 0)),        # BN gamma    (resident)
            pl.BlockSpec((1, RK), lambda p, i: (0, 0)),        # BN beta     (resident)
        ],
        # pass 0 parks the (unwritten) output on block 0; pass 1 writes block i,
        # so every output block is DMA'd to HBM exactly once, fully written.
        out_specs=pl.BlockSpec((tile_r, RK), lambda p, i: (i * p, 0)),
        scratch_shapes=[
            pltpu.VMEM((1, RK), jnp.float32),   # per-column sum
            pltpu.VMEM((1, RK), jnp.float32),   # per-column sum of squares
            pltpu.VMEM((1, RK), jnp.float32),   # per-column BN scale
            pltpu.VMEM((1, RK), jnp.float32),   # per-column BN shift
        ],
        compiler_params=pltpu.CompilerParams(
            # Both axes must be sequential: pass 1 consumes the global stats
            # that pass 0 accumulates into shared VMEM scratch.
            # TODO(synk): per-core partial stats would allow "parallel" on the
            # tile axis for v7x's 2 TensorCores.
            dimension_semantics=("arbitrary", "arbitrary"),
            vmem_limit_bytes=48 * 1024 * 1024,
        ),
    )(x_fold, w_fold, b_col, g_col, be_col)

    # ---- unfold (free view) + single final XLA transpose back to NCHW ----
    out6 = out_fold.reshape(N, H, W, KH, KW, Cout)
    out = jnp.transpose(out6, (0, 5, 1, 3, 2, 4)).reshape(N, Cout, H * KH, W * KW)
    return out


# -------------------------------- reference -------------------------------- #

def _reference(x_nchw, w, b, gamma, beta):
    """Pure-JAX reference of ConvTranspose2d(k=2,s=2) + BN(train) + ReLU."""
    N, Cin, H, W = x_nchw.shape
    _, Cout, KH, KW = w.shape
    y = jnp.einsum("nchw,cokl->nohkwl", x_nchw, w)        # (N,Cout,H,KH,W,KW)
    y = y.reshape(N, Cout, H * KH, W * KW) + b[None, :, None, None]
    mean = jnp.mean(y, axis=(0, 2, 3), keepdims=True)
    var = jnp.mean((y - mean) ** 2, axis=(0, 2, 3), keepdims=True)
    yn = (y - mean) * jax.lax.rsqrt(var + 1e-5)
    yn = yn * gamma[None, :, None, None] + beta[None, :, None, None]
    return jnp.maximum(yn, 0.0)


# ----------------------------------- main ----------------------------------- #

if __name__ == "__main__":
    # in_channels=4, out_channels=8, kernel_size=2, stride=2
    N, Cin, H, W = 2, 4, 16, 16
    Cout, KH, KW = 8, 2, 2

    key = jax.random.PRNGKey(0)
    kx, kw, kb, kg, kbe = jax.random.split(key, 5)

    x = jax.random.normal(kx, (N, Cin, H, W), dtype=jnp.float32)
    # ConvTranspose2d weight layout: (in_channels, out_channels, KH, KW)
    weight = jax.random.normal(kw, (Cin, Cout, KH, KW), dtype=jnp.float32) * 0.1
    bias = jax.random.normal(kb, (Cout,), dtype=jnp.float32) * 0.1
    gamma = jnp.ones((Cout,), dtype=jnp.float32) + 0.1 * jax.random.normal(kg, (Cout,))
    beta = 0.1 * jax.random.normal(kbe, (Cout,), dtype=jnp.float32)

    out = deconv2d_bn_forward(x, weight, bias, gamma, beta)
    out = jax.block_until_ready(out)

    ref = _reference(x, weight, bias, gamma, beta)
    assert out.shape == (N, Cout, H * KH, W * KW), out.shape
    assert jnp.allclose(out, ref, atol=1e-4, rtol=1e-4), (
        float(jnp.max(jnp.abs(out - ref)))
    )

    print("KERNEL_OK")
</pallas_src>

<mosaic_0001>
module attributes {stable_mosaic.version = 11 : i64} {
  func.func @_fused_deconv_bn_relu_kernel(%arg0: i32, %arg1: i32, %arg2: memref<16x128xf32, #tpu.memory_space<vmem>>, %arg3: memref<128x1024xf32, #tpu.memory_space<vmem>>, %arg4: memref<1x1024xf32, #tpu.memory_space<vmem>>, %arg5: memref<1x1024xf32, #tpu.memory_space<vmem>>, %arg6: memref<1x1024xf32, #tpu.memory_space<vmem>>, %arg7: memref<16x1024xf32, #tpu.memory_space<vmem>>, %arg8: memref<1x1024xf32, #tpu.memory_space<vmem>>, %arg9: memref<1x1024xf32, #tpu.memory_space<vmem>>, %arg10: memref<1x1024xf32, #tpu.memory_space<vmem>>, %arg11: memref<1x1024xf32, #tpu.memory_space<vmem>>) attributes {dimension_semantics = [#tpu.dimension_semantics<arbitrary>, #tpu.dimension_semantics<arbitrary>], iteration_bounds = array<i64: 2, 1>, scalar_prefetch = 0 : i64, scratch_operands = 4 : i64, tpu.core_type = #tpu.core_type<tc>, window_params = [{transform_indices = @transform_0, window_bounds = array<i64: 16, 128>}, {pipeline_mode = #tpu.pipeline_mode<synchronous>, transform_indices = @transform_1, window_bounds = array<i64: 128, 1024>}, {pipeline_mode = #tpu.pipeline_mode<synchronous>, transform_indices = @transform_2, window_bounds = array<i64: 1, 1024>}, {pipeline_mode = #tpu.pipeline_mode<synchronous>, transform_indices = @transform_3, window_bounds = array<i64: 1, 1024>}, {pipeline_mode = #tpu.pipeline_mode<synchronous>, transform_indices = @transform_4, window_bounds = array<i64: 1, 1024>}, {transform_indices = @transform_5, window_bounds = array<i64: 16, 1024>}]} {
    %c0 = arith.constant 0 : index
    %c0_0 = arith.constant 0 : index
    %0 = vector.load %arg2[%c0, %c0_0] : memref<16x128xf32, #tpu.memory_space<vmem>>, vector<16x128xf32>
    %c0_1 = arith.constant 0 : index
    %c0_2 = arith.constant 0 : index
    %1 = vector.load %arg3[%c0_1, %c0_2] : memref<128x1024xf32, #tpu.memory_space<vmem>>, vector<128x1024xf32>
    %cst = arith.constant dense<0.000000e+00> : vector<16x1024xf32>
    %2 = tpu.matmul %0, %1, %cst {dimension_numbers = #tpu.dot_dimension_numbers<[1], [0], [0], [1], [0, 0, 1, 1], [], []>} : vector<16x128xf32>, vector<128x1024xf32>, vector<16x1024xf32> -> vector<16x1024xf32>
    %c0_3 = arith.constant 0 : index
    %c0_4 = arith.constant 0 : index
    %3 = vector.load %arg4[%c0_3, %c0_4] : memref<1x1024xf32, #tpu.memory_space<vmem>>, vector<1x1024xf32>
    %4 = vector.broadcast %3 : vector<1x1024xf32> to vector<16x1024xf32>
    %5 = arith.addf %2, %4 : vector<16x1024xf32>
    %c0_i32 = arith.constant 0 : i32
    %6 = arith.cmpi eq, %arg0, %c0_i32 : i32
    %c0_i32_5 = arith.constant 0 : i32
    %7 = arith.cmpi eq, %arg1, %c0_i32_5 : i32
    %8 = arith.andi %6, %7 : i1
    %9 = arith.extui %8 : i1 to i32
    %c0_i32_6 = arith.constant 0 : i32
    %10 = arith.cmpi ne, %9, %c0_i32_6 : i32
    scf.if %10 {
      %cst_13 = arith.constant 0.000000e+00 : f32
      %22 = vector.broadcast %cst_13 : f32 to vector<1x1024xf32>
      %c0_14 = arith.constant 0 : index
      %c0_15 = arith.constant 0 : index
      %23 = vector.load %arg8[%c0_14, %c0_15] : memref<1x1024xf32, #tpu.memory_space<vmem>>, vector<1x1024xf32>
      tpu.vector_store %arg8[%c0_14, %c0_15], %22 {strides = array<i32>} : memref<1x1024xf32, #tpu.memory_space<vmem>>, vector<1x1024xf32>,
      %cst_16 = arith.constant 0.000000e+00 : f32
      %24 = vector.broadcast %cst_16 : f32 to vector<1x1024xf32>
      %c0_17 = arith.constant 0 : index
      %c0_18 = arith.constant 0 : index
      %25 = vector.load %arg9[%c0_17, %c0_18] : memref<1x1024xf32, #tpu.memory_space<vmem>>, vector<1x1024xf32>
      tpu.vector_store %arg9[%c0_17, %c0_18], %24 {strides = array<i32>} : memref<1x1024xf32, #tpu.memory_space<vmem>>, vector<1x1024xf32>,
    } else {
    }
    %c0_i32_7 = arith.constant 0 : i32
    %11 = arith.cmpi eq, %arg0, %c0_i32_7 : i32
    %12 = arith.extui %11 : i1 to i32
    %c0_i32_8 = arith.constant 0 : i32
    %13 = arith.cmpi ne, %12, %c0_i32_8 : i32
    scf.if %13 {
      %c0_13 = arith.constant 0 : index
      %c0_14 = arith.constant 0 : index
      %22 = vector.load %arg8[%c0_13, %c0_14] : memref<1x1024xf32, #tpu.memory_space<vmem>>, vector<1x1024xf32>
      %cst_15 = arith.constant dense<0.000000e+00> : vector<1024xf32>
      %23 = vector.multi_reduction <add>, %5, %cst_15 [0] : vector<16x1024xf32> to vector<1024xf32>
      %24 = vector.shape_cast %23 : vector<1024xf32> to vector<1x1024xf32>
      %25 = arith.addf %22, %24 : vector<1x1024xf32>
      %c0_16 = arith.constant 0 : index
      %c0_17 = arith.constant 0 : index
      %26 = vector.load %arg8[%c0_16, %c0_17] : memref<1x1024xf32, #tpu.memory_space<vmem>>, vector<1x1024xf32>
      tpu.vector_store %arg8[%c0_16, %c0_17], %25 {strides = array<i32>} : memref<1x1024xf32, #tpu.memory_space<vmem>>, vector<1x1024xf32>,
      %c0_18 = arith.constant 0 : index
      %c0_19 = arith.constant 0 : index
      %27 = vector.load %arg9[%c0_18, %c0_19] : memref<1x1024xf32, #tpu.memory_space<vmem>>, vector<1x1024xf32>
      %28 = arith.mulf %5, %5 : vector<16x1024xf32>
      %cst_20 = arith.constant dense<0.000000e+00> : vector<1024xf32>
      %29 = vector.multi_reduction <add>, %28, %cst_20 [0] : vector<16x1024xf32> to vector<1024xf32>
      %30 = vector.shape_cast %29 : vector<1024xf32> to vector<1x1024xf32>
      %31 = arith.addf %27, %30 : vector<1x1024xf32>
      %c0_21 = arith.constant 0 : index
      %c0_22 = arith.constant 0 : index
      %32 = vector.load %arg9[%c0_21, %c0_22] : memref<1x1024xf32, #tpu.memory_space<vmem>>, vector<1x1024xf32>
      tpu.vector_store %arg9[%c0_21, %c0_22], %31 {strides = array<i32>} : memref<1x1024xf32, #tpu.memory_space<vmem>>, vector<1x1024xf32>,
    } else {
    }
    %c1_i32 = arith.constant 1 : i32
    %14 = arith.cmpi eq, %arg0, %c1_i32 : i32
    %c0_i32_9 = arith.constant 0 : i32
    %15 = arith.cmpi eq, %arg1, %c0_i32_9 : i32
    %16 = arith.andi %14, %15 : i1
    %17 = arith.extui %16 : i1 to i32
    %c0_i32_10 = arith.constant 0 : i32
    %18 = arith.cmpi ne, %17, %c0_i32_10 : i32
    scf.if %18 {
      %22 = tpu.iota {dimensions = array<i32: 0>} : vector<1024x8xi32>
      %c8_i32 = arith.constant 8 : i32
      %c0_i32_13 = arith.constant 0 : i32
      %23 = arith.cmpi eq, %c8_i32, %c0_i32_13 : i32
      %c1_i32_14 = arith.constant 1 : i32
      %24 = arith.select %23, %c1_i32_14, %c8_i32 : i32
      %25 = vector.broadcast %24 : i32 to vector<1024x8xi32>
      %26 = arith.remsi %22, %25 : vector<1024x8xi32>
      %c0_i32_15 = arith.constant 0 : i32
      %27 = vector.broadcast %c0_i32_15 : i32 to vector<1024x8xi32>
      %28 = arith.cmpi ne, %26, %27 : vector<1024x8xi32>
      %c0_i32_16 = arith.constant 0 : i32
      %29 = vector.broadcast %c0_i32_16 : i32 to vector<1024x8xi32>
      %30 = arith.cmpi slt, %26, %29 : vector<1024x8xi32>
      %c0_i32_17 = arith.constant 0 : i32
      %31 = arith.cmpi slt, %24, %c0_i32_17 : i32
      %32 = vector.broadcast %31 : i1 to vector<1024x8xi1>
      %33 = vector.broadcast %32 : vector<1024x8xi1> to vector<1024x8xi1>
      %34 = arith.xori %30, %33 : vector<1024x8xi1>
      %35 = arith.andi %34, %28 : vector<1024x8xi1>
      %36 = vector.broadcast %24 : i32 to vector<1024x8xi32>
      %37 = arith.addi %26, %36 : vector<1024x8xi32>
      %38 = arith.select %35, %37, %26 : vector<1024x8xi1>, vector<1024x8xi32>
      %39 = tpu.iota {dimensions = array<i32: 1>} : vector<1024x8xi32>
      %40 = arith.cmpi eq, %38, %39 : vector<1024x8xi32>
      %41 = arith.extui %40 : vector<1024x8xi1> to vector<1024x8xi32>
      %42 = arith.sitofp %41 : vector<1024x8xi32> to vector<1024x8xf32>
      %43 = tpu.iota {dimensions = array<i32: 1>} : vector<8x1024xi32>
      %c8_i32_18 = arith.constant 8 : i32
      %c0_i32_19 = arith.constant 0 : i32
      %44 = arith.cmpi eq, %c8_i32_18, %c0_i32_19 : i32
      %c1_i32_20 = arith.constant 1 : i32
      %45 = arith.select %44, %c1_i32_20, %c8_i32_18 : i32
      %46 = vector.broadcast %45 : i32 to vector<8x1024xi32>
      %47 = arith.remsi %43, %46 : vector<8x1024xi32>
      %c0_i32_21 = arith.constant 0 : i32
      %48 = vector.broadcast %c0_i32_21 : i32 to vector<8x1024xi32>
      %49 = arith.cmpi ne, %47, %48 : vector<8x1024xi32>
      %c0_i32_22 = arith.constant 0 : i32
      %50 = vector.broadcast %c0_i32_22 : i32 to vector<8x1024xi32>
      %51 = arith.cmpi slt, %47, %50 : vector<8x1024xi32>
      %c0_i32_23 = arith.constant 0 : i32
      %52 = arith.cmpi slt, %45, %c0_i32_23 : i32
      %53 = vector.broadcast %52 : i1 to vector<8x1024xi1>
      %54 = vector.broadcast %53 : vector<8x1024xi1> to vector<8x1024xi1>
      %55 = arith.xori %51, %54 : vector<8x1024xi1>
      %56 = arith.andi %55, %49 : vector<8x1024xi1>
      %57 = vector.broadcast %45 : i32 to vector<8x1024xi32>
      %58 = arith.addi %47, %57 : vector<8x1024xi32>
      %59 = arith.select %56, %58, %47 : vector<8x1024xi1>, vector<8x1024xi32>
      %60 = tpu.iota {dimensions = array<i32: 0>} : vector<8x1024xi32>
      %61 = arith.cmpi eq, %59, %60 : vector<8x1024xi32>
      %62 = arith.extui %61 : vector<8x1024xi1> to vector<8x1024xi32>
      %63 = arith.sitofp %62 : vector<8x1024xi32> to vector<8x1024xf32>
      %c0_24 = arith.constant 0 : index
      %c0_25 = arith.constant 0 : index
      %64 = vector.load %arg8[%c0_24, %c0_25] : memref<1x1024xf32, #tpu.memory_space<vmem>>, vector<1x1024xf32>
      %cst_26 = arith.constant dense<0.000000e+00> : vector<1x8xf32>
      %65 = tpu.matmul %64, %42, %cst_26 {dimension_numbers = #tpu.dot_dimension_numbers<[1], [0], [0], [1], [0, 0, 1, 1], [], []>} : vector<1x1024xf32>, vector<1024x8xf32>, vector<1x8xf32> -> vector<1x8xf32>
      %c0_27 = arith.constant 0 : index
      %c0_28 = arith.constant 0 : index
      %66 = vector.load %arg9[%c0_27, %c0_28] : memref<1x1024xf32, #tpu.memory_space<vmem>>, vector<1x1024xf32>
      %cst_29 = arith.constant dense<0.000000e+00> : vector<1x8xf32>
      %67 = tpu.matmul %66, %42, %cst_29 {dimension_numbers = #tpu.dot_dimension_numbers<[1], [0], [0], [1], [0, 0, 1, 1], [], []>} : vector<1x1024xf32>, vector<1024x8xf32>, vector<1x8xf32> -> vector<1x8xf32>
      %cst_30 = arith.constant 4.8828125E-4 : f32
      %68 = vector.broadcast %cst_30 : f32 to vector<1x8xf32>
      %69 = arith.mulf %65, %68 : vector<1x8xf32>
      %cst_31 = arith.constant 4.8828125E-4 : f32
      %70 = vector.broadcast %cst_31 : f32 to vector<1x8xf32>
      %71 = arith.mulf %67, %70 : vector<1x8xf32>
      %72 = arith.mulf %69, %69 : vector<1x8xf32>
      %73 = arith.subf %71, %72 : vector<1x8xf32>
      %cst_32 = arith.constant dense<0.000000e+00> : vector<1x1024xf32>
      %74 = tpu.matmul %69, %63, %cst_32 {dimension_numbers = #tpu.dot_dimension_numbers<[1], [0], [0], [1], [0, 0, 1, 1], [], []>} : vector<1x8xf32>, vector<8x1024xf32>, vector<1x1024xf32> -> vector<1x1024xf32>
      %cst_33 = arith.constant dense<0.000000e+00> : vector<1x1024xf32>
      %75 = tpu.matmul %73, %63, %cst_33 {dimension_numbers = #tpu.dot_dimension_numbers<[1], [0], [0], [1], [0, 0, 1, 1], [], []>} : vector<1x8xf32>, vector<8x1024xf32>, vector<1x1024xf32> -> vector<1x1024xf32>
      %c0_34 = arith.constant 0 : index
      %c0_35 = arith.constant 0 : index
      %76 = vector.load %arg5[%c0_34, %c0_35] : memref<1x1024xf32, #tpu.memory_space<vmem>>, vector<1x1024xf32>
      %cst_36 = arith.constant 9.99999974E-6 : f32
      %77 = vector.broadcast %cst_36 : f32 to vector<1x1024xf32>
      %78 = arith.addf %75, %77 : vector<1x1024xf32>
      %79 = math.rsqrt %78 : vector<1x1024xf32>
      %80 = arith.mulf %76, %79 : vector<1x1024xf32>
      %c0_37 = arith.constant 0 : index
      %c0_38 = arith.constant 0 : index
      %81 = vector.load %arg10[%c0_37, %c0_38] : memref<1x1024xf32, #tpu.memory_space<vmem>>, vector<1x1024xf32>
      tpu.vector_store %arg10[%c0_37, %c0_38], %80 {strides = array<i32>} : memref<1x1024xf32, #tpu.memory_space<vmem>>, vector<1x1024xf32>,
      %c0_39 = arith.constant 0 : index
      %c0_40 = arith.constant 0 : index
      %82 = vector.load %arg6[%c0_39, %c0_40] : memref<1x1024xf32, #tpu.memory_space<vmem>>, vector<1x1024xf32>
      %83 = arith.mulf %74, %80 : vector<1x1024xf32>
      %84 = arith.subf %82, %83 : vector<1x1024xf32>
      %c0_41 = arith.constant 0 : index
      %c0_42 = arith.constant 0 : index
      %85 = vector.load %arg11[%c0_41, %c0_42] : memref<1x1024xf32, #tpu.memory_space<vmem>>, vector<1x1024xf32>
      tpu.vector_store %arg11[%c0_41, %c0_42], %84 {strides = array<i32>} : memref<1x1024xf32, #tpu.memory_space<vmem>>, vector<1x1024xf32>,
    } else {
    }
    %c1_i32_11 = arith.constant 1 : i32
    %19 = arith.cmpi eq, %arg0, %c1_i32_11 : i32
    %20 = arith.extui %19 : i1 to i32
    %c0_i32_12 = arith.constant 0 : i32
    %21 = arith.cmpi ne, %20, %c0_i32_12 : i32
    scf.if %21 {
      %c0_13 = arith.constant 0 : index
      %c0_14 = arith.constant 0 : index
      %22 = vector.load %arg10[%c0_13, %c0_14] : memref<1x1024xf32, #tpu.memory_space<vmem>>, vector<1x1024xf32>
      %23 = vector.broadcast %22 : vector<1x1024xf32> to vector<16x1024xf32>
      %24 = arith.mulf %5, %23 : vector<16x1024xf32>
      %c0_15 = arith.constant 0 : index
      %c0_16 = arith.constant 0 : index
      %25 = vector.load %arg11[%c0_15, %c0_16] : memref<1x1024xf32, #tpu.memory_space<vmem>>, vector<1x1024xf32>
      %26 = vector.broadcast %25 : vector<1x1024xf32> to vector<16x1024xf32>
      %27 = arith.addf %24, %26 : vector<16x1024xf32>
      %cst_17 = arith.constant 0.000000e+00 : f32
      %28 = vector.broadcast %cst_17 : f32 to vector<16x1024xf32>
      %29 = arith.maximumf %27, %28 : vector<16x1024xf32>
      %c0_18 = arith.constant 0 : index
      %c0_19 = arith.constant 0 : index
      %30 = vector.load %arg7[%c0_18, %c0_19] : memref<16x1024xf32, #tpu.memory_space<vmem>>, vector<16x1024xf32>
      tpu.vector_store %arg7[%c0_18, %c0_19], %29 {strides = array<i32>} : memref<16x1024xf32, #tpu.memory_space<vmem>>, vector<16x1024xf32>,
    } else {
    }
    return
  }
  func.func @transform_0(%arg0: i32, %arg1: i32) -> (i32, i32) {
    %c0_i32 = arith.constant 0 : i32
    %c0_i32_0 = arith.constant 0 : i32
    return %arg1, %c0_i32 : i32, i32
  }
  func.func @transform_1(%arg0: i32, %arg1: i32) -> (i32, i32) {
    %c0_i32 = arith.constant 0 : i32
    %c0_i32_0 = arith.constant 0 : i32
    %c0_i32_1 = arith.constant 0 : i32
    return %c0_i32, %c0_i32_0 : i32, i32
  }
  func.func @transform_2(%arg0: i32, %arg1: i32) -> (i32, i32) {
    %c0_i32 = arith.constant 0 : i32
    %c0_i32_0 = arith.constant 0 : i32
    %c0_i32_1 = arith.constant 0 : i32
    return %c0_i32, %c0_i32_0 : i32, i32
  }
  func.func @transform_3(%arg0: i32, %arg1: i32) -> (i32, i32) {
    %c0_i32 = arith.constant 0 : i32
    %c0_i32_0 = arith.constant 0 : i32
    %c0_i32_1 = arith.constant 0 : i32
    return %c0_i32, %c0_i32_0 : i32, i32
  }
  func.func @transform_4(%arg0: i32, %arg1: i32) -> (i32, i32) {
    %c0_i32 = arith.constant 0 : i32
    %c0_i32_0 = arith.constant 0 : i32
    %c0_i32_1 = arith.constant 0 : i32
    return %c0_i32, %c0_i32_0 : i32, i32
  }
  func.func @transform_5(%arg0: i32, %arg1: i32) -> (i32, i32) {
    %0 = arith.muli %arg1, %arg0 : i32
    %c0_i32 = arith.constant 0 : i32
    %c0_i32_0 = arith.constant 0 : i32
    return %0, %c0_i32 : i32, i32
  }
}

</mosaic_0001>

<bundles_post_ra>
// kernel: tpu_custom_call.1
= control target key start
LH: loop header
LB: loop body
LE: loop exit
PB: predicated region body
PF: predicated region fallthrough
CT: control target
= control target key end

     0   :  { %10 = vsyncpa [#allocation7], 0  ;;  %s8659_s0 = inlined_call_operand.hbm [shape: f32[16,128], index: 0, kind: input, shape index: {}]   ;;  %s8660_s1 = inlined_call_operand.hbm [shape: f32[128,1024], index: 1, kind: input, shape index: {}]   ;;  %s8661_s2 = inlined_call_operand.hbm [shape: f32[1,1024], index: 2, kind: input, shape index: {}]   ;;  %s8662_s3 = inlined_call_operand.vmem [shape: f32[1,1024], index: 3, kind: input, shape index: {}]   ;;  %s8663_s4 = inlined_call_operand.hbm [shape: f32[1,1024], index: 4, kind: input, shape index: {}]   ;;  %s8664_s5 = inlined_call_operand.hbm [shape: f32[16,1024], index: 5, kind: output, shape index: {}]  }
   0x1   :  { %11 = vsyncpa [#allocation10], 0 }
   0x2   :  { %12 = vsyncpa [#allocation13], 0 }
   0x3   :  { %13 = vsyncpa [#allocation8], 0 }
   0x4   :  { %15 = vsyncpa [#allocation8 + $0x1], 0  ;;  %s6311_s18 = smov 0   ;;  %s6313_s19 = smov 0  }
   0x5   :  { %s6315_s20 = smov 0  }
   0x6 LB: > { %s6263_s21 = smov [#allocation9]   ;;  %s4877_s23 = sadd.s32 4294967295, %s6261_s20   ;;  %s6261_s20 = sphi %s6315_s20, %s21_s20   ;;  %s6257_s19 = sphi %s6313_s19, %s9621_s19   ;;  %s6253_s18 = sphi %s6311_s18, %s9620_s18  }
   0x7   : > { %s204_s22 = sshll.u32 %s6263_s21, 4  ;;  %s4878_s24 = sadd.s32 4294967294, %s6261_s20   ;;  %s205_s22 = int_to_ptr.vmem [resolvable:$true] %s204_s22 }
   0x8   : > { %p4879_p0 = scmp.ge.s32.totalorder %s6261_s20, 1  ;;  %p176_p1 = scmp.lt.s32.totalorder %s6261_s20, 3 }
   0x9   : > { %p6332_p2 = scmp.eq.s32.totalorder %s4877_s23, 0  ;;  %s33_s28 = sadd.s32 1, %s6257_s19 }
   0xa   : > { %p6336_p3 = pnand %p4879_p0, %p176_p1  ;;  %p6349_p6 = scmp.ge.s32.totalorder %s33_s28, 2 }
   0xb   : > { %s8955_s25 = scalar_select %p6332_p2, 1, 0 }
   0xc   : > { %s8956_s26 = scalar_select %p6336_p3, 1, 0 }
   0xd   : > { %p5999_p4 = pneg %p6336_p3  ;;  %s6085_s7 = scalar_lea.hbm %s8660_s1, 16384 }
   0xe   : > { %s8958_s29 = scalar_select %p6349_p6, 1, 0 }
   0xf   : > { %p6344_p5 = pnand %p6332_p2, %p5999_p4  ;;  %p6086_p7 = scmp.ne.s32.totalorder %s8660_s1, %s6085_s7 }
  0x10   : > { %p6092_p11 = scmp.lt.u32.totalorder %s6085_s7, %s8660_s1 }
  0x11   : > { %p6361_p8 = pneg %p6344_p5 }
  0x13   : > { %p6088_p9 = pnand %p6361_p8, %p6086_p7 }
  0x15   : > { %p6089_p10 = pneg %p6088_p9 }
  0x17   : > { %p6094_p12 = pnand %p6092_p11, %p6089_p10 }
  0x19   : > { %6097 = shalt.err (!%p6094_p12)
}
  0x1a   : > { %s6098_s13 = scalar_lea.vmem %s205_s22, 16384  ;;  %p6106_p4 = scmp.lt.s32.totalorder %s205_s22, %s205_s22 }
  0x1b   : > { %p6099_p13 = scmp.ne.s32.totalorder %s205_s22, %s6098_s13  ;;  %p6107_p2 = scmp.lt.s32.totalorder %s6098_s13, %s6098_s13 }
  0x1d   : > { %p6101_p0 = pnand %p6099_p13, %p6361_p8  ;;  %p6108_p3 = por %p6107_p2, %p6106_p4 }
  0x1f   : > { %p6102_p1 = pneg %p6101_p0 }
  0x21   : > { %p6109_p6 = pnand %p6108_p3, %p6102_p1 }
  0x23   : > { %6112 = shalt.err (!%p6109_p6)
}
  0x24   : > { %s6264_s14 = smov 1024   ;;  %s6265_s15 = smov 64  }
  0x25   : > { %6005 = dma.hbm_to_vmem [thread:$0]  (!%p6344_p5), %s8660_s1, 16384, %s205_s22, [#allocation10], %s6264_s14, %s6264_s14, %s6265_s15  }
  0x26   : > { %p8960_p7 = scmp.ne.s32.totalorder %s8958_s29, 0  ;;  %s6266_s21 = smov [#allocation6]  }
  0x27   : > { %s191_s30 = sshll.u32 %s6266_s21, 4  ;;  %s6113_s8 = scalar_lea.hbm %s8659_s0, 256  ;;  %s192_s30 = int_to_ptr.vmem [resolvable:$true] %s191_s30 }
  0x28   : > { %s9623_s28 = smov (%p8960_p7, %s33_s28), 0  ;;  %p6114_p2 = scmp.ne.s32.totalorder %s8659_s0, %s6113_s8 }
  0x29   : > { %p6120_p9 = scmp.lt.u32.totalorder %s6113_s8, %s8659_s0 }
  0x2a   : > { %p6116_p3 = pnand %p6114_p2, %p6361_p8 }
  0x2c   : > { %p6117_p6 = pneg %p6116_p3 }
  0x2e   : > { %p6122_p10 = pnand %p6120_p9, %p6117_p6 }
  0x30   : > { %6125 = shalt.err (!%p6122_p10)
}
  0x31   : > { %s6126_s22 = scalar_lea.vmem %s192_s30, 256  ;;  %p6134_p0 = scmp.lt.s32.totalorder %s192_s30, %s192_s30 }
  0x32   : > { %p6127_p11 = scmp.ne.s32.totalorder %s192_s30, %s6126_s22  ;;  %p6135_p1 = scmp.lt.s32.totalorder %s6126_s22, %s6126_s22 }
  0x34   : > { %p6129_p12 = pnand %p6127_p11, %p6361_p8  ;;  %p6136_p4 = por %p6135_p1, %p6134_p0 }
  0x36   : > { %p6130_p13 = pneg %p6129_p12 }
  0x38   : > { %p6137_p7 = pnand %p6136_p4, %p6130_p13 }
  0x3a   : > { %6140 = shalt.err (!%p6137_p7)
}
  0x3b   : > { %s6267_s29 = smov 128   ;;  %s6268_s14 = smov 8  }
  0x3c   : > { %6002 = dma.hbm_to_vmem [thread:$0]  (!%p6344_p5), %s8659_s0, 256, %s192_s30, [#allocation7], %s6267_s29, %s6267_s29, %s6268_s14  }
  0x3d   : > { %s6269_s17 = smov [#allocation11]   ;;  %s6270_s6 = smov [#allocation12]  }
  0x3e   : > { %s218_s21 = sshll.u32 %s6269_s17, 4  ;;  %s232_s7 = sshll.u32 %s6270_s6, 4  ;;  %s219_s21 = int_to_ptr.vmem [resolvable:$true] %s218_s21  ;;  %s6399_s7 = int_to_ptr.vmem [resolvable:$true] %s232_s7 }
  0x3f   : > { %s6141_s11 = scalar_lea.hbm %s8661_s2, 128 }
  0x40   : > { %p6142_p2 = scmp.ne.s32.totalorder %s8661_s2, %s6141_s11  ;;  %p6148_p9 = scmp.lt.u32.totalorder %s6141_s11, %s8661_s2 }
  0x42   : > { %p6144_p3 = pnand %p6142_p2, %p6361_p8 }
  0x44   : > { %p6145_p6 = pneg %p6144_p3 }
  0x46   : > { %p6150_p10 = pnand %p6148_p9, %p6145_p6 }
  0x48   : > { %6153 = shalt.err (!%p6150_p10)
}
  0x49   : > { %s6154_s29 = scalar_lea.vmem %s219_s21, 128  ;;  %p6162_p0 = scmp.lt.s32.totalorder %s219_s21, %s219_s21 }
  0x4a   : > { %p6155_p11 = scmp.ne.s32.totalorder %s219_s21, %s6154_s29  ;;  %p6163_p1 = scmp.lt.s32.totalorder %s6154_s29, %s6154_s29 }
  0x4c   : > { %p6157_p12 = pnand %p6155_p11, %p6361_p8  ;;  %p6164_p4 = por %p6163_p1, %p6162_p0 }
  0x4e   : > { %p6158_p13 = pneg %p6157_p12 }
  0x50   : > { %p6165_p7 = pnand %p6164_p4, %p6158_p13 }
  0x52   : > { %6168 = shalt.err (!%p6165_p7)
}
  0x53   : > { %6008 = dma.hbm_to_vmem [thread:$0]  (!%p6344_p5), %s8661_s2, 128, %s219_s21, [#allocation10]  }
  0x54   : > { %s6169_s6 = scalar_lea.hbm %s8663_s4, 128 }
  0x55   : > { %p6170_p2 = scmp.ne.s32.totalorder %s8663_s4, %s6169_s6  ;;  %p6176_p9 = scmp.lt.u32.totalorder %s6169_s6, %s8663_s4 }
  0x57   : > { %p6172_p3 = pnand %p6170_p2, %p6361_p8 }
  0x59   : > { %p6173_p6 = pneg %p6172_p3 }
  0x5b   : > { %p6178_p10 = pnand %p6176_p9, %p6173_p6 }
  0x5d   : > { %6181 = shalt.err (!%p6178_p10)
}
  0x5e   : > { %s6182_s21 = scalar_lea.vmem %s6399_s7, 128  ;;  %p6190_p0 = scmp.lt.s32.totalorder %s6399_s7, %s6399_s7 }
  0x5f   : > { %p6183_p11 = scmp.ne.s32.totalorder %s6399_s7, %s6182_s21  ;;  %p6191_p1 = scmp.lt.s32.totalorder %s6182_s21, %s6182_s21 }
  0x61   : > { %p6185_p12 = pnand %p6183_p11, %p6361_p8  ;;  %p6192_p4 = por %p6191_p1, %p6190_p0 }
  0x63   : > { %p6186_p13 = pneg %p6185_p12 }
  0x65   : > { %p6193_p7 = pnand %p6192_p4, %p6186_p13 }
  0x67   : > { %6196 = shalt.err (!%p6193_p7)
}
  0x68   : > { %6011 = dma.hbm_to_vmem [thread:$0]  (!%p6344_p5), %s8663_s4, 128, %s6399_s7, [#allocation13]  }
  0x69   : > { %p8961_p2 = scmp.ne.s32.totalorder %s8956_s26, 0 }
  0x6b   : > { %245 = sbr.rel (%p8961_p2) target bundleno = 1233 (0x4d1), region = 40 }
  0x72   : > { %p8962_p3 = scmp.ne.s32.totalorder %s8955_s25, 0 }
  0x74   : > { %6236 = dma.done.wait (%p8962_p3), [#allocation7], 256  }
  0x75   : > { %6238 = vsyncadd (%p8962_p3), [#allocation7], 4294967040 }
  0x76   : > { %6240 = dma.done.wait (%p8962_p3), [#allocation10], 16512  }
  0x77   : > { %6242 = vsyncadd (%p8962_p3), [#allocation10], 4294950784 }
  0x78   : > { %6244 = dma.done.wait (%p8962_p3), [#allocation13], 128  }
  0x79   : > { %6246 = vsyncadd (%p8962_p3), [#allocation13], 4294967168  ;;  %v6271_v0 = vmov 0.0   ;;  %v286_v1 = vld [vmem:[#allocation9 + $0x8] sm:$0xff]  ;;  %v288_v3 = vld [vmem:[#allocation9 + $0x18] sm:$0xff]  ;;  %p763_p5 = scmp.eq.s32.totalorder %s6253_s18, 0 }
  0x7a   : > { %519 = vmatprep.mubr.f32.mxu0 %v6271_v0  ;;  %596 = vmatprep.mubr.f32.mxu1 %v6271_v0  ;;  %v294_v2 = vld [vmem:[#allocation9 + $0x48] sm:$0xff]  ;;  %v296_v5 = vld [vmem:[#allocation9 + $0x58] sm:$0xff]  ;;  %v285_v6 = vld [vmem:[#allocation9] sm:$0xff] }
  0x7b   : > { %v5595_v4 = vpack.c.bf16 %v294_v2, %v286_v1  ;;  %v293_v7 = vld [vmem:[#allocation9 + $0x40] sm:$0xff]  ;;  %v5627_v8 = vpack.c.bf16 %v296_v5, %v288_v3  ;;  %v287_v10 = vld [vmem:[#allocation9 + $0x10] sm:$0xff]  ;;  %v302_v12 = vld [vmem:[#allocation9 + $0x88] sm:$0xff] }
  0x7c   : > { %v5597_v9 = vpack.c.bf16 %v293_v7, %v285_v6  ;;  %v295_v11 = vld [vmem:[#allocation9 + $0x50] sm:$0xff]  ;;  %v310_v14 = vld [vmem:[#allocation9 + $0xc8] sm:$0xff]  ;;  %v304_v15 = vld [vmem:[#allocation9 + $0x98] sm:$0xff] }
  0x7d   : > { %5596 = vmatprep.subr.bf16.mxu0 %v5595_v4  ;;  %v5629_v13 = vpack.c.bf16 %v295_v11, %v287_v10  ;;  %v312_v16 = vld [vmem:[#allocation9 + $0xd8] sm:$0xff]  ;;  %5628 = vmatprep.subr.bf16.mxu1 %v5627_v8  ;;  %v5599_v17 = vpack.c.bf16 %v310_v14, %v302_v12  ;;  %v301_v19 = vld [vmem:[#allocation9 + $0x80] sm:$0xff]  ;;  %v303_v21 = vld [vmem:[#allocation9 + $0x90] sm:$0xff] }
  0x7e   : > { %5598 = vmatpush1.bf16.msra.mxu0 %v5597_v9  ;;  %v5631_v18 = vpack.c.bf16 %v312_v16, %v304_v15  ;;  %v309_v20 = vld [vmem:[#allocation9 + $0xc0] sm:$0xff]  ;;  %v311_v23 = vld [vmem:[#allocation9 + $0xd0] sm:$0xff]  ;;  %v318_v24 = vld [vmem:[#allocation9 + $0x108] sm:$0xff] }
  0x7f   : > { %5630 = vmatpush1.bf16.msra.mxu1 %v5629_v13  ;;  %v5601_v22 = vpack.c.bf16 %v309_v20, %v301_v19  ;;  %v326_v25 = vld [vmem:[#allocation9 + $0x148] sm:$0xff]  ;;  %5600 = vmatprep.subr.bf16.mxu0 %v5599_v17  ;;  %v5633_v26 = vpack.c.bf16 %v311_v23, %v303_v21  ;;  %v320_v28 = vld [vmem:[#allocation9 + $0x118] sm:$0xff]  ;;  %v317_v30 = vld [vmem:[#allocation9 + $0x100] sm:$0xff] }
  0x80   : > { %5632 = vmatprep.subr.bf16.mxu1 %v5631_v18  ;;  %v5603_v27 = vpack.c.bf16 %v326_v25, %v318_v24  ;;  %v328_v29 = vld [vmem:[#allocation9 + $0x158] sm:$0xff]  ;;  %v325_v32 = vld [vmem:[#allocation9 + $0x140] sm:$0xff]  ;;  %v319_v33 = vld [vmem:[#allocation9 + $0x110] sm:$0xff] }
  0x81   : > { %v5635_v31 = vpack.c.bf16 %v328_v29, %v320_v28  ;;  %v327_v34 = vld [vmem:[#allocation9 + $0x150] sm:$0xff]  ;;  %v5605_v35 = vpack.c.bf16 %v325_v32, %v317_v30  ;;  %v334_v36 = vld [vmem:[#allocation9 + $0x188] sm:$0xff]  ;;  %v336_v38 = vld [vmem:[#allocation9 + $0x198] sm:$0xff] }
  0x82   : > { %5602 = vmatpush1.bf16.msra.mxu0 %v5601_v22  ;;  %v342_v37 = vld [vmem:[#allocation9 + $0x1c8] sm:$0xff]  ;;  %v5637_v39 = vpack.c.bf16 %v327_v34, %v319_v33  ;;  %v344_v41 = vld [vmem:[#allocation9 + $0x1d8] sm:$0xff]  ;;  %v333_v42 = vld [vmem:[#allocation9 + $0x180] sm:$0xff] }
  0x83   : > { %5634 = vmatpush1.bf16.msra.mxu1 %v5633_v26  ;;  %5604 = vmatprep.subr.bf16.mxu0 %v5603_v27  ;;  %v5607_v40 = vpack.c.bf16 %v342_v37, %v334_v36  ;;  %v341_v43 = vld [vmem:[#allocation9 + $0x1c0] sm:$0xff]  ;;  %v5639_v44 = vpack.c.bf16 %v344_v41, %v336_v38  ;;  %v335_v45 = vld [vmem:[#allocation9 + $0x190] sm:$0xff]  ;;  %v350_v47 = vld [vmem:[#allocation9 + $0x208] sm:$0xff] }
  0x84   : > { %5636 = vmatprep.subr.bf16.mxu1 %v5635_v31  ;;  %v343_v46 = vld [vmem:[#allocation9 + $0x1d0] sm:$0xff]  ;;  %v358_v48 = vld [vmem:[#allocation9 + $0x248] sm:$0xff]  ;;  %v352_v49 = vld [vmem:[#allocation9 + $0x218] sm:$0xff]  ;;  %v5609_v51 = vpack.c.bf16 %v341_v43, %v333_v42 }
  0x85   : > { %v360_v50 = vld [vmem:[#allocation9 + $0x258] sm:$0xff]  ;;  %v5641_v52 = vpack.c.bf16 %v343_v46, %v335_v45  ;;  %v5611_v53 = vpack.c.bf16 %v358_v48, %v350_v47  ;;  %v349_v54 = vld [vmem:[#allocation9 + $0x200] sm:$0xff]  ;;  %v351_v56 = vld [vmem:[#allocation9 + $0x210] sm:$0xff] }
  0x86   : > { %5606 = vmatpush1.bf16.msra.mxu0 %v5605_v35  ;;  %v357_v55 = vld [vmem:[#allocation9 + $0x240] sm:$0xff]  ;;  %v5643_v57 = vpack.c.bf16 %v360_v50, %v352_v49  ;;  %v359_v58 = vld [vmem:[#allocation9 + $0x250] sm:$0xff]  ;;  %v366_v59 = vld [vmem:[#allocation9 + $0x288] sm:$0xff] }
  0x87   : > { %5638 = vmatpush1.bf16.msra.mxu1 %v5637_v39  ;;  %5608 = vmatprep.subr.bf16.mxu0 %v5607_v40  ;;  %v374_v60 = vld [vmem:[#allocation9 + $0x2c8] sm:$0xff]  ;;  %v368_v61 = vld [vmem:[#allocation9 + $0x298] sm:$0xff]  ;;  %v5613_v63 = vpack.c.bf16 %v357_v55, %v349_v54  ;;  %v5645_v1 = vpack.c.bf16 %v359_v58, %v351_v56  ;;  %v365_v3 = vld [vmem:[#allocation9 + $0x280] sm:$0xff] }
  0x88   : > { %5640 = vmatprep.subr.bf16.mxu1 %v5639_v44  ;;  %v376_v62 = vld [vmem:[#allocation9 + $0x2d8] sm:$0xff]  ;;  %v5615_v2 = vpack.c.bf16 %v374_v60, %v366_v59  ;;  %v373_v4 = vld [vmem:[#allocation9 + $0x2c0] sm:$0xff]  ;;  %v367_v5 = vld [vmem:[#allocation9 + $0x290] sm:$0xff] }
  0x89   : > { %v5647_v6 = vpack.c.bf16 %v376_v62, %v368_v61  ;;  %v375_v7 = vld [vmem:[#allocation9 + $0x2d0] sm:$0xff]  ;;  %v382_v8 = vld [vmem:[#allocation9 + $0x308] sm:$0xff]  ;;  %v384_v10 = vld [vmem:[#allocation9 + $0x318] sm:$0xff]  ;;  %v5617_v12 = vpack.c.bf16 %v373_v4, %v365_v3 }
  0x8a   : > { %5610 = vmatpush1.bf16.msra.mxu0 %v5609_v51  ;;  %v390_v9 = vld [vmem:[#allocation9 + $0x348] sm:$0xff]  ;;  %v392_v11 = vld [vmem:[#allocation9 + $0x358] sm:$0xff]  ;;  %v5649_v13 = vpack.c.bf16 %v375_v7, %v367_v5  ;;  %v381_v15 = vld [vmem:[#allocation9 + $0x300] sm:$0xff] }
  0x8b   : > { %5642 = vmatpush1.bf16.msra.mxu1 %v5641_v52  ;;  %5612 = vmatprep.subr.bf16.mxu0 %v5611_v53  ;;  %v5619_v14 = vpack.c.bf16 %v390_v9, %v382_v8  ;;  %v389_v16 = vld [vmem:[#allocation9 + $0x340] sm:$0xff]  ;;  %v383_v17 = vld [vmem:[#allocation9 + $0x310] sm:$0xff]  ;;  %v5651_v18 = vpack.c.bf16 %v392_v11, %v384_v10  ;;  %v398_v20 = vld [vmem:[#allocation9 + $0x388] sm:$0xff] }
  0x8c   : > { %5644 = vmatprep.subr.bf16.mxu1 %v5643_v57  ;;  %v391_v19 = vld [vmem:[#allocation9 + $0x350] sm:$0xff]  ;;  %v406_v21 = vld [vmem:[#allocation9 + $0x3c8] sm:$0xff]  ;;  %v400_v22 = vld [vmem:[#allocation9 + $0x398] sm:$0xff]  ;;  %v5621_v24 = vpack.c.bf16 %v389_v16, %v381_v15 }
  0x8d   : > { %v408_v23 = vld [vmem:[#allocation9 + $0x3d8] sm:$0xff]  ;;  %v5653_v25 = vpack.c.bf16 %v391_v19, %v383_v17  ;;  %v5623_v26 = vpack.c.bf16 %v406_v21, %v398_v20  ;;  %v397_v27 = vld [vmem:[#allocation9 + $0x380] sm:$0xff]  ;;  %v399_v29 = vld [vmem:[#allocation9 + $0x390] sm:$0xff] }
  0x8e   : > { %5614 = vmatpush1.bf16.msra.mxu0 %v5613_v63  ;;  %v405_v28 = vld [vmem:[#allocation9 + $0x3c0] sm:$0xff]  ;;  %v5655_v30 = vpack.c.bf16 %v408_v23, %v400_v22  ;;  %v407_v31 = vld [vmem:[#allocation9 + $0x3d0] sm:$0xff]  ;;  %v290_v32 = vld [vmem:[#allocation9 + $0x28] sm:$0xff] }
  0x8f   : > { %5646 = vmatpush1.bf16.msra.mxu1 %v5645_v1  ;;  %5616 = vmatprep.subr.bf16.mxu0 %v5615_v2  ;;  %v298_v33 = vld [vmem:[#allocation9 + $0x68] sm:$0xff]  ;;  %v292_v34 = vld [vmem:[#allocation9 + $0x38] sm:$0xff]  ;;  %v5625_v36 = vpack.c.bf16 %v405_v28, %v397_v27  ;;  %v5657_v37 = vpack.c.bf16 %v407_v31, %v399_v29  ;;  %v289_v39 = vld [vmem:[#allocation9 + $0x20] sm:$0xff] }
  0x90   : > { %5648 = vmatprep.subr.bf16.mxu1 %v5647_v6  ;;  %v300_v35 = vld [vmem:[#allocation9 + $0x78] sm:$0xff]  ;;  %v5659_v38 = vpack.c.bf16 %v298_v33, %v290_v32  ;;  %v297_v40 = vld [vmem:[#allocation9 + $0x60] sm:$0xff]  ;;  %v291_v41 = vld [vmem:[#allocation9 + $0x30] sm:$0xff] }
  0x91   : > { %v5691_v42 = vpack.c.bf16 %v300_v35, %v292_v34  ;;  %v299_v43 = vld [vmem:[#allocation9 + $0x70] sm:$0xff]  ;;  %v306_v44 = vld [vmem:[#allocation9 + $0xa8] sm:$0xff]  ;;  %v308_v46 = vld [vmem:[#allocation9 + $0xb8] sm:$0xff]  ;;  %v5661_v49 = vpack.c.bf16 %v297_v40, %v289_v39 }
  0x92   : > { %5618 = vmatpush1.bf16.msra.mxu0 %v5617_v12  ;;  %v314_v45 = vld [vmem:[#allocation9 + $0xe8] sm:$0xff]  ;;  %v316_v47 = vld [vmem:[#allocation9 + $0xf8] sm:$0xff]  ;;  %v6458_v48 = vld [vmem:[#allocation6] sm:$0xff]  ;;  %v5693_v50 = vpack.c.bf16 %v299_v43, %v291_v41 }
  0x93   : > { %5650 = vmatpush1.bf16.msra.mxu1 %v5649_v13  ;;  %5620 = vmatprep.subr.bf16.mxu0 %v5619_v14  ;;  %v5663_v51 = vpack.c.bf16 %v314_v45, %v306_v44  ;;  %v305_v52 = vld [vmem:[#allocation9 + $0xa0] sm:$0xff]  ;;  %v307_v54 = vld [vmem:[#allocation9 + $0xb0] sm:$0xff]  ;;  %v5695_v55 = vpack.c.bf16 %v316_v47, %v308_v46  ;;  %v322_v57 = vld [vmem:[#allocation9 + $0x128] sm:$0xff] }
  0x94   : > { %5652 = vmatprep.subr.bf16.mxu1 %v5651_v18  ;;  %v313_v53 = vld [vmem:[#allocation9 + $0xe0] sm:$0xff]  ;;  %v315_v56 = vld [vmem:[#allocation9 + $0xf0] sm:$0xff]  ;;  %v330_v58 = vld [vmem:[#allocation9 + $0x168] sm:$0xff] }
  0x95   : > { %v324_v59 = vld [vmem:[#allocation9 + $0x138] sm:$0xff]  ;;  %v5665_v61 = vpack.c.bf16 %v313_v53, %v305_v52  ;;  %v5697_v62 = vpack.c.bf16 %v315_v56, %v307_v54  ;;  %v5667_v63 = vpack.c.bf16 %v330_v58, %v322_v57  ;;  %v321_v1 = vld [vmem:[#allocation9 + $0x120] sm:$0xff]  ;;  %v323_v3 = vld [vmem:[#allocation9 + $0x130] sm:$0xff] }
  0x96   : > { %5622 = vmatpush1.bf16.msra.mxu0 %v5621_v24  ;;  %v332_v60 = vld [vmem:[#allocation9 + $0x178] sm:$0xff]  ;;  %v329_v2 = vld [vmem:[#allocation9 + $0x160] sm:$0xff]  ;;  %v331_v5 = vld [vmem:[#allocation9 + $0x170] sm:$0xff] }
  0x97   : > { %5654 = vmatpush1.bf16.msra.mxu1 %v5653_v25  ;;  %5624 = vmatprep.subr.bf16.mxu0 %v5623_v26  ;;  %v5699_v4 = vpack.c.bf16 %v332_v60, %v324_v59  ;;  %v338_v6 = vld [vmem:[#allocation9 + $0x1a8] sm:$0xff]  ;;  %v340_v8 = vld [vmem:[#allocation9 + $0x1b8] sm:$0xff]  ;;  %v5669_v10 = vpack.c.bf16 %v329_v2, %v321_v1  ;;  %v5701_v12 = vpack.c.bf16 %v331_v5, %v323_v3  ;;  %v337_v14 = vld [vmem:[#allocation9 + $0x1a0] sm:$0xff] }
  0x98   : > { %5656 = vmatprep.subr.bf16.mxu1 %v5655_v30  ;;  %v346_v7 = vld [vmem:[#allocation9 + $0x1e8] sm:$0xff]  ;;  %v348_v9 = vld [vmem:[#allocation9 + $0x1f8] sm:$0xff]  ;;  %v345_v15 = vld [vmem:[#allocation9 + $0x1e0] sm:$0xff] }
  0x99   : > { %v6464_v11 = vld [vmem:[#allocation6 + $0x8] sm:$0xff]  ;;  %v5671_v13 = vpack.c.bf16 %v346_v7, %v338_v6  ;;  %v339_v16 = vld [vmem:[#allocation9 + $0x1b0] sm:$0xff]  ;;  %v5703_v17 = vpack.c.bf16 %v348_v9, %v340_v8  ;;  %v354_v19 = vld [vmem:[#allocation9 + $0x228] sm:$0xff]  ;;  %v5673_v23 = vpack.c.bf16 %v345_v15, %v337_v14  ;;  %v8668_v7 = vlaneseq }
  0x9a   : > { %5626 = vmatpush1.bf16.msra.mxu0 %v5625_v36  ;;  %v347_v18 = vld [vmem:[#allocation9 + $0x1f0] sm:$0xff]  ;;  %v362_v20 = vld [vmem:[#allocation9 + $0x268] sm:$0xff]  ;;  %v356_v21 = vld [vmem:[#allocation9 + $0x238] sm:$0xff] }
  0x9b   : > { %5658 = vmatpush1.bf16.msra.mxu1 %v5657_v37  ;;  %5660 = vmatprep.subr.bf16.mxu0 %v5659_v38  ;;  %v364_v22 = vld [vmem:[#allocation9 + $0x278] sm:$0xff]  ;;  %v5705_v24 = vpack.c.bf16 %v347_v18, %v339_v16  ;;  %v5675_v25 = vpack.c.bf16 %v362_v20, %v354_v19  ;;  %v353_v26 = vld [vmem:[#allocation9 + $0x220] sm:$0xff]  ;;  %v355_v28 = vld [vmem:[#allocation9 + $0x230] sm:$0xff]  ;;  %v6478_v8 = vshrl.u32 %v8668_v7, 7 }
  0x9c   : > { %5692 = vmatprep.subr.bf16.mxu1 %v5691_v42  ;;  %v361_v27 = vld [vmem:[#allocation9 + $0x260] sm:$0xff]  ;;  %v5707_v29 = vpack.c.bf16 %v364_v22, %v356_v21  ;;  %v363_v30 = vld [vmem:[#allocation9 + $0x270] sm:$0xff]  ;;  %v370_v31 = vld [vmem:[#allocation9 + $0x2a8] sm:$0xff] }
  0x9d   : > { %520 = vmatmul.mubr.f32.vlgmr.msra.gmra.mrb[0].mxu0 %v6458_v48  ;;  %v378_v32 = vld [vmem:[#allocation9 + $0x2e8] sm:$0xff]  ;;  %v372_v33 = vld [vmem:[#allocation9 + $0x2b8] sm:$0xff]  ;;  %v5677_v35 = vpack.c.bf16 %v361_v27, %v353_v26  ;;  %v5709_v36 = vpack.c.bf16 %v363_v30, %v355_v28  ;;  %v369_v38 = vld [vmem:[#allocation9 + $0x2a0] sm:$0xff]  ;;  %v6481_v9 = vsub.s32 0, %v6478_v8 }
  0x9e   : > { %597 = vmatmul.mubr.f32.vlgmr.msra.gmra.mrb[0].mxu1 %v6458_v48  ;;  %5662 = vmatpush1.bf16.msra.mxu0 %v5661_v49  ;;  %v380_v34 = vld [vmem:[#allocation9 + $0x2f8] sm:$0xff]  ;;  %v5679_v37 = vpack.c.bf16 %v378_v32, %v370_v31  ;;  %v377_v39 = vld [vmem:[#allocation9 + $0x2e0] sm:$0xff]  ;;  %v371_v40 = vld [vmem:[#allocation9 + $0x2b0] sm:$0xff]  ;;  %v6513_v32 = vsub.s32 4, %v6478_v8 }
  0x9f   : > { %5694 = vmatpush1.bf16.msra.mxu1 %v5693_v50  ;;  %5664 = vmatprep.subr.bf16.mxu0 %v5663_v51  ;;  %v5711_v41 = vpack.c.bf16 %v380_v34, %v372_v33  ;;  %v379_v42 = vld [vmem:[#allocation9 + $0x2f0] sm:$0xff]  ;;  %v386_v43 = vld [vmem:[#allocation9 + $0x328] sm:$0xff]  ;;  %v388_v45 = vld [vmem:[#allocation9 + $0x338] sm:$0xff]  ;;  %v5681_v47 = vpack.c.bf16 %v377_v39, %v369_v38  ;;  %8963 = vst [vmem:[#allocation19_spill] sm:$0xff] %v6481_v9  ;;  %v6516_v33 = vsub.s32 6, %v6478_v8  ;;  %v6519_v34 = vsub.s32 5, %v6478_v8 }
  0xa0   : > { %5696 = vmatprep.subr.bf16.mxu1 %v5695_v55  ;;  %525 = vmatprep.mubr.f32.mxu0 %v6271_v0  ;;  %v394_v44 = vld [vmem:[#allocation9 + $0x368] sm:$0xff]  ;;  %v396_v46 = vld [vmem:[#allocation9 + $0x378] sm:$0xff]  ;;  %v5713_v49 = vpack.c.bf16 %v379_v42, %v371_v40  ;;  %v385_v51 = vld [vmem:[#allocation9 + $0x320] sm:$0xff] }
  0xa1   : > { %602 = vmatprep.mubr.f32.mxu1 %v6271_v0  ;;  %526 = vmatmul.mubr.f32.gmra.mrb[2].mxu0 %v6464_v11  ;;  %v5683_v50 = vpack.c.bf16 %v394_v44, %v386_v43  ;;  %v393_v52 = vld [vmem:[#allocation9 + $0x360] sm:$0xff]  ;;  %v387_v53 = vld [vmem:[#allocation9 + $0x330] sm:$0xff]  ;;  %v5715_v54 = vpack.c.bf16 %v396_v46, %v388_v45  ;;  %v402_v56 = vld [vmem:[#allocation9 + $0x3a8] sm:$0xff] }
  0xa2   : > { %5666 = vmatpush1.bf16.msra.mxu0 %v5665_v61  ;;  %603 = vmatmul.mubr.f32.gmra.mrb[2].mxu1 %v6464_v11  ;;  %v395_v55 = vld [vmem:[#allocation9 + $0x370] sm:$0xff]  ;;  %v410_v57 = vld [vmem:[#allocation9 + $0x3e8] sm:$0xff]  ;;  %v404_v58 = vld [vmem:[#allocation9 + $0x3b8] sm:$0xff]  ;;  %v5685_v60 = vpack.c.bf16 %v393_v52, %v385_v51 }
  0xa3   : > { %5698 = vmatpush1.bf16.msra.mxu1 %v5697_v62  ;;  %5668 = vmatprep.subr.bf16.mxu0 %v5667_v63  ;;  %v412_v59 = vld [vmem:[#allocation9 + $0x3f8] sm:$0xff]  ;;  %v5717_v61 = vpack.c.bf16 %v395_v55, %v387_v53  ;;  %v5687_v62 = vpack.c.bf16 %v410_v57, %v402_v56  ;;  %v401_v63 = vld [vmem:[#allocation9 + $0x3a0] sm:$0xff]  ;;  %v403_v3 = vld [vmem:[#allocation9 + $0x3b0] sm:$0xff]  ;;  %v6272_v57 = vmov (%p763_p5), 0.0  }
  0xa4   : > { %5700 = vmatprep.subr.bf16.mxu1 %v5699_v4  ;;  %673 = vmatprep.mubr.f32.mxu0 %v6271_v0  ;;  %v409_v1 = vld [vmem:[#allocation9 + $0x3e0] sm:$0xff]  ;;  %v5719_v2 = vpack.c.bf16 %v412_v59, %v404_v58  ;;  %v411_v4 = vld [vmem:[#allocation9 + $0x3f0] sm:$0xff]  ;;  %769 = vst [vmem:[#allocation2] sm:$0xff] (%p763_p5), %v6272_v57  ;;  %770 = vst [vmem:[#allocation3] sm:$0xff] (%p763_p5), %v6272_v57 }
  0xa5   : > { %750 = vmatprep.mubr.f32.mxu1 %v6271_v0  ;;  %v5689_v5 = vpack.c.bf16 %v409_v1, %v401_v63  ;;  %v5721_v6 = vpack.c.bf16 %v411_v4, %v403_v3 }
  0xa6   : > { %5670 = vmatpush1.bf16.msra.mxu0 %v5669_v10  ;;  %v413_v10 = vld [vmem:[#allocation11] sm:$0xff] }
  0xa7   : > { %5702 = vmatpush1.bf16.msra.mxu1 %v5701_v12  ;;  %5672 = vmatprep.subr.bf16.mxu0 %v5671_v13  ;;  %v6484_v12 = vsub.s32 2, %v6478_v8  ;;  %v438_v38 = vrot.slane %v413_v10, %v6519_v34 }
  0xa8   : > { %5704 = vmatprep.subr.bf16.mxu1 %v5703_v17 }
  0xa9   : > { %8964 = vst [vmem:[#allocation20_spill] sm:$0xff] %v6484_v12  ;;  %v426_v13 = vrot.slane %v413_v10, %v6484_v12 }
  0xaa   : > { %5674 = vmatpush1.bf16.msra.mxu0 %v5673_v23 }
  0xab   : > { %5706 = vmatpush1.bf16.msra.mxu1 %v5705_v24  ;;  %5676 = vmatprep.subr.bf16.mxu0 %v5675_v25 }
  0xac   : > { %5708 = vmatprep.subr.bf16.mxu1 %v5707_v29 }
  0xae   : > { %5678 = vmatpush1.bf16.msra.mxu0 %v5677_v35  ;;  %v6522_v35 = vsub.s32 7, %v6478_v8 }
  0xaf   : > { %5710 = vmatpush1.bf16.msra.mxu1 %v5709_v36  ;;  %5680 = vmatprep.subr.bf16.mxu0 %v5679_v37  ;;  %v434_v36 = vrot.slane %v413_v10, %v6513_v32  ;;  %v442_v37 = vrot.slane %v413_v10, %v6516_v33 }
  0xb0   : > { %5712 = vmatprep.subr.bf16.mxu1 %v5711_v41  ;;  %v446_v39 = vrot.slane %v413_v10, %v6522_v35 }
  0xb2   : > { %5682 = vmatpush1.bf16.msra.mxu0 %v5681_v47 }
  0xb3   : > { %5714 = vmatpush1.bf16.msra.mxu1 %v5713_v49  ;;  %5684 = vmatprep.subr.bf16.mxu0 %v5683_v50 }
  0xb4   : > { %5716 = vmatprep.subr.bf16.mxu1 %v5715_v54 }
  0xb6   : > { %5686 = vmatpush1.bf16.msra.mxu0 %v5685_v60 }
  0xb7   : > { %5718 = vmatpush1.bf16.msra.mxu1 %v5717_v61  ;;  %5688 = vmatprep.subr.bf16.mxu0 %v5687_v62 }
  0xb8   : > { %5720 = vmatprep.subr.bf16.mxu1 %v5719_v2 }
  0xba   : > { %5690 = vmatpush1.bf16.msra.mxu0 %v5689_v5 }
  0xbb   : > { %5722 = vmatpush1.bf16.msra.mxu1 %v5721_v6 }
  0xbd   : > { %674 = vmatmul.mubr.f32.vlgmr.msra.gmra.mrb[4].mxu0 %v6458_v48 }
  0xbe   : > { %751 = vmatmul.mubr.f32.vlgmr.msra.gmra.mrb[4].mxu1 %v6458_v48  ;;  %679 = vmatprep.mubr.f32.mxu0 %v6271_v0  ;;  %v6487_v48 = vsub.s32 1, %v6478_v8 }
  0xbf   : > { %756 = vmatprep.mubr.f32.mxu1 %v6271_v0  ;;  %v6490_v0 = vsub.s32 3, %v6478_v8 }
  0xc0   : > { %v422_v14 = vrot.slane %v413_v10, %v6487_v48 }
  0xc1   : > { %680 = vmatmul.mubr.f32.gmra.mrb[6].mxu0 %v6464_v11  ;;  %v430_v15 = vrot.slane %v413_v10, %v6490_v0 }
  0xc2   : > { %757 = vmatmul.mubr.f32.gmra.mrb[6].mxu1 %v6464_v11  ;;  %v418_v11 = vrot.slane %v413_v10, %v6481_v9 }
 0x170   : > { %v521_v16 = vpop.f32.mrb[0].mxu0 }
 0x171   : > { %v6496_v17 = vadd.f32 %v521_v16, %v418_v11  ;;  %v598_v18 = vpop.f32.mrb[0].mxu1  ;;  %v523_v19 = vpop.f32.mrb[1].mxu0 }
 0x172   : > { %v6498_v20 = vadd.f32 %v598_v18, %v426_v13  ;;  %v6500_v21 = vadd.f32 %v523_v19, %v422_v14  ;;  %v600_v22 = vpop.f32.mrb[1].mxu1 }
 0x173   : > { %8965 = vst [vmem:[#allocation21_spill] sm:$0xff] %v6496_v17  ;;  %v6502_v23 = vadd.f32 %v600_v22, %v430_v15 }
 0x174   : > { %8966 = vst [vmem:[#allocation22_spill] sm:$0xff] %v6498_v20  ;;  %8967 = vst [vmem:[#allocation23_spill] sm:$0xff] %v6500_v21  ;;  %v527_v24 = vpop.f32.mrb[2].mxu0 }
 0x175   : > { %8968 = vst [vmem:[#allocation24_spill] sm:$0xff] %v6502_v23  ;;  %v6504_v25 = vadd.f32 %v527_v24, %v418_v11  ;;  %v604_v26 = vpop.f32.mrb[2].mxu1  ;;  %v529_v27 = vpop.f32.mrb[3].mxu0 }
 0x176   : > { %v6506_v28 = vadd.f32 %v604_v26, %v426_v13  ;;  %v6508_v29 = vadd.f32 %v529_v27, %v422_v14  ;;  %v606_v30 = vpop.f32.mrb[3].mxu1 }
 0x177   : > { %8969 = vst [vmem:[#allocation25_spill] sm:$0xff] %v6504_v25  ;;  %v6510_v31 = vadd.f32 %v606_v30, %v430_v15 }
 0x178   : > { %8970 = vst [vmem:[#allocation26_spill] sm:$0xff] %v6506_v28  ;;  %8971 = vst [vmem:[#allocation27_spill] sm:$0xff] %v6508_v29 }
 0x179   : > { %8972 = vst [vmem:[#allocation28_spill] sm:$0xff] %v6510_v31 }
 0x190   : > { %v675_v40 = vpop.f32.mrb[4].mxu0 }
 0x191   : > { %v6528_v41 = vadd.f32 %v675_v40, %v434_v36  ;;  %v752_v42 = vpop.f32.mrb[4].mxu1  ;;  %v677_v43 = vpop.f32.mrb[5].mxu0 }
 0x192   : > { %v6530_v44 = vadd.f32 %v752_v42, %v442_v37  ;;  %v6532_v45 = vadd.f32 %v677_v43, %v438_v38  ;;  %v754_v46 = vpop.f32.mrb[5].mxu1 }
 0x193   : > { %8973 = vst [vmem:[#allocation29_spill] sm:$0xff] %v6528_v41  ;;  %v6534_v47 = vadd.f32 %v754_v46, %v446_v39  ;;  %768 = sbr.rel (!%p763_p5) target bundleno = 410 (0x19a), region = 60 }
 0x194   : > { %8974 = vst [vmem:[#allocation30_spill] sm:$0xff] %v6530_v44  ;;  %8975 = vst [vmem:[#allocation31_spill] sm:$0xff] %v6532_v45  ;;  %v681_v49 = vpop.f32.mrb[6].mxu0 }
 0x195   : > { %8976 = vst [vmem:[#allocation32_spill] sm:$0xff] %v6534_v47  ;;  %v6536_v50 = vadd.f32 %v681_v49, %v434_v36  ;;  %v758_v51 = vpop.f32.mrb[6].mxu1  ;;  %v683_v52 = vpop.f32.mrb[7].mxu0 }
 0x196   : > { %v6538_v53 = vadd.f32 %v758_v51, %v442_v37  ;;  %v6540_v54 = vadd.f32 %v683_v52, %v438_v38  ;;  %v760_v55 = vpop.f32.mrb[7].mxu1 }
 0x197   : > { %8977 = vst [vmem:[#allocation33_spill] sm:$0xff] %v6536_v50  ;;  %v6542_v56 = vadd.f32 %v760_v55, %v446_v39 }
 0x198   : > { %8978 = vst [vmem:[#allocation34_spill] sm:$0xff] %v6538_v53  ;;  %8979 = vst [vmem:[#allocation35_spill] sm:$0xff] %v6540_v54 }
 0x199   : > { %8980 = vst [vmem:[#allocation36_spill] sm:$0xff] %v6542_v56 }
 0x19a PF: > { %p4890_p8 = scmp.ne.s32.totalorder %s6253_s18, 0 }
 0x19b   : > { %v775_v58 = vadd.f32 (!%p4890_p8), %v6504_v25, %v6496_v17  ;;  %v782_v59 = vadd.f32 (!%p4890_p8), %v6508_v29, %v6500_v21  ;;  %v789_v60 = vadd.f32 (!%p4890_p8), %v6506_v28, %v6498_v20  ;;  %v796_v61 = vadd.f32 (!%p4890_p8), %v6510_v31, %v6502_v23 }
 0x19c   : > { %773 = sbr.rel (%p4890_p8) target bundleno = 469 (0x1d5), region = 64  ;;  %v803_v62 = vadd.f32 (!%p4890_p8), %v6536_v50, %v6528_v41  ;;  %v810_v63 = vadd.f32 (!%p4890_p8), %v6540_v54, %v6532_v45  ;;  %v817_v1 = vadd.f32 (!%p4890_p8), %v6538_v53, %v6530_v44  ;;  %v824_v2 = vadd.f32 (!%p4890_p8), %v6542_v56, %v6534_v47 }
 0x19d   : > { %v776_v3 = vrot.slane (!%p4890_p8), %v775_v58, 4  ;;  %v783_v4 = vrot.slane (!%p4890_p8), %v782_v59, 4  ;;  %v790_v5 = vrot.slane (!%p4890_p8), %v789_v60, 4  ;;  %v797_v6 = vrot.slane (!%p4890_p8), %v796_v61, 4 }
 0x19e   : > { %v804_v10 = vrot.slane (!%p4890_p8), %v803_v62, 4  ;;  %v811_v11 = vrot.slane (!%p4890_p8), %v810_v63, 4  ;;  %v818_v13 = vrot.slane (!%p4890_p8), %v817_v1, 4  ;;  %v825_v14 = vrot.slane (!%p4890_p8), %v824_v2, 4 }
 0x19f   : > { %v777_v15 = vadd.f32 (!%p4890_p8), %v776_v3, %v775_v58  ;;  %v784_v16 = vadd.f32 (!%p4890_p8), %v783_v4, %v782_v59  ;;  %v791_v18 = vadd.f32 (!%p4890_p8), %v790_v5, %v789_v60  ;;  %v798_v19 = vadd.f32 (!%p4890_p8), %v797_v6, %v796_v61 }
 0x1a0   : > { %v805_v22 = vadd.f32 (!%p4890_p8), %v804_v10, %v803_v62  ;;  %v812_v24 = vadd.f32 (!%p4890_p8), %v811_v11, %v810_v63  ;;  %v819_v26 = vadd.f32 (!%p4890_p8), %v818_v13, %v817_v1  ;;  %v826_v27 = vadd.f32 (!%p4890_p8), %v825_v14, %v824_v2 }
 0x1a1   : > { %v778_v30 = vrot.slane (!%p4890_p8), %v777_v15, 2  ;;  %v785_v36 = vrot.slane (!%p4890_p8), %v784_v16, 2  ;;  %v792_v37 = vrot.slane (!%p4890_p8), %v791_v18, 2  ;;  %v799_v38 = vrot.slane (!%p4890_p8), %v798_v19, 2 }
 0x1a2   : > { %v806_v39 = vrot.slane (!%p4890_p8), %v805_v22, 2  ;;  %v813_v40 = vrot.slane (!%p4890_p8), %v812_v24, 2  ;;  %v820_v42 = vrot.slane (!%p4890_p8), %v819_v26, 2  ;;  %v827_v43 = vrot.slane (!%p4890_p8), %v826_v27, 2 }
 0x1a3   : > { %v779_v46 = vadd.f32 %v778_v30, %v777_v15  ;;  %v786_v49 = vadd.f32 %v785_v36, %v784_v16  ;;  %v793_v51 = vadd.f32 %v792_v37, %v791_v18  ;;  %v800_v52 = vadd.f32 %v799_v38, %v798_v19 }
 0x1a4   : > { %v807_v55 = vadd.f32 %v806_v39, %v805_v22  ;;  %v814_v57 = vadd.f32 %v813_v40, %v812_v24  ;;  %v821_v58 = vadd.f32 %v820_v42, %v819_v26  ;;  %v828_v59 = vadd.f32 %v827_v43, %v826_v27 }
 0x1a5   : > { %v780_v60 = vrot.slane %v779_v46, 1  ;;  %v787_v61 = vrot.slane %v786_v49, 1  ;;  %v794_v62 = vrot.slane %v793_v51, 1  ;;  %v801_v63 = vrot.slane %v800_v52, 1 }
 0x1a6   : > { %v808_v1 = vrot.slane %v807_v55, 1  ;;  %v815_v2 = vrot.slane %v814_v57, 1  ;;  %v822_v3 = vrot.slane %v821_v58, 1  ;;  %v829_v4 = vrot.slane %v828_v59, 1 }
 0x1a7   : > { %v781_v5 = vadd.f32 %v780_v60, %v779_v46  ;;  %v788_v6 = vadd.f32 %v787_v61, %v786_v49  ;;  %v795_v10 = vadd.f32 %v794_v62, %v793_v51  ;;  %v802_v11 = vadd.f32 %v801_v63, %v800_v52 }
 0x1a8   : > { %v809_v13 = vadd.f32 %v808_v1, %v807_v55  ;;  %v816_v14 = vadd.f32 %v815_v2, %v814_v57  ;;  %v823_v15 = vadd.f32 %v822_v3, %v821_v58  ;;  %v830_v16 = vadd.f32 %v829_v4, %v828_v59 }
 0x1a9   : > { %v839_v18 = vcombine.low %v781_v5, %v788_v6  ;;  %v840_v19 = vcombine.low %v795_v10, %v802_v11  ;;  %v892_v22 = vmul.f32 %v6496_v17, %v6496_v17  ;;  %v6273_v27 = vmov 1966171168  }
 0x1aa   : > { %v841_v24 = vcombine.low %v809_v13, %v816_v14  ;;  %v842_v26 = vcombine.low %v823_v15, %v830_v16  ;;  %v844_v30 = vunpack.c.l.s4 %v6273_v27  ;;  %v893_v36 = vmul.f32 %v6500_v21, %v6500_v21 }
 0x1ab   : > { %v894_v37 = vmul.f32 %v6498_v20, %v6498_v20  ;;  %v895_v38 = vmul.f32 %v6502_v23, %v6502_v23  ;;  %v896_v39 = vmul.f32 %v6528_v41, %v6528_v41  ;;  %v897_v40 = vmul.f32 %v6532_v45, %v6532_v45 }
 0x1ac   : > { %v845_v42 = vunpack.c.0.s8 %v844_v30  ;;  %v898_v43 = vmul.f32 %v6530_v44, %v6530_v44  ;;  %v899_v46 = vmul.f32 %v6534_v47, %v6534_v47  ;;  %v900_v49 = vmul.f32 %v6504_v25, %v6504_v25 }
 0x1ad   : > { %v901_v51 = vmul.f32 %v6508_v29, %v6508_v29  ;;  %v902_v52 = vmul.f32 %v6506_v28, %v6506_v28  ;;  %v903_v55 = vmul.f32 %v6510_v31, %v6510_v31  ;;  %v904_v57 = vmul.f32 %v6536_v50, %v6536_v50 }
 0x1ae   : > { %v6590_v58 = vsub.s32 %v845_v42, %v6478_v8  ;;  %v905_v59 = vmul.f32 %v6540_v54, %v6540_v54  ;;  %v906_v60 = vmul.f32 %v6538_v53, %v6538_v53  ;;  %v907_v61 = vmul.f32 %v6542_v56, %v6542_v56 }
 0x1af   : > { %v908_v62 = vadd.f32 %v900_v49, %v892_v22  ;;  %v915_v63 = vadd.f32 %v901_v51, %v893_v36  ;;  %v922_v1 = vadd.f32 %v902_v52, %v894_v37  ;;  %v929_v2 = vadd.f32 %v903_v55, %v895_v38  ;;  %v774_v49 = vld [vmem:[#allocation2] sm:$0xff] }
 0x1b0   : > { %v849_v3 = vrot.slane %v839_v18, %v6590_v58  ;;  %v856_v4 = vrot.slane %v840_v19, %v6590_v58  ;;  %v863_v5 = vrot.slane %v841_v24, %v6590_v58  ;;  %v870_v6 = vrot.slane %v842_v26, %v6590_v58 }
 0x1b1   : > { %v909_v10 = vrot.slane %v908_v62, 4  ;;  %v916_v11 = vrot.slane %v915_v63, 4  ;;  %v923_v13 = vrot.slane %v922_v1, 4  ;;  %v930_v14 = vrot.slane %v929_v2, 4 }
 0x1b2   : > { %v871_v15 = vcombine.low %v849_v3, %v856_v4  ;;  %v872_v16 = vcombine.low %v863_v5, %v870_v6  ;;  %v936_v27 = vadd.f32 %v904_v57, %v896_v39  ;;  %v943_v30 = vadd.f32 %v905_v59, %v897_v40 }
 0x1b3   : > { %v910_v22 = vadd.f32 %v909_v10, %v908_v62  ;;  %v917_v36 = vadd.f32 %v916_v11, %v915_v63  ;;  %v924_v37 = vadd.f32 %v923_v13, %v922_v1  ;;  %v931_v38 = vadd.f32 %v930_v14, %v929_v2 }
 0x1b4   : > { %v879_v18 = vrot.slane %v871_v15, %v6590_v58  ;;  %v886_v19 = vrot.slane %v872_v16, %v6590_v58  ;;  %v937_v42 = vrot.slane %v936_v27, 4  ;;  %v944_v24 = vrot.slane %v943_v30, 4 }
 0x1b5   : > { %v911_v26 = vrot.slane %v910_v22, 2  ;;  %v918_v51 = vrot.slane %v917_v36, 2  ;;  %v925_v52 = vrot.slane %v924_v37, 2  ;;  %v932_v55 = vrot.slane %v931_v38, 2 }
 0x1b6   : > { %v887_v7 = vcombine.low %v879_v18, %v886_v19  ;;  %v938_v3 = vadd.f32 %v937_v42, %v936_v27  ;;  %v945_v4 = vadd.f32 %v944_v24, %v943_v30  ;;  %v950_v39 = vadd.f32 %v906_v60, %v898_v43 }
 0x1b7   : > { %v912_v40 = vadd.f32 %v911_v26, %v910_v22  ;;  %v919_v57 = vadd.f32 %v918_v51, %v917_v36  ;;  %v926_v59 = vadd.f32 %v925_v52, %v924_v37  ;;  %v933_v62 = vadd.f32 %v932_v55, %v931_v38 }
 0x1b8   : > { %v889_v63 = vadd.f32 %v887_v7, %v774_v49  ;;  %v939_v1 = vrot.slane %v938_v3, 2  ;;  %v946_v2 = vrot.slane %v945_v4, 2  ;;  %v951_v5 = vrot.slane %v950_v39, 4 }
 0x1b9   : > { %v913_v6 = vrot.slane %v912_v40, 1  ;;  %v920_v10 = vrot.slane %v919_v57, 1  ;;  %v927_v11 = vrot.slane %v926_v59, 1  ;;  %v934_v13 = vrot.slane %v933_v62, 1 }
 0x1ba   : > { %890 = vst [vmem:[#allocation2] sm:$0xff] %v889_v63  ;;  %v940_v14 = vadd.f32 %v939_v1, %v938_v3  ;;  %v947_v15 = vadd.f32 %v946_v2, %v945_v4  ;;  %v952_v16 = vadd.f32 %v951_v5, %v950_v39  ;;  %v957_v18 = vadd.f32 %v907_v61, %v899_v46 }
 0x1bb   : > { %v914_v27 = vadd.f32 %v913_v6, %v912_v40  ;;  %v921_v30 = vadd.f32 %v920_v10, %v919_v57  ;;  %v928_v43 = vadd.f32 %v927_v11, %v926_v59  ;;  %v935_v60 = vadd.f32 %v934_v13, %v933_v62  ;;  %v891_v6 = vld [vmem:[#allocation3] sm:$0xff] }
 0x1bc   : > { %v941_v22 = vrot.slane %v940_v14, 1  ;;  %v948_v36 = vrot.slane %v947_v15, 1  ;;  %v953_v37 = vrot.slane %v952_v16, 2  ;;  %v958_v7 = vrot.slane %v957_v18, 4 }
 0x1bd   : > { %v972_v42 = vcombine.low %v914_v27, %v921_v30  ;;  %v973_v24 = vcombine.low %v928_v43, %v935_v60 }
 0x1be   : > { %v954_v38 = vadd.f32 %v953_v37, %v952_v16  ;;  %v959_v19 = vadd.f32 %v958_v7, %v957_v18  ;;  %v942_v49 = vadd.f32 %v941_v22, %v940_v14  ;;  %v949_v26 = vadd.f32 %v948_v36, %v947_v15 }
 0x1bf   : > { %v982_v3 = vrot.slane %v972_v42, %v6590_v58  ;;  %v989_v39 = vrot.slane %v973_v24, %v6590_v58 }
 0x1c0   : > { %v955_v51 = vrot.slane %v954_v38, 1  ;;  %v960_v52 = vrot.slane %v959_v19, 2  ;;  %v974_v4 = vcombine.low %v942_v49, %v949_v26 }
 0x1c1   : > { %v1004_v62 = vcombine.low %v982_v3, %v989_v39 }
 0x1c2   : > { %v961_v55 = vadd.f32 %v960_v52, %v959_v19  ;;  %v956_v46 = vadd.f32 %v955_v51, %v954_v38  ;;  %v996_v59 = vrot.slane %v974_v4, %v6590_v58 }
 0x1c3   : > { %v1012_v2 = vrot.slane %v1004_v62, %v6590_v58 }
 0x1c4   : > { %v962_v61 = vrot.slane %v961_v55, 1 }
 0x1c6   : > { %v963_v40 = vadd.f32 %v962_v61, %v961_v55 }
 0x1c8   : > { %v975_v57 = vcombine.low %v956_v46, %v963_v40 }
 0x1ca   : > { %v1003_v63 = vrot.slane %v975_v57, %v6590_v58 }
 0x1cc   : > { %v1005_v1 = vcombine.low %v996_v59, %v1003_v63 }
 0x1ce   : > { %v1019_v5 = vrot.slane %v1005_v1, %v6590_v58 }
 0x1d0   : > { %v1020_v10 = vcombine.low %v1012_v2, %v1019_v5 }
 0x1d2   : > { %v1022_v11 = vadd.f32 %v1020_v10, %v891_v6 }
 0x1d4   : > { %1023 = vst [vmem:[#allocation3] sm:$0xff] %v1022_v11 }
 0x1d5 PF: > { %p1024_p6 = scmp.eq.s32.totalorder %s6253_s18, 1 }
 0x1d7   : > { %1028 = sbr.rel (!%p1024_p6) target bundleno = 1186 (0x4a2), region = 68 }
 0x1de   : > { %v1046_v13 = vadd.s32 128, %v6478_v8  ;;  %v1047_v14 = vadd.s32 136, %v6478_v8  ;;  %v8981_v15 = vlaneseq  ;;  %v1078_v18 = vadd.s32 384, %v6478_v8 }
 0x1df   : > { %v1079_v27 = vadd.s32 392, %v6478_v8  ;;  %v1031_v58 = vadd.s32 8, %v6478_v8  ;;  %v1162_v30 = vand.u32 7, %v6478_v8  ;;  %v1062_v22 = vadd.s32 256, %v6478_v8 }
 0x1e0   : > { %v6614_v16 = vand.u32 127, %v8981_v15  ;;  %v1274_v43 = vand.u32 7, %v1046_v13  ;;  %v1281_v60 = vand.u32 7, %v1047_v14  ;;  %v1063_v36 = vadd.s32 264, %v6478_v8 }
 0x1e1   : > { %v1498_v37 = vand.u32 7, %v1078_v18  ;;  %v1505_v7 = vand.u32 7, %v1079_v27  ;;  %v1169_v38 = vand.u32 7, %v1031_v58  ;;  %v1386_v49 = vand.u32 7, %v1062_v22 }
 0x1e2   : > { %vm6623_vm0 = vcmp.eq.s32.totalorder %v1162_v30, %v6614_v16  ;;  %vm6628_vm1 = vcmp.eq.s32.totalorder %v1274_v43, %v6614_v16  ;;  %vm6633_vm2 = vcmp.eq.s32.totalorder %v1281_v60, %v6614_v16  ;;  %v1393_v26 = vand.u32 7, %v1063_v36 }
 0x1e3   : > { %vm8672_vm3 = vmpackc.low %vm6633_vm2, %vm6628_vm1  ;;  %vm6642_vm4 = vcmp.eq.s32.totalorder %v1498_v37, %v6614_v16  ;;  %vm6647_vm5 = vcmp.eq.s32.totalorder %v1505_v7, %v6614_v16  ;;  %vm6652_vm6 = vcmp.eq.s32.totalorder %v1169_v38, %v6614_v16  ;;  %v1048_v3 = vadd.s32 144, %v6478_v8 }
 0x1e4   : > { %v8694_v46 = vmov 1.0|1.0   ;;  %vm8671_vm7 = vmpackc.low %vm6647_vm5, %vm6642_vm4  ;;  %vm6668_vm8 = vcmp.eq.s32.totalorder %v1386_v49, %v6614_v16  ;;  %v8994_v61 = vmov 0  ;;  %vm6673_vm9 = vcmp.eq.s32.totalorder %v1393_v26, %v6614_v16 }
 0x1e5   : > { %5724 = vmatprep.subr.msk.bf16.mxu0 %vm8672_vm3, %v8694_v46  ;;  %v8995_v61 = vsel %vm6668_vm8, 4294967295, %v8994_v61  ;;  %v8996_v4 = vmov 0  ;;  %v1049_v39 = vadd.s32 152, %v6478_v8  ;;  %v1080_v40 = vadd.s32 400, %v6478_v8  ;;  %5756 = vmatprep.subr.msk.bf16.mxu1 %vm8671_vm7, %v8694_v46  ;;  %vm8670_vm10 = vmpackc.low %vm6652_vm6, %vm6623_vm0 }
 0x1e6   : > { %v8997_v4 = vsel %vm6673_vm9, 4294967295, %v8996_v4  ;;  %v1288_v57 = vand.u32 7, %v1048_v3  ;;  %v1081_v59 = vadd.s32 408, %v6478_v8  ;;  %v1032_v62 = vadd.s32 16, %v6478_v8  ;;  %5726 = vmatpush3.bf16.msk.msra.mxu0 %vm8670_vm10, %v8694_v46  ;;  %vm8669_vm11 = vmpackc.low %vm6673_vm9, %vm6668_vm8 }
 0x1e7   : > { %v1033_v63 = vadd.s32 24, %v6478_v8  ;;  %v1295_v1 = vand.u32 7, %v1049_v39  ;;  %v1512_v2 = vand.u32 7, %v1080_v40  ;;  %v1064_v5 = vadd.s32 272, %v6478_v8  ;;  %5758 = vmatpush3.bf16.msk.msra.mxu1 %vm8669_vm11, %v8694_v46 }
 0x1e8   : > { %v1065_v6 = vadd.s32 280, %v6478_v8  ;;  %vm6711_vm12 = vcmp.eq.s32.totalorder %v1288_v57, %v6614_v16  ;;  %v8998_v10 = vmov 0  ;;  %v1519_v11 = vand.u32 7, %v1081_v59 }
 0x1e9   : > { %v8999_v10 = vsel %vm6711_vm12, 4294967295, %v8998_v10  ;;  %v1176_v13 = vand.u32 7, %v1032_v62  ;;  %v1183_v14 = vand.u32 7, %v1033_v63  ;;  %vm6716_vm13 = vcmp.eq.s32.totalorder %v1295_v1, %v6614_v16 }
 0x1ea   : > { %v9000_v15 = vmov 0  ;;  %vm6721_vm14 = vcmp.eq.s32.totalorder %v1512_v2, %v6614_v16  ;;  %v9002_v18 = vmov 0  ;;  %v1400_v27 = vand.u32 7, %v1064_v5  ;;  %vm8675_vm15 = vmpackc.low %vm6716_vm13, %vm6711_vm12 }
 0x1eb   : > { %v9001_v15 = vsel %vm6716_vm13, 4294967295, %v9000_v15  ;;  %v9003_v18 = vsel %vm6721_vm14, 4294967295, %v9002_v18  ;;  %v1407_v58 = vand.u32 7, %v1065_v6  ;;  %vm6730_vm11 = vcmp.eq.s32.totalorder %v1519_v11, %v6614_v16  ;;  %5728 = vmatprep.subr.msk.bf16.mxu0 %vm8675_vm15, %v8694_v46 }
 0x1ec   : > { %v9004_v30 = vmov 0  ;;  %vm6735_vm10 = vcmp.eq.s32.totalorder %v1176_v13, %v6614_v16  ;;  %v9006_v43 = vmov 0  ;;  %vm6740_vm7 = vcmp.eq.s32.totalorder %v1183_v14, %v6614_v16  ;;  %vm8676_vm3 = vmpackc.low %vm6730_vm11, %vm6721_vm14 }
 0x1ed   : > { %v9005_v30 = vsel %vm6730_vm11, 4294967295, %v9004_v30  ;;  %v9007_v43 = vsel %vm6735_vm10, 4294967295, %v9006_v43  ;;  %v9008_v60 = vmov 0  ;;  %v1050_v22 = vadd.s32 160, %v6478_v8  ;;  %5760 = vmatprep.subr.msk.bf16.mxu1 %vm8676_vm3, %v8694_v46  ;;  %vm8677_vm15 = vmpackc.low %vm6740_vm7, %vm6735_vm10 }
 0x1ee   : > { %v9009_v60 = vsel %vm6740_vm7, 4294967295, %v9008_v60  ;;  %vm6756_vm8 = vcmp.eq.s32.totalorder %v1400_v27, %v6614_v16  ;;  %v9010_v36 = vmov 0  ;;  %vm6761_vm9 = vcmp.eq.s32.totalorder %v1407_v58, %v6614_v16  ;;  %5730 = vmatpush3.bf16.msk.msra.mxu0 %vm8677_vm15, %v8694_v46 }
 0x1ef   : > { %v9011_v36 = vsel %vm6756_vm8, 4294967295, %v9010_v36  ;;  %v9012_v37 = vmov 0  ;;  %v1051_v7 = vadd.s32 168, %v6478_v8  ;;  %v1082_v38 = vadd.s32 416, %v6478_v8  ;;  %vm8680_vm3 = vmpackc.low %vm6761_vm9, %vm6756_vm8 }
 0x1f0   : > { %v9013_v37 = vsel %vm6761_vm9, 4294967295, %v9012_v37  ;;  %v1302_v49 = vand.u32 7, %v1050_v22  ;;  %v1083_v26 = vadd.s32 424, %v6478_v8  ;;  %v1034_v3 = vadd.s32 32, %v6478_v8  ;;  %5762 = vmatpush3.bf16.msk.msra.mxu1 %vm8680_vm3, %v8694_v46 }
 0x1f1   : > { %v1035_v39 = vadd.s32 40, %v6478_v8  ;;  %v1309_v40 = vand.u32 7, %v1051_v7  ;;  %v1526_v57 = vand.u32 7, %v1082_v38  ;;  %v1066_v59 = vadd.s32 288, %v6478_v8 }
 0x1f2   : > { %v1067_v62 = vadd.s32 296, %v6478_v8  ;;  %vm6799_vm15 = vcmp.eq.s32.totalorder %v1302_v49, %v6614_v16  ;;  %v9014_v63 = vmov 0  ;;  %v1533_v1 = vand.u32 7, %v1083_v26 }
 0x1f3   : > { %v9015_v63 = vsel %vm6799_vm15, 4294967295, %v9014_v63  ;;  %v1190_v2 = vand.u32 7, %v1034_v3  ;;  %v1197_v5 = vand.u32 7, %v1035_v39  ;;  %vm6804_vm10 = vcmp.eq.s32.totalorder %v1309_v40, %v6614_v16 }
 0x1f4   : > { %v9016_v6 = vmov 0  ;;  %vm6809_vm7 = vcmp.eq.s32.totalorder %v1526_v57, %v6614_v16  ;;  %v9018_v11 = vmov 0  ;;  %v1414_v13 = vand.u32 7, %v1066_v59  ;;  %vm8687_vm3 = vmpackc.low %vm6804_vm10, %vm6799_vm15 }
 0x1f5   : > { %v9017_v6 = vsel %vm6804_vm10, 4294967295, %v9016_v6  ;;  %v9019_v11 = vsel %vm6809_vm7, 4294967295, %v9018_v11  ;;  %v1421_v14 = vand.u32 7, %v1067_v62  ;;  %vm6818_vm8 = vcmp.eq.s32.totalorder %v1533_v1, %v6614_v16  ;;  %5732 = vmatprep.subr.msk.bf16.mxu0 %vm8687_vm3, %v8694_v46 }
 0x1f6   : > { %v9020_v27 = vmov 0  ;;  %vm6823_vm9 = vcmp.eq.s32.totalorder %v1190_v2, %v6614_v16  ;;  %v9022_v58 = vmov 0  ;;  %vm6828_vm14 = vcmp.eq.s32.totalorder %v1197_v5, %v6614_v16  ;;  %vm8688_vm11 = vmpackc.low %vm6818_vm8, %vm6809_vm7 }
 0x1f7   : > { %v9021_v27 = vsel %vm6818_vm8, 4294967295, %v9020_v27  ;;  %v9023_v58 = vsel %vm6823_vm9, 4294967295, %v9022_v58  ;;  %v9024_v22 = vmov 0  ;;  %v1052_v7 = vadd.s32 176, %v6478_v8  ;;  %5764 = vmatprep.subr.msk.bf16.mxu1 %vm8688_vm11, %v8694_v46  ;;  %vm8689_vm3 = vmpackc.low %vm6828_vm14, %vm6823_vm9 }
 0x1f8   : > { %v9025_v22 = vsel %vm6828_vm14, 4294967295, %v9024_v22  ;;  %vm6844_vm12 = vcmp.eq.s32.totalorder %v1414_v13, %v6614_v16  ;;  %v9026_v38 = vmov 0  ;;  %vm6849_vm13 = vcmp.eq.s32.totalorder %v1421_v14, %v6614_v16  ;;  %5734 = vmatpush3.bf16.msk.msra.mxu0 %vm8689_vm3, %v8694_v46 }
 0x1f9   : > { %v9027_v38 = vsel %vm6844_vm12, 4294967295, %v9026_v38  ;;  %v9028_v49 = vmov 0  ;;  %v1053_v26 = vadd.s32 184, %v6478_v8  ;;  %v1084_v3 = vadd.s32 432, %v6478_v8  ;;  %vm8696_vm11 = vmpackc.low %vm6849_vm13, %vm6844_vm12 }
 0x1fa   : > { %v9029_v49 = vsel %vm6849_vm13, 4294967295, %v9028_v49  ;;  %v1316_v39 = vand.u32 7, %v1052_v7  ;;  %v1085_v40 = vadd.s32 440, %v6478_v8  ;;  %v1036_v57 = vadd.s32 48, %v6478_v8  ;;  %5766 = vmatpush3.bf16.msk.msra.mxu1 %vm8696_vm11, %v8694_v46 }
 0x1fb   : > { %v1037_v59 = vadd.s32 56, %v6478_v8  ;;  %v1323_v62 = vand.u32 7, %v1053_v26  ;;  %v1540_v1 = vand.u32 7, %v1084_v3  ;;  %v1068_v2 = vadd.s32 304, %v6478_v8 }
 0x1fc   : > { %v1069_v5 = vadd.s32 312, %v6478_v8  ;;  %vm6887_vm3 = vcmp.eq.s32.totalorder %v1316_v39, %v6614_v16  ;;  %v9030_v13 = vmov 0  ;;  %v1547_v14 = vand.u32 7, %v1085_v40 }
 0x1fd   : > { %v9031_v13 = vsel %vm6887_vm3, 4294967295, %v9030_v13  ;;  %v1204_v7 = vand.u32 7, %v1036_v57  ;;  %v1211_v26 = vand.u32 7, %v1037_v59  ;;  %vm6892_vm9 = vcmp.eq.s32.totalorder %v1323_v62, %v6614_v16 }
 0x1fe   : > { %v9032_v3 = vmov 0  ;;  %vm6897_vm14 = vcmp.eq.s32.totalorder %v1540_v1, %v6614_v16  ;;  %v9034_v56 = vmov 0  ;;  %v1428_v53 = vand.u32 7, %v1068_v2  ;;  %vm8703_vm11 = vmpackc.low %vm6892_vm9, %vm6887_vm3 }
 0x1ff   : > { %v9033_v3 = vsel %vm6892_vm9, 4294967295, %v9032_v3  ;;  %v9035_v56 = vsel %vm6897_vm14, 4294967295, %v9034_v56  ;;  %v1435_v46 = vand.u32 7, %v1069_v5  ;;  %vm6906_vm12 = vcmp.eq.s32.totalorder %v1547_v14, %v6614_v16 }
 0x200   : > { %v9036_v39 = vmov 0  ;;  %vm6911_vm13 = vcmp.eq.s32.totalorder %v1204_v7, %v6614_v16  ;;  %v9038_v40 = vmov 0  ;;  %vm6916_vm7 = vcmp.eq.s32.totalorder %v1211_v26, %v6614_v16  ;;  %vm8704_vm8 = vmpackc.low %vm6906_vm12, %vm6897_vm14 }
 0x201   : > { %v9037_v39 = vsel %vm6906_vm12, 4294967295, %v9036_v39  ;;  %v9039_v40 = vsel %vm6911_vm13, 4294967295, %v9038_v40  ;;  %v9040_v57 = vmov 0  ;;  %v1054_v59 = vadd.s32 192, %v6478_v8 }
 0x202   : > { %v9041_v57 = vsel %vm6916_vm7, 4294967295, %v9040_v57  ;;  %v9042_v62 = vmov 1.0|1.0   ;;  %vm6932_vm15 = vcmp.eq.s32.totalorder %v1428_v53, %v6614_v16  ;;  %v9043_v1 = vmov 0 }
 0x203   : > { %5736 = vmatprep.subr.msk.bf16.mxu0 %vm8703_vm11, %v9042_v62  ;;  %v9044_v1 = vsel %vm6932_vm15, 4294967295, %v9043_v1  ;;  %vm6937_vm10 = vcmp.eq.s32.totalorder %v1435_v46, %v6614_v16  ;;  %v9045_v2 = vmov 0  ;;  %v1055_v5 = vadd.s32 200, %v6478_v8  ;;  %5768 = vmatprep.subr.msk.bf16.mxu1 %vm8704_vm8, %v9042_v62  ;;  %vm8708_vm11 = vmpackc.low %vm6916_vm7, %vm6911_vm13 }
 0x204   : > { %v9046_v2 = vsel %vm6937_vm10, 4294967295, %v9045_v2  ;;  %v1086_v14 = vadd.s32 448, %v6478_v8  ;;  %v1330_v53 = vand.u32 7, %v1054_v59  ;;  %v1087_v46 = vadd.s32 456, %v6478_v8  ;;  %5738 = vmatpush3.bf16.msk.msra.mxu0 %vm8708_vm11, %v9042_v62  ;;  %vm8717_vm8 = vmpackc.low %vm6937_vm10, %vm6932_vm15 }
 0x205   : > { %v1038_v7 = vadd.s32 64, %v6478_v8  ;;  %v1039_v26 = vadd.s32 72, %v6478_v8  ;;  %v1337_v54 = vand.u32 7, %v1055_v5  ;;  %v1070_v50 = vadd.s32 320, %v6478_v8  ;;  %5770 = vmatpush3.bf16.msk.msra.mxu1 %vm8717_vm8, %v9042_v62 }
 0x206   : > { %v1554_v59 = vand.u32 7, %v1086_v14  ;;  %v1071_v31 = vadd.s32 328, %v6478_v8  ;;  %vm6975_vm11 = vcmp.eq.s32.totalorder %v1330_v53, %v6614_v16  ;;  %v9047_v28 = vmov 0 }
 0x207   : > { %v9048_v28 = vsel %vm6975_vm11, 4294967295, %v9047_v28  ;;  %v1561_v29 = vand.u32 7, %v1087_v46  ;;  %v1218_v47 = vand.u32 7, %v1038_v7  ;;  %v1225_v5 = vand.u32 7, %v1039_v26 }
 0x208   : > { %vm6980_vm13 = vcmp.eq.s32.totalorder %v1337_v54, %v6614_v16  ;;  %v9049_v14 = vmov 0  ;;  %vm6985_vm7 = vcmp.eq.s32.totalorder %v1554_v59, %v6614_v16  ;;  %v9051_v25 = vmov 0 }
 0x209   : > { %v9050_v14 = vsel %vm6980_vm13, 4294967295, %v9049_v14  ;;  %v9052_v25 = vsel %vm6985_vm7, 4294967295, %v9051_v25  ;;  %v1442_v44 = vand.u32 7, %v1070_v50  ;;  %v1449_v45 = vand.u32 7, %v1071_v31  ;;  %vm8724_vm8 = vmpackc.low %vm6980_vm13, %vm6975_vm11 }
 0x20a   : > { %9053 = vst [vmem:[#allocation37_spill] sm:$0xff] %v9052_v25  ;;  %vm6994_vm15 = vcmp.eq.s32.totalorder %v1561_v29, %v6614_v16  ;;  %v9054_v53 = vmov 0  ;;  %vm6999_vm10 = vcmp.eq.s32.totalorder %v1218_v47, %v6614_v16  ;;  %v9057_v54 = vmov 0  ;;  %5740 = vmatprep.subr.msk.bf16.mxu0 %vm8724_vm8, %v9042_v62 }
 0x20b   : > { %v9055_v53 = vsel %vm6994_vm15, 4294967295, %v9054_v53  ;;  %v9058_v54 = vsel %vm6999_vm10, 4294967295, %v9057_v54  ;;  %vm7004_vm14 = vcmp.eq.s32.totalorder %v1225_v5, %v6614_v16  ;;  %v9060_v46 = vmov 0  ;;  %vm8725_vm12 = vmpackc.low %vm6994_vm15, %vm6985_vm7 }
 0x20c   : > { %9056 = vst [vmem:[#allocation38_spill] sm:$0xff] %v9055_v53  ;;  %9059 = vst [vmem:[#allocation39_spill] sm:$0xff] %v9058_v54  ;;  %v9061_v46 = vsel %vm7004_vm14, 4294967295, %v9060_v46  ;;  %v1056_v31 = vadd.s32 208, %v6478_v8  ;;  %vm7020_vm3 = vcmp.eq.s32.totalorder %v1442_v44, %v6614_v16  ;;  %v9063_v29 = vmov 0  ;;  %5772 = vmatprep.subr.msk.bf16.mxu1 %vm8725_vm12, %v9042_v62 }
 0x20d   : > { %9062 = vst [vmem:[#allocation40_spill] sm:$0xff] %v9061_v46  ;;  %v9064_v29 = vsel %vm7020_vm3, 4294967295, %v9063_v29  ;;  %vm7025_vm9 = vcmp.eq.s32.totalorder %v1449_v45, %v6614_v16  ;;  %v9066_v47 = vmov 0  ;;  %v1057_v50 = vadd.s32 216, %v6478_v8  ;;  %vm8728_vm8 = vmpackc.low %vm7004_vm14, %vm6999_vm10 }
 0x20e   : > { %9065 = vst [vmem:[#allocation41_spill] sm:$0xff] %v9064_v29  ;;  %v9067_v47 = vsel %vm7025_vm9, 4294967295, %v9066_v47  ;;  %v1088_v7 = vadd.s32 464, %v6478_v8  ;;  %v1344_v44 = vand.u32 7, %v1056_v31  ;;  %v1089_v45 = vadd.s32 472, %v6478_v8  ;;  %5742 = vmatpush3.bf16.msk.msra.mxu0 %vm8728_vm8, %v9042_v62  ;;  %vm8737_vm12 = vmpackc.low %vm7025_vm9, %vm7020_vm3 }
 0x20f   : > { %9068 = vst [vmem:[#allocation42_spill] sm:$0xff] %v9067_v47  ;;  %v1040_v26 = vadd.s32 80, %v6478_v8  ;;  %v1041_v59 = vadd.s32 88, %v6478_v8  ;;  %v1351_v5 = vand.u32 7, %v1057_v50  ;;  %v1072_v41 = vadd.s32 336, %v6478_v8  ;;  %5774 = vmatpush3.bf16.msk.msra.mxu1 %vm8737_vm12, %v9042_v62 }
 0x210   : > { %v1568_v31 = vand.u32 7, %v1088_v7  ;;  %v1073_v23 = vadd.s32 344, %v6478_v8  ;;  %vm7063_vm8 = vcmp.eq.s32.totalorder %v1344_v44, %v6614_v16  ;;  %v9069_v20 = vmov 0 }
 0x211   : > { %v9070_v20 = vsel %vm7063_vm8, 4294967295, %v9069_v20  ;;  %v1575_v21 = vand.u32 7, %v1089_v45  ;;  %v1232_v17 = vand.u32 7, %v1040_v26  ;;  %v1239_v50 = vand.u32 7, %v1041_v59  ;;  %v9368_v19 = vld [vmem:[#allocation37_spill] sm:$0xff] }
 0x212   : > { %9071 = vst [vmem:[#allocation43_spill] sm:$0xff] %v9070_v20  ;;  %vm7068_vm10 = vcmp.eq.s32.totalorder %v1351_v5, %v6614_v16  ;;  %v9072_v7 = vmov 0  ;;  %vm7073_vm14 = vcmp.eq.s32.totalorder %v1568_v31, %v6614_v16  ;;  %v9075_v47 = vmov 0 }
 0x213   : > { %v9073_v7 = vsel %vm7068_vm10, 4294967295, %v9072_v7  ;;  %v9076_v47 = vsel %vm7073_vm14, 4294967295, %v9075_v47  ;;  %v1456_v29 = vand.u32 7, %v1072_v41  ;;  %v1463_v54 = vand.u32 7, %v1073_v23  ;;  %vm8744_vm12 = vmpackc.low %vm7068_vm10, %vm7063_vm8  ;;  %v9373_v24 = vld [vmem:[#allocation39_spill] sm:$0xff] }
 0x214   : > { %9074 = vst [vmem:[#allocation44_spill] sm:$0xff] %v9073_v7  ;;  %9077 = vst [vmem:[#allocation45_spill] sm:$0xff] %v9076_v47  ;;  %vm7082_vm3 = vcmp.eq.s32.totalorder %v1575_v21, %v6614_v16  ;;  %v9078_v44 = vmov 0  ;;  %vm7087_vm9 = vcmp.eq.s32.totalorder %v1232_v17, %v6614_v16  ;;  %v9081_v45 = vmov 0  ;;  %5744 = vmatprep.subr.msk.bf16.mxu0 %vm8744_vm12, %v9042_v62  ;;  %v9371_v42 = vld [vmem:[#allocation40_spill] sm:$0xff] }
 0x215   : > { %v9079_v44 = vsel %vm7082_vm3, 4294967295, %v9078_v44  ;;  %v9082_v45 = vsel %vm7087_vm9, 4294967295, %v9081_v45  ;;  %vm7092_vm7 = vcmp.eq.s32.totalorder %v1239_v50, %v6614_v16  ;;  %v9084_v26 = vmov 0  ;;  %vm8745_vm15 = vmpackc.low %vm7082_vm3, %vm7073_vm14 }
 0x216   : > { %9080 = vst [vmem:[#allocation46_spill] sm:$0xff] %v9079_v44  ;;  %9083 = vst [vmem:[#allocation47_spill] sm:$0xff] %v9082_v45  ;;  %v9085_v26 = vsel %vm7092_vm7, 4294967295, %v9084_v26  ;;  %v1058_v23 = vadd.s32 224, %v6478_v8  ;;  %vm7108_vm11 = vcmp.eq.s32.totalorder %v1456_v29, %v6614_v16  ;;  %v9087_v17 = vmov 0  ;;  %5776 = vmatprep.subr.msk.bf16.mxu1 %vm8745_vm15, %v9042_v62  ;;  %v9376_v51 = vld [vmem:[#allocation42_spill] sm:$0xff] }
 0x217   : > { %9086 = vst [vmem:[#allocation48_spill] sm:$0xff] %v9085_v26  ;;  %v9088_v17 = vsel %vm7108_vm11, 4294967295, %v9087_v17  ;;  %vm7113_vm13 = vcmp.eq.s32.totalorder %v1463_v54, %v6614_v16  ;;  %v9090_v21 = vmov 0  ;;  %v1059_v41 = vadd.s32 232, %v6478_v8  ;;  %vm8748_vm12 = vmpackc.low %vm7092_vm7, %vm7087_vm9 }
 0x218   : > { %9089 = vst [vmem:[#allocation49_spill] sm:$0xff] %v9088_v17  ;;  %v9091_v21 = vsel %vm7113_vm13, 4294967295, %v9090_v21  ;;  %v1090_v59 = vadd.s32 480, %v6478_v8  ;;  %v1358_v54 = vand.u32 7, %v1058_v23  ;;  %v1091_v29 = vadd.s32 488, %v6478_v8  ;;  %5746 = vmatpush3.bf16.msk.msra.mxu0 %vm8748_vm12, %v9042_v62  ;;  %vm8757_vm15 = vmpackc.low %vm7113_vm13, %vm7108_vm11 }
 0x219   : > { %9092 = vst [vmem:[#allocation50_spill] sm:$0xff] %v9091_v21  ;;  %v1042_v5 = vadd.s32 96, %v6478_v8  ;;  %v1043_v31 = vadd.s32 104, %v6478_v8  ;;  %v1365_v50 = vand.u32 7, %v1059_v41  ;;  %v1074_v47 = vadd.s32 352, %v6478_v8  ;;  %5778 = vmatpush3.bf16.msk.msra.mxu1 %vm8757_vm15, %v9042_v62  ;;  %v9383_v55 = vld [vmem:[#allocation43_spill] sm:$0xff] }
 0x21a   : > { %v1582_v23 = vand.u32 7, %v1090_v59  ;;  %v1075_v44 = vadd.s32 360, %v6478_v8  ;;  %vm7151_vm12 = vcmp.eq.s32.totalorder %v1358_v54, %v6614_v16  ;;  %v9093_v45 = vmov 0 }
 0x21b   : > { %v9094_v45 = vsel %vm7151_vm12, 4294967295, %v9093_v45  ;;  %v1589_v26 = vand.u32 7, %v1091_v29  ;;  %v1246_v20 = vand.u32 7, %v1042_v5  ;;  %v1253_v41 = vand.u32 7, %v1043_v31  ;;  %v9381_v52 = vld [vmem:[#allocation44_spill] sm:$0xff] }
 0x21c   : > { %9095 = vst [vmem:[#allocation51_spill] sm:$0xff] %v9094_v45  ;;  %vm7156_vm9 = vcmp.eq.s32.totalorder %v1365_v50, %v6614_v16  ;;  %v9096_v59 = vmov 0  ;;  %vm7161_vm7 = vcmp.eq.s32.totalorder %v1582_v23, %v6614_v16  ;;  %v9099_v21 = vmov 0  ;;  %v7232_v45 = vld [vmem:[#allocation2] sm:$0xff] }
 0x21d   : > { %v9097_v59 = vsel %vm7156_vm9, 4294967295, %v9096_v59  ;;  %v9100_v21 = vsel %vm7161_vm7, 4294967295, %v9099_v21  ;;  %v1470_v17 = vand.u32 7, %v1074_v47  ;;  %v1477_v7 = vand.u32 7, %v1075_v44  ;;  %vm8764_vm15 = vmpackc.low %vm7156_vm9, %vm7151_vm12 }
 0x21e   : > { %9098 = vst [vmem:[#allocation52_spill] sm:$0xff] %v9097_v59  ;;  %9101 = vst [vmem:[#allocation53_spill] sm:$0xff] %v9100_v21  ;;  %vm7170_vm11 = vcmp.eq.s32.totalorder %v1589_v26, %v6614_v16  ;;  %v9102_v54 = vmov 0  ;;  %vm7175_vm13 = vcmp.eq.s32.totalorder %v1246_v20, %v6614_v16  ;;  %v9105_v29 = vmov 0  ;;  %5748 = vmatprep.subr.msk.bf16.mxu0 %vm8764_vm15, %v9042_v62 }
 0x21f   : > { %v9103_v54 = vsel %vm7170_vm11, 4294967295, %v9102_v54  ;;  %v9106_v29 = vsel %vm7175_vm13, 4294967295, %v9105_v29  ;;  %vm7180_vm14 = vcmp.eq.s32.totalorder %v1253_v41, %v6614_v16  ;;  %v9108_v5 = vmov 0  ;;  %vm8765_vm3 = vmpackc.low %vm7170_vm11, %vm7161_vm7 }
 0x220   : > { %9104 = vst [vmem:[#allocation54_spill] sm:$0xff] %v9103_v54  ;;  %9107 = vst [vmem:[#allocation55_spill] sm:$0xff] %v9106_v29  ;;  %v9109_v5 = vsel %vm7180_vm14, 4294967295, %v9108_v5  ;;  %v1060_v47 = vadd.s32 240, %v6478_v8  ;;  %vm7196_vm8 = vcmp.eq.s32.totalorder %v1470_v17, %v6614_v16  ;;  %v9111_v20 = vmov 0  ;;  %5780 = vmatprep.subr.msk.bf16.mxu1 %vm8765_vm3, %v9042_v62 }
 0x221   : > { %9110 = vst [vmem:[#allocation56_spill] sm:$0xff] %v9109_v5  ;;  %v9112_v20 = vsel %vm7196_vm8, 4294967295, %v9111_v20  ;;  %vm7201_vm10 = vcmp.eq.s32.totalorder %v1477_v7, %v6614_v16  ;;  %v9114_v44 = vmov 0  ;;  %v1061_v26 = vadd.s32 248, %v6478_v8  ;;  %vm8769_vm15 = vmpackc.low %vm7180_vm14, %vm7175_vm13 }
 0x222   : > { %9113 = vst [vmem:[#allocation57_spill] sm:$0xff] %v9112_v20  ;;  %v9115_v44 = vsel %vm7201_vm10, 4294967295, %v9114_v44  ;;  %v1092_v31 = vadd.s32 496, %v6478_v8  ;;  %v1372_v7 = vand.u32 7, %v1060_v47  ;;  %v1093_v17 = vadd.s32 504, %v6478_v8  ;;  %5750 = vmatpush3.bf16.msk.msra.mxu0 %vm8769_vm15, %v9042_v62  ;;  %vm8778_vm3 = vmpackc.low %vm7201_vm10, %vm7196_vm8 }
 0x223   : > { %9116 = vst [vmem:[#allocation58_spill] sm:$0xff] %v9115_v44  ;;  %v1044_v50 = vadd.s32 112, %v6478_v8  ;;  %v1045_v23 = vadd.s32 120, %v6478_v8  ;;  %v1379_v41 = vand.u32 7, %v1061_v26  ;;  %v1076_v21 = vadd.s32 368, %v6478_v8  ;;  %5782 = vmatpush3.bf16.msk.msra.mxu1 %vm8778_vm3, %v9042_v62 }
 0x224   : > { %v1596_v47 = vand.u32 7, %v1092_v31  ;;  %v1077_v54 = vadd.s32 376, %v6478_v8  ;;  %vm7241_vm15 = vcmp.eq.s32.totalorder %v1372_v7, %v6614_v16  ;;  %v9117_v29 = vmov 0 }
 0x225   : > { %v9118_v29 = vsel %vm7241_vm15, 4294967295, %v9117_v29  ;;  %v1603_v26 = vand.u32 7, %v1093_v17  ;;  %v1260_v31 = vand.u32 7, %v1044_v50  ;;  %v1267_v5 = vand.u32 7, %v1045_v23 }
 0x226   : > { %9119 = vst [vmem:[#allocation59_spill] sm:$0xff] %v9118_v29  ;;  %vm7246_vm13 = vcmp.eq.s32.totalorder %v1379_v41, %v6614_v16  ;;  %v9120_v59 = vmov 0  ;;  %vm7251_vm14 = vcmp.eq.s32.totalorder %v1596_v47, %v6614_v16  ;;  %v9123_v44 = vmov 0 }
 0x227   : > { %v9121_v59 = vsel %vm7246_vm13, 4294967295, %v9120_v59  ;;  %v9124_v44 = vsel %vm7251_vm14, 4294967295, %v9123_v44  ;;  %v1484_v20 = vand.u32 7, %v1076_v21  ;;  %v1491_v46 = vand.u32 7, %v1077_v54  ;;  %vm8785_vm3 = vmpackc.low %vm7246_vm13, %vm7241_vm15 }
 0x228   : > { %9122 = vst [vmem:[#allocation60_spill] sm:$0xff] %v9121_v59  ;;  %9125 = vst [vmem:[#allocation61_spill] sm:$0xff] %v9124_v44  ;;  %vm7260_vm8 = vcmp.eq.s32.totalorder %v1603_v26, %v6614_v16  ;;  %v9126_v7 = vmov 0  ;;  %vm7265_vm10 = vcmp.eq.s32.totalorder %v1260_v31, %v6614_v16  ;;  %v9129_v17 = vmov 0  ;;  %5752 = vmatprep.subr.msk.bf16.mxu0 %vm8785_vm3, %v9042_v62 }
 0x229   : > { %v9127_v7 = vsel %vm7260_vm8, 4294967295, %v9126_v7  ;;  %v9130_v17 = vsel %vm7265_vm10, 4294967295, %v9129_v17  ;;  %vm7270_vm7 = vcmp.eq.s32.totalorder %v1267_v5, %v6614_v16  ;;  %v9132_v50 = vmov 0  ;;  %vm8786_vm11 = vmpackc.low %vm7260_vm8, %vm7251_vm14 }
 0x22a   : > { %9128 = vst [vmem:[#allocation62_spill] sm:$0xff] %v9127_v7  ;;  %9131 = vst [vmem:[#allocation63_spill] sm:$0xff] %v9130_v17  ;;  %v9133_v50 = vsel %vm7270_vm7, 4294967295, %v9132_v50  ;;  %v3216_v21 = vrot.slane %v7232_v45, %v6487_v48  ;;  %vm7287_vm12 = vcmp.eq.s32.totalorder %v1484_v20, %v6614_v16  ;;  %v9135_v54 = vmov 0  ;;  %5784 = vmatprep.subr.msk.bf16.mxu1 %vm8786_vm11, %v9042_v62 }
 0x22b   : > { %9134 = vst [vmem:[#allocation64_spill] sm:$0xff] %v9133_v50  ;;  %v9136_v54 = vsel %vm7287_vm12, 4294967295, %v9135_v54  ;;  %vm7292_vm9 = vcmp.eq.s32.totalorder %v1491_v46, %v6614_v16  ;;  %v9138_v5 = vmov 0  ;;  %v3224_v23 = vrot.slane %v7232_v45, %v6490_v0  ;;  %vm8800_vm3 = vmpackc.low %vm7270_vm7, %vm7265_vm10 }
 0x22c   : > { %9137 = vst [vmem:[#allocation65_spill] sm:$0xff] %v9136_v54  ;;  %v9139_v5 = vsel %vm7292_vm9, 4294967295, %v9138_v5  ;;  %v3212_v41 = vrot.slane %v7232_v45, %v6481_v9  ;;  %3313 = vmatprep.mubr.f32.mxu0 %v3216_v21  ;;  %v3220_v46 = vrot.slane %v7232_v45, %v6484_v12  ;;  %v1110_v20 = vadd.s32 640, %v6478_v8  ;;  %5754 = vmatpush3.bf16.msk.msra.mxu0 %vm8800_vm3, %v9042_v62  ;;  %vm8804_vm11 = vmpackc.low %vm7292_vm9, %vm7287_vm12 }
 0x22d   : > { %v1111_v47 = vadd.s32 648, %v6478_v8  ;;  %v1142_v26 = vadd.s32 896, %v6478_v8  ;;  %3383 = vmatprep.mubr.f32.mxu1 %v3224_v23  ;;  %v1143_v31 = vadd.s32 904, %v6478_v8  ;;  %v1094_v21 = vadd.s32 512, %v6478_v8  ;;  %5786 = vmatpush3.bf16.msk.msra.mxu1 %vm8804_vm11, %v9042_v62 }
 0x22e   : > { %v1095_v12 = vadd.s32 520, %v6478_v8  ;;  %v1126_v9 = vadd.s32 768, %v6478_v8  ;;  %v1722_v17 = vand.u32 7, %v1110_v20  ;;  %v1127_v23 = vadd.s32 776, %v6478_v8 }
 0x22f   : > { %v1729_v50 = vand.u32 7, %v1111_v47  ;;  %v1946_v44 = vand.u32 7, %v1142_v26  ;;  %v1953_v7 = vand.u32 7, %v1143_v31  ;;  %v1610_v29 = vand.u32 7, %v1094_v21  ;;  %3314 = vmatmul.mubr.f32.vlgmr.msra.gmra.mrb[0].mxu0 %v3212_v41 }
 0x230   : > { %v1617_v59 = vand.u32 7, %v1095_v12  ;;  %v1834_v25 = vand.u32 7, %v1126_v9  ;;  %vm7337_vm3 = vcmp.eq.s32.totalorder %v1722_v17, %v6614_v16  ;;  %v9140_v53 = vmov 0  ;;  %3384 = vmatmul.mubr.f32.vlgmr.msra.gmra.mrb[0].mxu1 %v3220_v46 }
 0x231   : > { %v9141_v53 = vsel %vm7337_vm3, 4294967295, %v9140_v53  ;;  %vm7342_vm10 = vcmp.eq.s32.totalorder %v1729_v50, %v6614_v16  ;;  %v9143_v54 = vmov 0  ;;  %vm7347_vm11 = vcmp.eq.s32.totalorder %v1946_v44, %v6614_v16 }
 0x232   : > { %9142 = vst [vmem:[#allocation66_spill] sm:$0xff] %v9141_v53  ;;  %v9144_v54 = vsel %vm7342_vm10, 4294967295, %v9143_v54  ;;  %v9145_v20 = vmov 0  ;;  %v1841_v47 = vand.u32 7, %v1127_v23  ;;  %vm8812_vm12 = vmpackc.low %vm7342_vm10, %vm7337_vm3  ;;  %vm7356_vm9 = vcmp.eq.s32.totalorder %v1953_v7, %v6614_v16 }
 0x233   : > { %v9146_v20 = vsel %vm7347_vm11, 4294967295, %v9145_v20  ;;  %v9148_v9 = vmov 0  ;;  %vm7361_vm7 = vcmp.eq.s32.totalorder %v1610_v29, %v6614_v16  ;;  %v9151_v12 = vmov 0  ;;  %5788 = vmatprep.subr.msk.bf16.mxu0 %vm8812_vm12, %v9042_v62  ;;  %vm8813_vm15 = vmpackc.low %vm7356_vm9, %vm7347_vm11 }
 0x234   : > { %9147 = vst [vmem:[#allocation67_spill] sm:$0xff] %v9146_v20  ;;  %v9149_v9 = vsel %vm7356_vm9, 4294967295, %v9148_v9  ;;  %v9152_v12 = vsel %vm7361_vm7, 4294967295, %v9151_v12  ;;  %vm7366_vm14 = vcmp.eq.s32.totalorder %v1617_v59, %v6614_v16  ;;  %v9154_v44 = vmov 0  ;;  %5820 = vmatprep.subr.msk.bf16.mxu1 %vm8813_vm15, %v9042_v62 }
 0x235   : > { %9150 = vst [vmem:[#allocation68_spill] sm:$0xff] %v9149_v9  ;;  %9153 = vst [vmem:[#allocation69_spill] sm:$0xff] %v9152_v12  ;;  %v9155_v44 = vsel %vm7366_vm14, 4294967295, %v9154_v44  ;;  %vm7371_vm8 = vcmp.eq.s32.totalorder %v1834_v25, %v6614_v16  ;;  %v9157_v17 = vmov 0  ;;  %vm7386_vm13 = vcmp.eq.s32.totalorder %v1841_v47, %v6614_v16 }
 0x236   : > { %9156 = vst [vmem:[#allocation70_spill] sm:$0xff] %v9155_v44  ;;  %v9158_v17 = vsel %vm7371_vm8, 4294967295, %v9157_v17  ;;  %v9160_v59 = vmov 0  ;;  %v1112_v25 = vadd.s32 656, %v6478_v8  ;;  %v1113_v29 = vadd.s32 664, %v6478_v8  ;;  %vm8818_vm12 = vmpackc.low %vm7366_vm14, %vm7361_vm7 }
 0x237   : > { %9159 = vst [vmem:[#allocation71_spill] sm:$0xff] %v9158_v17  ;;  %v9161_v59 = vsel %vm7386_vm13, 4294967295, %v9160_v59  ;;  %v1144_v7 = vadd.s32 912, %v6478_v8  ;;  %v1145_v50 = vadd.s32 920, %v6478_v8  ;;  %v1096_v41 = vadd.s32 528, %v6478_v8  ;;  %5790 = vmatpush3.bf16.msk.msra.mxu0 %vm8818_vm12, %v9042_v62  ;;  %vm8822_vm15 = vmpackc.low %vm7386_vm13, %vm7371_vm8 }
 0x238   : > { %9162 = vst [vmem:[#allocation72_spill] sm:$0xff] %v9161_v59  ;;  %v1097_v46 = vadd.s32 536, %v6478_v8  ;;  %v1128_v26 = vadd.s32 784, %v6478_v8  ;;  %v1736_v31 = vand.u32 7, %v1112_v25  ;;  %v1743_v21 = vand.u32 7, %v1113_v29  ;;  %5822 = vmatpush3.bf16.msk.msra.mxu1 %vm8822_vm15, %v9042_v62 }
 0x239   : > { %v1960_v23 = vand.u32 7, %v1144_v7  ;;  %v1129_v47 = vadd.s32 792, %v6478_v8  ;;  %v1967_v12 = vand.u32 7, %v1145_v50  ;;  %v1624_v44 = vand.u32 7, %v1096_v41 }
 0x23a   : > { %v1631_v20 = vand.u32 7, %v1097_v46  ;;  %v1848_v9 = vand.u32 7, %v1128_v26  ;;  %vm7425_vm12 = vcmp.eq.s32.totalorder %v1736_v31, %v6614_v16  ;;  %v9163_v53 = vmov 0 }
 0x23b   : > { %v9164_v53 = vsel %vm7425_vm12, 4294967295, %v9163_v53  ;;  %vm7430_vm7 = vcmp.eq.s32.totalorder %v1743_v21, %v6614_v16  ;;  %v9166_v25 = vmov 0  ;;  %vm7435_vm14 = vcmp.eq.s32.totalorder %v1960_v23, %v6614_v16 }
 0x23c   : > { %9165 = vst [vmem:[#allocation73_spill] sm:$0xff] %v9164_v53  ;;  %v9167_v25 = vsel %vm7430_vm7, 4294967295, %v9166_v25  ;;  %v9169_v29 = vmov 0  ;;  %v1855_v7 = vand.u32 7, %v1129_v47  ;;  %vm8829_vm15 = vmpackc.low %vm7430_vm7, %vm7425_vm12  ;;  %vm7444_vm8 = vcmp.eq.s32.totalorder %v1967_v12, %v6614_v16 }
 0x23d   : > { %9168 = vst [vmem:[#allocation74_spill] sm:$0xff] %v9167_v25  ;;  %v9170_v29 = vsel %vm7435_vm14, 4294967295, %v9169_v29  ;;  %v9172_v50 = vmov 0  ;;  %vm7449_vm13 = vcmp.eq.s32.totalorder %v1624_v44, %v6614_v16  ;;  %v9175_v41 = vmov 0  ;;  %5792 = vmatprep.subr.msk.bf16.mxu0 %vm8829_vm15, %v9042_v62  ;;  %vm8830_vm3 = vmpackc.low %vm7444_vm8, %vm7435_vm14 }
 0x23e   : > { %9171 = vst [vmem:[#allocation75_spill] sm:$0xff] %v9170_v29  ;;  %v9173_v50 = vsel %vm7444_vm8, 4294967295, %v9172_v50  ;;  %v9176_v41 = vsel %vm7449_vm13, 4294967295, %v9175_v41  ;;  %vm7454_vm11 = vcmp.eq.s32.totalorder %v1631_v20, %v6614_v16  ;;  %v9178_v46 = vmov 0  ;;  %5824 = vmatprep.subr.msk.bf16.mxu1 %vm8830_vm3, %v9042_v62 }
 0x23f   : > { %9174 = vst [vmem:[#allocation76_spill] sm:$0xff] %v9173_v50  ;;  %9177 = vst [vmem:[#allocation77_spill] sm:$0xff] %v9176_v41  ;;  %v9179_v46 = vsel %vm7454_vm11, 4294967295, %v9178_v46  ;;  %vm7459_vm9 = vcmp.eq.s32.totalorder %v1848_v9, %v6614_v16  ;;  %v9181_v26 = vmov 0  ;;  %vm7474_vm10 = vcmp.eq.s32.totalorder %v1855_v7, %v6614_v16 }
 0x240   : > { %9180 = vst [vmem:[#allocation78_spill] sm:$0xff] %v9179_v46  ;;  %v9182_v26 = vsel %vm7459_vm9, 4294967295, %v9181_v26  ;;  %v9184_v20 = vmov 0  ;;  %v1114_v9 = vadd.s32 672, %v6478_v8  ;;  %v1115_v12 = vadd.s32 680, %v6478_v8  ;;  %vm8838_vm15 = vmpackc.low %vm7454_vm11, %vm7449_vm13 }
 0x241   : > { %9183 = vst [vmem:[#allocation79_spill] sm:$0xff] %v9182_v26  ;;  %v9185_v20 = vsel %vm7474_vm10, 4294967295, %v9184_v20  ;;  %v1146_v44 = vadd.s32 928, %v6478_v8  ;;  %v1147_v31 = vadd.s32 936, %v6478_v8  ;;  %v1098_v21 = vadd.s32 544, %v6478_v8  ;;  %5794 = vmatpush3.bf16.msk.msra.mxu0 %vm8838_vm15, %v9042_v62  ;;  %vm8842_vm3 = vmpackc.low %vm7474_vm10, %vm7459_vm9 }
 0x242   : > { %9186 = vst [vmem:[#allocation80_spill] sm:$0xff] %v9185_v20  ;;  %v1099_v23 = vadd.s32 552, %v6478_v8  ;;  %v1130_v47 = vadd.s32 800, %v6478_v8  ;;  %v1750_v7 = vand.u32 7, %v1114_v9  ;;  %v1757_v29 = vand.u32 7, %v1115_v12  ;;  %5826 = vmatpush3.bf16.msk.msra.mxu1 %vm8842_vm3, %v9042_v62 }
 0x243   : > { %v1974_v50 = vand.u32 7, %v1146_v44  ;;  %v1131_v53 = vadd.s32 808, %v6478_v8  ;;  %v1981_v41 = vand.u32 7, %v1147_v31  ;;  %v1638_v46 = vand.u32 7, %v1098_v21 }
 0x244   : > { %v1645_v25 = vand.u32 7, %v1099_v23  ;;  %v1862_v17 = vand.u32 7, %v1130_v47  ;;  %vm7513_vm15 = vcmp.eq.s32.totalorder %v1750_v7, %v6614_v16  ;;  %v9187_v59 = vmov 0 }
 0x245   : > { %v9188_v59 = vsel %vm7513_vm15, 4294967295, %v9187_v59  ;;  %vm7518_vm13 = vcmp.eq.s32.totalorder %v1757_v29, %v6614_v16  ;;  %v9190_v9 = vmov 0  ;;  %vm7523_vm11 = vcmp.eq.s32.totalorder %v1974_v50, %v6614_v16 }
 0x246   : > { %9189 = vst [vmem:[#allocation81_spill] sm:$0xff] %v9188_v59  ;;  %v9191_v9 = vsel %vm7518_vm13, 4294967295, %v9190_v9  ;;  %v9193_v12 = vmov 0  ;;  %v1869_v44 = vand.u32 7, %v1131_v53  ;;  %vm8849_vm3 = vmpackc.low %vm7518_vm13, %vm7513_vm15  ;;  %vm7532_vm9 = vcmp.eq.s32.totalorder %v1981_v41, %v6614_v16 }
 0x247   : > { %9192 = vst [vmem:[#allocation82_spill] sm:$0xff] %v9191_v9  ;;  %v9194_v12 = vsel %vm7523_vm11, 4294967295, %v9193_v12  ;;  %v9196_v31 = vmov 0  ;;  %vm7537_vm10 = vcmp.eq.s32.totalorder %v1638_v46, %v6614_v16  ;;  %v9199_v29 = vmov 0  ;;  %5796 = vmatprep.subr.msk.bf16.mxu0 %vm8849_vm3, %v9042_v62  ;;  %vm8850_vm12 = vmpackc.low %vm7532_vm9, %vm7523_vm11 }
 0x248   : > { %9195 = vst [vmem:[#allocation83_spill] sm:$0xff] %v9194_v12  ;;  %v9197_v31 = vsel %vm7532_vm9, 4294967295, %v9196_v31  ;;  %v9200_v29 = vsel %vm7537_vm10, 4294967295, %v9199_v29  ;;  %vm7542_vm14 = vcmp.eq.s32.totalorder %v1645_v25, %v6614_v16  ;;  %v9202_v50 = vmov 0  ;;  %5828 = vmatprep.subr.msk.bf16.mxu1 %vm8850_vm12, %v9042_v62 }
 0x249   : > { %9198 = vst [vmem:[#allocation84_spill] sm:$0xff] %v9197_v31  ;;  %9201 = vst [vmem:[#allocation85_spill] sm:$0xff] %v9200_v29  ;;  %v9203_v50 = vsel %vm7542_vm14, 4294967295, %v9202_v50  ;;  %vm7547_vm8 = vcmp.eq.s32.totalorder %v1862_v17, %v6614_v16  ;;  %v9205_v53 = vmov 0  ;;  %vm7562_vm7 = vcmp.eq.s32.totalorder %v1869_v44, %v6614_v16 }
 0x24a   : > { %9204 = vst [vmem:[#allocation86_spill] sm:$0xff] %v9203_v50  ;;  %v9206_v53 = vsel %vm7547_vm8, 4294967295, %v9205_v53  ;;  %v9208_v25 = vmov 0  ;;  %v1116_v17 = vadd.s32 688, %v6478_v8  ;;  %v1117_v41 = vadd.s32 696, %v6478_v8  ;;  %vm8858_vm3 = vmpackc.low %vm7542_vm14, %vm7537_vm10 }
 0x24b   : > { %9207 = vst [vmem:[#allocation87_spill] sm:$0xff] %v9206_v53  ;;  %v9209_v25 = vsel %vm7562_vm7, 4294967295, %v9208_v25  ;;  %v1148_v46 = vadd.s32 944, %v6478_v8  ;;  %v1149_v21 = vadd.s32 952, %v6478_v8  ;;  %v1100_v23 = vadd.s32 560, %v6478_v8  ;;  %5798 = vmatpush3.bf16.msk.msra.mxu0 %vm8858_vm3, %v9042_v62  ;;  %vm8862_vm12 = vmpackc.low %vm7562_vm7, %vm7547_vm8 }
 0x24c   : > { %9210 = vst [vmem:[#allocation88_spill] sm:$0xff] %v9209_v25  ;;  %v1101_v47 = vadd.s32 568, %v6478_v8  ;;  %v1132_v7 = vadd.s32 816, %v6478_v8  ;;  %v1764_v44 = vand.u32 7, %v1116_v17  ;;  %v1771_v12 = vand.u32 7, %v1117_v41  ;;  %5830 = vmatpush3.bf16.msk.msra.mxu1 %vm8862_vm12, %v9042_v62 }
 0x24d   : > { %v1988_v31 = vand.u32 7, %v1148_v46  ;;  %v1133_v59 = vadd.s32 824, %v6478_v8  ;;  %v1995_v29 = vand.u32 7, %v1149_v21  ;;  %v1652_v50 = vand.u32 7, %v1100_v23 }
 0x24e   : > { %v1659_v9 = vand.u32 7, %v1101_v47  ;;  %v1876_v26 = vand.u32 7, %v1132_v7  ;;  %vm7601_vm3 = vcmp.eq.s32.totalorder %v1764_v44, %v6614_v16  ;;  %v9211_v20 = vmov 0 }
 0x24f   : > { %v9212_v20 = vsel %vm7601_vm3, 4294967295, %v9211_v20  ;;  %vm7606_vm10 = vcmp.eq.s32.totalorder %v1771_v12, %v6614_v16  ;;  %v9214_v17 = vmov 0  ;;  %vm7611_vm14 = vcmp.eq.s32.totalorder %v1988_v31, %v6614_v16 }
 0x250   : > { %9213 = vst [vmem:[#allocation89_spill] sm:$0xff] %v9212_v20  ;;  %v9215_v17 = vsel %vm7606_vm10, 4294967295, %v9214_v17  ;;  %v9217_v41 = vmov 0  ;;  %v1883_v46 = vand.u32 7, %v1133_v59  ;;  %vm8869_vm12 = vmpackc.low %vm7606_vm10, %vm7601_vm3  ;;  %vm7620_vm8 = vcmp.eq.s32.totalorder %v1995_v29, %v6614_v16 }
 0x251   : > { %9216 = vst [vmem:[#allocation90_spill] sm:$0xff] %v9215_v17  ;;  %v9218_v41 = vsel %vm7611_vm14, 4294967295, %v9217_v41  ;;  %v9220_v21 = vmov 0  ;;  %vm7625_vm7 = vcmp.eq.s32.totalorder %v1652_v50, %v6614_v16  ;;  %v9223_v12 = vmov 0  ;;  %5800 = vmatprep.subr.msk.bf16.mxu0 %vm8869_vm12, %v9042_v62  ;;  %vm8870_vm15 = vmpackc.low %vm7620_vm8, %vm7611_vm14 }
 0x252   : > { %9219 = vst [vmem:[#allocation91_spill] sm:$0xff] %v9218_v41  ;;  %v9221_v21 = vsel %vm7620_vm8, 4294967295, %v9220_v21  ;;  %v9224_v12 = vsel %vm7625_vm7, 4294967295, %v9223_v12  ;;  %vm7630_vm11 = vcmp.eq.s32.totalorder %v1659_v9, %v6614_v16  ;;  %v9226_v31 = vmov 0  ;;  %5832 = vmatprep.subr.msk.bf16.mxu1 %vm8870_vm15, %v9042_v62 }
 0x253   : > { %9222 = vst [vmem:[#allocation92_spill] sm:$0xff] %v9221_v21  ;;  %9225 = vst [vmem:[#allocation93_spill] sm:$0xff] %v9224_v12  ;;  %v9227_v31 = vsel %vm7630_vm11, 4294967295, %v9226_v31  ;;  %vm7635_vm9 = vcmp.eq.s32.totalorder %v1876_v26, %v6614_v16  ;;  %v9229_v59 = vmov 0  ;;  %vm7650_vm13 = vcmp.eq.s32.totalorder %v1883_v46, %v6614_v16 }
 0x254   : > { %9228 = vst [vmem:[#allocation94_spill] sm:$0xff] %v9227_v31  ;;  %v9230_v59 = vsel %vm7635_vm9, 4294967295, %v9229_v59  ;;  %v9232_v9 = vmov 0  ;;  %v1118_v26 = vadd.s32 704, %v6478_v8  ;;  %v1119_v29 = vadd.s32 712, %v6478_v8  ;;  %vm8878_vm12 = vmpackc.low %vm7630_vm11, %vm7625_vm7 }
 0x255   : > { %9231 = vst [vmem:[#allocation95_spill] sm:$0xff] %v9230_v59  ;;  %v9233_v9 = vsel %vm7650_vm13, 4294967295, %v9232_v9  ;;  %v1150_v50 = vadd.s32 960, %v6478_v8  ;;  %v1151_v23 = vadd.s32 968, %v6478_v8  ;;  %v1102_v47 = vadd.s32 576, %v6478_v8  ;;  %5802 = vmatpush3.bf16.msk.msra.mxu0 %vm8878_vm12, %v9042_v62  ;;  %vm8882_vm15 = vmpackc.low %vm7650_vm13, %vm7635_vm9 }
 0x256   : > { %9234 = vst [vmem:[#allocation96_spill] sm:$0xff] %v9233_v9  ;;  %v1103_v7 = vadd.s32 584, %v6478_v8  ;;  %v1134_v44 = vadd.s32 832, %v6478_v8  ;;  %v1778_v46 = vand.u32 7, %v1118_v26  ;;  %v1785_v41 = vand.u32 7, %v1119_v29  ;;  %5834 = vmatpush3.bf16.msk.msra.mxu1 %vm8882_vm15, %v9042_v62 }
 0x257   : > { %v2002_v21 = vand.u32 7, %v1150_v50  ;;  %v1135_v20 = vadd.s32 840, %v6478_v8  ;;  %v2009_v12 = vand.u32 7, %v1151_v23  ;;  %v1666_v31 = vand.u32 7, %v1102_v47 }
 0x258   : > { %v1673_v17 = vand.u32 7, %v1103_v7  ;;  %v1890_v53 = vand.u32 7, %v1134_v44  ;;  %vm7689_vm12 = vcmp.eq.s32.totalorder %v1778_v46, %v6614_v16  ;;  %v9235_v25 = vmov 0 }
 0x259   : > { %v9236_v25 = vsel %vm7689_vm12, 4294967295, %v9235_v25  ;;  %vm7694_vm7 = vcmp.eq.s32.totalorder %v1785_v41, %v6614_v16  ;;  %v9238_v26 = vmov 0  ;;  %vm7699_vm11 = vcmp.eq.s32.totalorder %v2002_v21, %v6614_v16 }
 0x25a   : > { %9237 = vst [vmem:[#allocation97_spill] sm:$0xff] %v9236_v25  ;;  %v9239_v26 = vsel %vm7694_vm7, 4294967295, %v9238_v26  ;;  %v9241_v29 = vmov 0  ;;  %v1897_v50 = vand.u32 7, %v1135_v20  ;;  %vm8889_vm15 = vmpackc.low %vm7694_vm7, %vm7689_vm12  ;;  %vm7708_vm9 = vcmp.eq.s32.totalorder %v2009_v12, %v6614_v16 }
 0x25b   : > { %9240 = vst [vmem:[#allocation98_spill] sm:$0xff] %v9239_v26  ;;  %v9242_v29 = vsel %vm7699_vm11, 4294967295, %v9241_v29  ;;  %v9244_v23 = vmov 0  ;;  %vm7713_vm13 = vcmp.eq.s32.totalorder %v1666_v31, %v6614_v16  ;;  %v9247_v41 = vmov 0  ;;  %5804 = vmatprep.subr.msk.bf16.mxu0 %vm8889_vm15, %v9042_v62  ;;  %vm8890_vm3 = vmpackc.low %vm7708_vm9, %vm7699_vm11 }
 0x25c   : > { %9243 = vst [vmem:[#allocation99_spill] sm:$0xff] %v9242_v29  ;;  %v9245_v23 = vsel %vm7708_vm9, 4294967295, %v9244_v23  ;;  %v9248_v41 = vsel %vm7713_vm13, 4294967295, %v9247_v41  ;;  %vm7718_vm14 = vcmp.eq.s32.totalorder %v1673_v17, %v6614_v16  ;;  %v9250_v21 = vmov 0  ;;  %5836 = vmatprep.subr.msk.bf16.mxu1 %vm8890_vm3, %v9042_v62 }
 0x25d   : > { %9246 = vst [vmem:[#allocation100_spill] sm:$0xff] %v9245_v23  ;;  %9249 = vst [vmem:[#allocation101_spill] sm:$0xff] %v9248_v41  ;;  %v9251_v21 = vsel %vm7718_vm14, 4294967295, %v9250_v21  ;;  %vm7723_vm8 = vcmp.eq.s32.totalorder %v1890_v53, %v6614_v16  ;;  %v9253_v20 = vmov 0  ;;  %vm7738_vm10 = vcmp.eq.s32.totalorder %v1897_v50, %v6614_v16 }
 0x25e   : > { %9252 = vst [vmem:[#allocation102_spill] sm:$0xff] %v9251_v21  ;;  %v9254_v20 = vsel %vm7723_vm8, 4294967295, %v9253_v20  ;;  %v9256_v17 = vmov 0  ;;  %v1120_v53 = vadd.s32 720, %v6478_v8  ;;  %v1121_v12 = vadd.s32 728, %v6478_v8  ;;  %vm8898_vm15 = vmpackc.low %vm7718_vm14, %vm7713_vm13 }
 0x25f   : > { %9255 = vst [vmem:[#allocation103_spill] sm:$0xff] %v9254_v20  ;;  %v9257_v17 = vsel %vm7738_vm10, 4294967295, %v9256_v17  ;;  %v1152_v31 = vadd.s32 976, %v6478_v8  ;;  %v1153_v47 = vadd.s32 984, %v6478_v8  ;;  %v1104_v7 = vadd.s32 592, %v6478_v8  ;;  %5806 = vmatpush3.bf16.msk.msra.mxu0 %vm8898_vm15, %v9042_v62  ;;  %vm8902_vm3 = vmpackc.low %vm7738_vm10, %vm7723_vm8 }
 0x260   : > { %9258 = vst [vmem:[#allocation104_spill] sm:$0xff] %v9257_v17  ;;  %v1105_v44 = vadd.s32 600, %v6478_v8  ;;  %v1136_v46 = vadd.s32 848, %v6478_v8  ;;  %v1792_v50 = vand.u32 7, %v1120_v53  ;;  %v1799_v29 = vand.u32 7, %v1121_v12  ;;  %5838 = vmatpush3.bf16.msk.msra.mxu1 %vm8902_vm3, %v9042_v62 }
 0x261   : > { %v2016_v23 = vand.u32 7, %v1152_v31  ;;  %v1137_v25 = vadd.s32 856, %v6478_v8  ;;  %v2023_v41 = vand.u32 7, %v1153_v47  ;;  %v1680_v21 = vand.u32 7, %v1104_v7 }
 0x262   : > { %v1687_v26 = vand.u32 7, %v1105_v44  ;;  %v1904_v59 = vand.u32 7, %v1136_v46  ;;  %vm7777_vm15 = vcmp.eq.s32.totalorder %v1792_v50, %v6614_v16  ;;  %v9259_v9 = vmov 0 }
 0x263   : > { %v9260_v9 = vsel %vm7777_vm15, 4294967295, %v9259_v9  ;;  %vm7782_vm13 = vcmp.eq.s32.totalorder %v1799_v29, %v6614_v16  ;;  %v9262_v53 = vmov 0  ;;  %vm7787_vm14 = vcmp.eq.s32.totalorder %v2016_v23, %v6614_v16 }
 0x264   : > { %9261 = vst [vmem:[#allocation105_spill] sm:$0xff] %v9260_v9  ;;  %v9263_v53 = vsel %vm7782_vm13, 4294967295, %v9262_v53  ;;  %v9265_v12 = vmov 0  ;;  %v1911_v31 = vand.u32 7, %v1137_v25  ;;  %vm8909_vm3 = vmpackc.low %vm7782_vm13, %vm7777_vm15  ;;  %vm7796_vm8 = vcmp.eq.s32.totalorder %v2023_v41, %v6614_v16 }
 0x265   : > { %9264 = vst [vmem:[#allocation106_spill] sm:$0xff] %v9263_v53  ;;  %v9266_v12 = vsel %vm7787_vm14, 4294967295, %v9265_v12  ;;  %v9268_v47 = vmov 0  ;;  %vm7801_vm10 = vcmp.eq.s32.totalorder %v1680_v21, %v6614_v16  ;;  %v9271_v29 = vmov 0  ;;  %5808 = vmatprep.subr.msk.bf16.mxu0 %vm8909_vm3, %v9042_v62  ;;  %vm8910_vm12 = vmpackc.low %vm7796_vm8, %vm7787_vm14 }
 0x266   : > { %9267 = vst [vmem:[#allocation107_spill] sm:$0xff] %v9266_v12  ;;  %v9269_v47 = vsel %vm7796_vm8, 4294967295, %v9268_v47  ;;  %v9272_v29 = vsel %vm7801_vm10, 4294967295, %v9271_v29  ;;  %vm7806_vm11 = vcmp.eq.s32.totalorder %v1687_v26, %v6614_v16  ;;  %v9274_v23 = vmov 0  ;;  %5840 = vmatprep.subr.msk.bf16.mxu1 %vm8910_vm12, %v9042_v62 }
 0x267   : > { %9270 = vst [vmem:[#allocation108_spill] sm:$0xff] %v9269_v47  ;;  %9273 = vst [vmem:[#allocation109_spill] sm:$0xff] %v9272_v29  ;;  %v9275_v23 = vsel %vm7806_vm11, 4294967295, %v9274_v23  ;;  %vm7811_vm9 = vcmp.eq.s32.totalorder %v1904_v59, %v6614_v16  ;;  %v9277_v25 = vmov 0  ;;  %vm7826_vm7 = vcmp.eq.s32.totalorder %v1911_v31, %v6614_v16 }
 0x268   : > { %9276 = vst [vmem:[#allocation110_spill] sm:$0xff] %v9275_v23  ;;  %v9278_v25 = vsel %vm7811_vm9, 4294967295, %v9277_v25  ;;  %v9280_v26 = vmov 0  ;;  %v1122_v59 = vadd.s32 736, %v6478_v8  ;;  %v1123_v41 = vadd.s32 744, %v6478_v8  ;;  %vm8918_vm3 = vmpackc.low %vm7806_vm11, %vm7801_vm10 }
 0x269   : > { %9279 = vst [vmem:[#allocation111_spill] sm:$0xff] %v9278_v25  ;;  %v9281_v26 = vsel %vm7826_vm7, 4294967295, %v9280_v26  ;;  %v1154_v21 = vadd.s32 992, %v6478_v8  ;;  %v1155_v7 = vadd.s32 1000, %v6478_v8  ;;  %v1106_v44 = vadd.s32 608, %v6478_v8  ;;  %5810 = vmatpush3.bf16.msk.msra.mxu0 %vm8918_vm3, %v9042_v62  ;;  %vm8922_vm12 = vmpackc.low %vm7826_vm7, %vm7811_vm9 }
 0x26a   : > { %9282 = vst [vmem:[#allocation112_spill] sm:$0xff] %v9281_v26  ;;  %v1107_v46 = vadd.s32 616, %v6478_v8  ;;  %v1138_v50 = vadd.s32 864, %v6478_v8  ;;  %v1806_v31 = vand.u32 7, %v1122_v59  ;;  %v1813_v12 = vand.u32 7, %v1123_v41  ;;  %5842 = vmatpush3.bf16.msk.msra.mxu1 %vm8922_vm12, %v9042_v62 }
 0x26b   : > { %v2030_v47 = vand.u32 7, %v1154_v21  ;;  %v1139_v9 = vadd.s32 872, %v6478_v8  ;;  %v2037_v29 = vand.u32 7, %v1155_v7  ;;  %v1694_v23 = vand.u32 7, %v1106_v44 }
 0x26c   : > { %v1701_v53 = vand.u32 7, %v1107_v46  ;;  %v1918_v20 = vand.u32 7, %v1138_v50  ;;  %vm7865_vm3 = vcmp.eq.s32.totalorder %v1806_v31, %v6614_v16  ;;  %v9283_v17 = vmov 0 }
 0x26d   : > { %v9284_v17 = vsel %vm7865_vm3, 4294967295, %v9283_v17  ;;  %vm7870_vm10 = vcmp.eq.s32.totalorder %v1813_v12, %v6614_v16  ;;  %v9286_v59 = vmov 0  ;;  %vm7875_vm11 = vcmp.eq.s32.totalorder %v2030_v47, %v6614_v16 }
 0x26e   : > { %9285 = vst [vmem:[#allocation113_spill] sm:$0xff] %v9284_v17  ;;  %v9287_v59 = vsel %vm7870_vm10, 4294967295, %v9286_v59  ;;  %v9289_v41 = vmov 0  ;;  %v1925_v21 = vand.u32 7, %v1139_v9  ;;  %vm8929_vm12 = vmpackc.low %vm7870_vm10, %vm7865_vm3  ;;  %vm7884_vm9 = vcmp.eq.s32.totalorder %v2037_v29, %v6614_v16 }
 0x26f   : > { %9288 = vst [vmem:[#allocation114_spill] sm:$0xff] %v9287_v59  ;;  %v9290_v41 = vsel %vm7875_vm11, 4294967295, %v9289_v41  ;;  %v9292_v7 = vmov 0  ;;  %vm7889_vm7 = vcmp.eq.s32.totalorder %v1694_v23, %v6614_v16  ;;  %v9295_v12 = vmov 0  ;;  %5812 = vmatprep.subr.msk.bf16.mxu0 %vm8929_vm12, %v9042_v62  ;;  %vm8930_vm15 = vmpackc.low %vm7884_vm9, %vm7875_vm11 }
 0x270   : > { %9291 = vst [vmem:[#allocation115_spill] sm:$0xff] %v9290_v41  ;;  %v9293_v7 = vsel %vm7884_vm9, 4294967295, %v9292_v7  ;;  %v9296_v12 = vsel %vm7889_vm7, 4294967295, %v9295_v12  ;;  %vm7894_vm14 = vcmp.eq.s32.totalorder %v1701_v53, %v6614_v16  ;;  %v9298_v47 = vmov 0  ;;  %5844 = vmatprep.subr.msk.bf16.mxu1 %vm8930_vm15, %v9042_v62 }
 0x271   : > { %9294 = vst [vmem:[#allocation116_spill] sm:$0xff] %v9293_v7  ;;  %9297 = vst [vmem:[#allocation117_spill] sm:$0xff] %v9296_v12  ;;  %v9299_v47 = vsel %vm7894_vm14, 4294967295, %v9298_v47  ;;  %vm7899_vm8 = vcmp.eq.s32.totalorder %v1918_v20, %v6614_v16  ;;  %v9301_v9 = vmov 0  ;;  %vm7914_vm13 = vcmp.eq.s32.totalorder %v1925_v21, %v6614_v16 }
 0x272   : > { %9300 = vst [vmem:[#allocation118_spill] sm:$0xff] %v9299_v47  ;;  %v9302_v9 = vsel %vm7899_vm8, 4294967295, %v9301_v9  ;;  %v9303_v53 = vmov 0  ;;  %v1124_v20 = vadd.s32 752, %v6478_v8  ;;  %v1125_v29 = vadd.s32 760, %v6478_v8  ;;  %vm8938_vm12 = vmpackc.low %vm7894_vm14, %vm7889_vm7 }
 0x273   : > { %v9304_v53 = vsel %vm7914_vm13, 4294967295, %v9303_v53  ;;  %v1156_v23 = vadd.s32 1008, %v6478_v8  ;;  %v1157_v44 = vadd.s32 1016, %v6478_v8  ;;  %v1108_v46 = vadd.s32 624, %v6478_v8  ;;  %5814 = vmatpush3.bf16.msk.msra.mxu0 %vm8938_vm12, %v9042_v62  ;;  %vm8942_vm15 = vmpackc.low %vm7914_vm13, %vm7899_vm8 }
 0x274   : > { %v1109_v50 = vadd.s32 632, %v6478_v8  ;;  %v1140_v31 = vadd.s32 880, %v6478_v8  ;;  %v1820_v21 = vand.u32 7, %v1124_v20  ;;  %v1827_v41 = vand.u32 7, %v1125_v29  ;;  %5846 = vmatpush3.bf16.msk.msra.mxu1 %vm8942_vm15, %v9042_v62 }
 0x275   : > { %v2044_v7 = vand.u32 7, %v1156_v23  ;;  %v1141_v17 = vadd.s32 888, %v6478_v8  ;;  %v2051_v12 = vand.u32 7, %v1157_v44  ;;  %v1708_v47 = vand.u32 7, %v1108_v46  ;;  %v8022_v46 = vld [vmem:[#allocation3] sm:$0xff] }
 0x276   : > { %v1715_v59 = vand.u32 7, %v1109_v50  ;;  %v1932_v25 = vand.u32 7, %v1140_v31  ;;  %vm7953_vm12 = vcmp.eq.s32.totalorder %v1820_v21, %v6614_v16  ;;  %vm7958_vm7 = vcmp.eq.s32.totalorder %v1827_v41, %v6614_v16  ;;  %v9446_v21 = vld [vmem:[#allocation68_spill] sm:$0xff] }
 0x277   : > { %vm7963_vm14 = vcmp.eq.s32.totalorder %v2044_v7, %v6614_v16  ;;  %v1939_v23 = vand.u32 7, %v1141_v17  ;;  %vm8949_vm15 = vmpackc.low %vm7958_vm7, %vm7953_vm12  ;;  %vm7972_vm8 = vcmp.eq.s32.totalorder %v2051_v12, %v6614_v16  ;;  %vm7977_vm13 = vcmp.eq.s32.totalorder %v1708_v47, %v6614_v16 }
 0x278   : > { %v9313_v41 = vmov 0  ;;  %vm7982_vm11 = vcmp.eq.s32.totalorder %v1715_v59, %v6614_v16  ;;  %vm7987_vm9 = vcmp.eq.s32.totalorder %v1932_v25, %v6614_v16  ;;  %v9317_v17 = vmov 0  ;;  %5816 = vmatprep.subr.msk.bf16.mxu0 %vm8949_vm15, %v9042_v62  ;;  %vm8950_vm3 = vmpackc.low %vm7972_vm8, %vm7963_vm14 }
 0x279   : > { %v9314_v41 = vsel %vm7977_vm13, 4294967295, %v9313_v41  ;;  %v9318_v17 = vsel %vm7987_vm9, 4294967295, %v9317_v17  ;;  %vm8002_vm10 = vcmp.eq.s32.totalorder %v1939_v23, %v6614_v16  ;;  %v3232_v25 = vrot.slane %v7232_v45, %v6519_v34  ;;  %5848 = vmatprep.subr.msk.bf16.mxu1 %vm8950_vm3, %v9042_v62  ;;  %vm8951_vm15 = vmpackc.low %vm7982_vm11, %vm7977_vm13  ;;  %v9448_v23 = vld [vmem:[#allocation67_spill] sm:$0xff] }
 0x27a   : > { %v3240_v12 = vrot.slane %v7232_v45, %v6522_v35  ;;  %v3228_v47 = vrot.slane %v7232_v45, %v6513_v32  ;;  %5818 = vmatpush3.bf16.msk.msra.mxu0 %vm8951_vm15, %v9042_v62  ;;  %vm8953_vm3 = vmpackc.low %vm8002_vm10, %vm7987_vm9  ;;  %v3236_v50 = vrot.slane %v7232_v45, %v6516_v33  ;;  %v3538_v45 = vrot.slane %v8022_v46, %v6487_v48 }
 0x27b   : > { %3453 = vmatprep.mubr.f32.mxu0 %v3232_v25  ;;  %5850 = vmatpush3.bf16.msk.msra.mxu1 %vm8953_vm3, %v9042_v62  ;;  %vm9321_vm15 = vmpackc.low %vm6633_vm2, %vm6628_vm1  ;;  %v3546_v31 = vrot.slane %v8022_v46, %v6490_v0  ;;  %vm9324_vm2 = vnez %v8997_v4  ;;  %vm9330_vm9 = vnez %v9005_v30  ;;  %v9388_v4 = vld [vmem:[#allocation45_spill] sm:$0xff]  ;;  %v3562_v25 = vrot.slane %v8022_v46, %v6522_v35 }
 0x27c   : > { %3523 = vmatprep.mubr.f32.mxu1 %v3240_v12  ;;  %5852 = vmatprep.subr.msk.bf16.mxu0 %vm9321_vm15, %v9042_v62  ;;  %vm9322_vm13 = vmpackc.low %vm6647_vm5, %vm6642_vm4  ;;  %vm9325_vm4 = vnez %v8995_v61  ;;  %vm9328_vm15 = vnez %v8999_v10  ;;  %v9386_v61 = vld [vmem:[#allocation46_spill] sm:$0xff]  ;;  %v9391_v10 = vld [vmem:[#allocation48_spill] sm:$0xff]  ;;  %v3558_v26 = vrot.slane %v8022_v46, %v6516_v33  ;;  %v3082_v20 = vadd.s32 384, %v6614_v16 }
 0x27d   : > { %5884 = vmatprep.subr.msk.bf16.mxu1 %vm9322_vm13, %v9042_v62  ;;  %3454 = vmatmul.mubr.f32.vlgmr.msra.gmra.mrb[2].mxu0 %v3228_v47  ;;  %vm9323_vm1 = vmpackc.low %vm6652_vm6, %vm6623_vm0  ;;  %vm9327_vm13 = vnez %v9001_v15  ;;  %vm9331_vm0 = vnez %v9003_v18  ;;  %v9393_v15 = vld [vmem:[#allocation47_spill] sm:$0xff]  ;;  %v9396_v18 = vld [vmem:[#allocation50_spill] sm:$0xff]  ;;  %v3081_v29 = vadd.s32 256, %v6614_v16  ;;  %v3091_v7 = vand.u32 7, %v6614_v16 }
 0x27e   : > { %3524 = vmatmul.mubr.f32.vlgmr.msra.gmra.mrb[2].mxu1 %v3236_v50  ;;  %5854 = vmatpush3.bf16.msk.msra.mxu0 %vm9323_vm1, %v9042_v62  ;;  %vm9326_vm5 = vmpackc.low %vm9324_vm2, %vm9325_vm4  ;;  %vm9333_vm1 = vnez %v9009_v60  ;;  %vm9334_vm2 = vnez %v9007_v43  ;;  %v9398_v30 = vld [vmem:[#allocation49_spill] sm:$0xff]  ;;  %v9401_v43 = vld [vmem:[#allocation52_spill] sm:$0xff] }
 0x27f   : > { %5886 = vmatpush3.bf16.msk.msra.mxu1 %vm9326_vm5, %v9042_v62  ;;  %vm9329_vm3 = vmpackc.low %vm9327_vm13, %vm9328_vm15  ;;  %3635 = vmatprep.mubr.f32.mxu0 %v3538_v45  ;;  %vm9336_vm5 = vnez %v9013_v37  ;;  %vm9340_vm15 = vnez %v9015_v63  ;;  %v9403_v60 = vld [vmem:[#allocation51_spill] sm:$0xff]  ;;  %v9408_v37 = vld [vmem:[#allocation53_spill] sm:$0xff] }
 0x280   : > { %5856 = vmatprep.subr.msk.bf16.mxu0 %vm9329_vm3, %v9042_v62  ;;  %vm9332_vm6 = vmpackc.low %vm9330_vm9, %vm9331_vm0  ;;  %3705 = vmatprep.mubr.f32.mxu1 %v3546_v31  ;;  %vm9337_vm3 = vnez %v9011_v36  ;;  %vm9339_vm9 = vnez %v9017_v6  ;;  %v9406_v36 = vld [vmem:[#allocation54_spill] sm:$0xff]  ;;  %v9411_v63 = vld [vmem:[#allocation56_spill] sm:$0xff] }
 0x281   : > { %5888 = vmatprep.subr.msk.bf16.mxu1 %vm9332_vm6, %v9042_v62  ;;  %vm9335_vm4 = vmpackc.low %vm9333_vm1, %vm9334_vm2  ;;  %vm9342_vm6 = vnez %v9021_v27  ;;  %vm9343_vm1 = vnez %v9019_v11  ;;  %v9413_v6 = vld [vmem:[#allocation55_spill] sm:$0xff]  ;;  %v9416_v11 = vld [vmem:[#allocation58_spill] sm:$0xff] }
 0x282   : > { %5858 = vmatpush3.bf16.msk.msra.mxu0 %vm9335_vm4, %v9042_v62  ;;  %vm9338_vm13 = vmpackc.low %vm9336_vm5, %vm9337_vm3  ;;  %vm9345_vm4 = vnez %v9025_v22  ;;  %vm9346_vm5 = vnez %v9023_v58  ;;  %v9418_v27 = vld [vmem:[#allocation57_spill] sm:$0xff]  ;;  %v9421_v58 = vld [vmem:[#allocation60_spill] sm:$0xff] }
 0x283   : > { %5890 = vmatpush3.bf16.msk.msra.mxu1 %vm9338_vm13, %v9042_v62  ;;  %vm9341_vm0 = vmpackc.low %vm9339_vm9, %vm9340_vm15  ;;  %vm9348_vm13 = vnez %v9029_v49  ;;  %vm9349_vm9 = vnez %v9027_v38  ;;  %v9423_v22 = vld [vmem:[#allocation59_spill] sm:$0xff]  ;;  %v9426_v38 = vld [vmem:[#allocation62_spill] sm:$0xff] }
 0x284   : > { %5860 = vmatprep.subr.msk.bf16.mxu0 %vm9341_vm0, %v9042_v62  ;;  %vm9344_vm2 = vmpackc.low %vm9342_vm6, %vm9343_vm1  ;;  %vm9351_vm0 = vnez %v9033_v3  ;;  %vm9352_vm6 = vnez %v9031_v13  ;;  %v9428_v49 = vld [vmem:[#allocation61_spill] sm:$0xff]  ;;  %v9431_v13 = vld [vmem:[#allocation19_spill] sm:$0xff] }
 0x285   : > { %5892 = vmatprep.subr.msk.bf16.mxu1 %vm9344_vm2, %v9042_v62  ;;  %vm9347_vm3 = vmpackc.low %vm9345_vm4, %vm9346_vm5  ;;  %vm9354_vm2 = vnez %v9037_v39  ;;  %vm9355_vm4 = vnez %v9035_v56  ;;  %v9366_v56 = vld [vmem:[#allocation38_spill] sm:$0xff]  ;;  %v3534_v3 = vrot.slane %v8022_v46, %v9431_v13  ;;  %v9432_v39 = vld [vmem:[#allocation64_spill] sm:$0xff] }
 0x286   : > { %5862 = vmatpush3.bf16.msk.msra.mxu0 %vm9347_vm3, %v9042_v62  ;;  %vm9350_vm15 = vmpackc.low %vm9348_vm13, %vm9349_vm9  ;;  %vm9357_vm3 = vnez %v9041_v57  ;;  %vm9358_vm13 = vnez %v9039_v40  ;;  %v9434_v40 = vld [vmem:[#allocation63_spill] sm:$0xff]  ;;  %v9437_v57 = vld [vmem:[#allocation20_spill] sm:$0xff] }
 0x287   : > { %5894 = vmatpush3.bf16.msk.msra.mxu1 %vm9350_vm15, %v9042_v62  ;;  %vm9353_vm1 = vmpackc.low %vm9351_vm0, %vm9352_vm6  ;;  %vm9360_vm15 = vnez %v9046_v2  ;;  %vm9361_vm0 = vnez %v9044_v1  ;;  %v3542_v1 = vrot.slane %v8022_v46, %v9437_v57  ;;  %v9439_v2 = vld [vmem:[#allocation65_spill] sm:$0xff]  ;;  %v9456_v47 = vld [vmem:[#allocation72_spill] sm:$0xff] }
 0x288   : > { %5864 = vmatprep.subr.msk.bf16.mxu0 %vm9353_vm1, %v9042_v62  ;;  %vm9356_vm5 = vmpackc.low %vm9354_vm2, %vm9355_vm4  ;;  %vm9363_vm1 = vnez %v9050_v14  ;;  %vm9364_vm2 = vnez %v9048_v28  ;;  %v9378_v28 = vld [vmem:[#allocation41_spill] sm:$0xff]  ;;  %v9443_v14 = vld [vmem:[#allocation66_spill] sm:$0xff] }
 0x289   : > { %5896 = vmatprep.subr.msk.bf16.mxu1 %vm9356_vm5, %v9042_v62  ;;  %vm9359_vm9 = vmpackc.low %vm9357_vm3, %vm9358_vm13  ;;  %vm9367_vm5 = vnez %v9366_v56  ;;  %vm9369_vm3 = vnez %v9368_v19  ;;  %v9453_v12 = vld [vmem:[#allocation69_spill] sm:$0xff]  ;;  %v9458_v50 = vld [vmem:[#allocation71_spill] sm:$0xff] }
 0x28a   : > { %5866 = vmatpush3.bf16.msk.msra.mxu0 %vm9359_vm9, %v9042_v62  ;;  %vm9362_vm6 = vmpackc.low %vm9360_vm15, %vm9361_vm0  ;;  %vm9372_vm9 = vnez %v9371_v42  ;;  %vm9374_vm15 = vnez %v9373_v24  ;;  %v9461_v45 = vld [vmem:[#allocation74_spill] sm:$0xff]  ;;  %v9463_v31 = vld [vmem:[#allocation73_spill] sm:$0xff] }
 0x28b   : > { %5898 = vmatpush3.bf16.msk.msra.mxu1 %vm9362_vm6, %v9042_v62  ;;  %vm9365_vm4 = vmpackc.low %vm9363_vm1, %vm9364_vm2  ;;  %vm9377_vm6 = vnez %v9376_v51  ;;  %vm9379_vm1 = vnez %v9378_v28  ;;  %v9466_v56 = vld [vmem:[#allocation76_spill] sm:$0xff]  ;;  %v9468_v19 = vld [vmem:[#allocation75_spill] sm:$0xff] }
 0x28c   : > { %5868 = vmatprep.subr.msk.bf16.mxu0 %vm9365_vm4, %v9042_v62  ;;  %vm9370_vm13 = vmpackc.low %vm9367_vm5, %vm9369_vm3  ;;  %vm9382_vm4 = vnez %v9381_v52  ;;  %vm9384_vm5 = vnez %v9383_v55  ;;  %v9471_v42 = vld [vmem:[#allocation78_spill] sm:$0xff]  ;;  %v9473_v24 = vld [vmem:[#allocation77_spill] sm:$0xff] }
 0x28d   : > { %5900 = vmatprep.subr.msk.bf16.mxu1 %vm9370_vm13, %v9042_v62  ;;  %vm9375_vm0 = vmpackc.low %vm9372_vm9, %vm9374_vm15  ;;  %vm9387_vm13 = vnez %v9386_v61  ;;  %vm9389_vm9 = vnez %v9388_v4  ;;  %v9476_v51 = vld [vmem:[#allocation80_spill] sm:$0xff]  ;;  %v9478_v28 = vld [vmem:[#allocation79_spill] sm:$0xff] }
 0x28e   : > { %5870 = vmatpush3.bf16.msk.msra.mxu0 %vm9375_vm0, %v9042_v62  ;;  %vm9380_vm2 = vmpackc.low %vm9377_vm6, %vm9379_vm1  ;;  %vm9392_vm0 = vnez %v9391_v10  ;;  %vm9394_vm6 = vnez %v9393_v15  ;;  %v9481_v52 = vld [vmem:[#allocation82_spill] sm:$0xff]  ;;  %v9483_v55 = vld [vmem:[#allocation81_spill] sm:$0xff] }
 0x28f   : > { %5902 = vmatpush3.bf16.msk.msra.mxu1 %vm9380_vm2, %v9042_v62  ;;  %vm9385_vm3 = vmpackc.low %vm9382_vm4, %vm9384_vm5  ;;  %vm9397_vm2 = vnez %v9396_v18  ;;  %vm9399_vm4 = vnez %v9398_v30  ;;  %v9486_v61 = vld [vmem:[#allocation84_spill] sm:$0xff]  ;;  %v9488_v4 = vld [vmem:[#allocation83_spill] sm:$0xff] }
 0x290   : > { %5872 = vmatprep.subr.msk.bf16.mxu0 %vm9385_vm3, %v9042_v62  ;;  %vm9390_vm15 = vmpackc.low %vm9387_vm13, %vm9389_vm9  ;;  %vm9402_vm3 = vnez %v9401_v43  ;;  %vm9404_vm13 = vnez %v9403_v60  ;;  %v9491_v10 = vld [vmem:[#allocation86_spill] sm:$0xff]  ;;  %v9493_v15 = vld [vmem:[#allocation85_spill] sm:$0xff] }
 0x291   : > { %5904 = vmatprep.subr.msk.bf16.mxu1 %vm9390_vm15, %v9042_v62  ;;  %vm9395_vm1 = vmpackc.low %vm9392_vm0, %vm9394_vm6  ;;  %vm9407_vm15 = vnez %v9406_v36  ;;  %vm9409_vm0 = vnez %v9408_v37  ;;  %v9496_v18 = vld [vmem:[#allocation88_spill] sm:$0xff]  ;;  %v9498_v30 = vld [vmem:[#allocation87_spill] sm:$0xff] }
 0x292   : > { %5874 = vmatpush3.bf16.msk.msra.mxu0 %vm9395_vm1, %v9042_v62  ;;  %vm9400_vm5 = vmpackc.low %vm9397_vm2, %vm9399_vm4  ;;  %vm9412_vm1 = vnez %v9411_v63  ;;  %vm9414_vm2 = vnez %v9413_v6  ;;  %v9501_v43 = vld [vmem:[#allocation90_spill] sm:$0xff]  ;;  %v9503_v60 = vld [vmem:[#allocation89_spill] sm:$0xff] }
 0x293   : > { %5906 = vmatpush3.bf16.msk.msra.mxu1 %vm9400_vm5, %v9042_v62  ;;  %vm9405_vm9 = vmpackc.low %vm9402_vm3, %vm9404_vm13  ;;  %vm9417_vm5 = vnez %v9416_v11  ;;  %vm9419_vm3 = vnez %v9418_v27  ;;  %v9506_v36 = vld [vmem:[#allocation92_spill] sm:$0xff]  ;;  %v9508_v37 = vld [vmem:[#allocation91_spill] sm:$0xff] }
 0x294   : > { %5876 = vmatprep.subr.msk.bf16.mxu0 %vm9405_vm9, %v9042_v62  ;;  %vm9410_vm6 = vmpackc.low %vm9407_vm15, %vm9409_vm0  ;;  %vm9422_vm9 = vnez %v9421_v58  ;;  %vm9424_vm15 = vnez %v9423_v22  ;;  %v9511_v63 = vld [vmem:[#allocation94_spill] sm:$0xff]  ;;  %v9513_v6 = vld [vmem:[#allocation93_spill] sm:$0xff] }
 0x295   : > { %5908 = vmatprep.subr.msk.bf16.mxu1 %vm9410_vm6, %v9042_v62  ;;  %vm9415_vm4 = vmpackc.low %vm9412_vm1, %vm9414_vm2  ;;  %vm9427_vm6 = vnez %v9426_v38  ;;  %vm9429_vm1 = vnez %v9428_v49  ;;  %v9516_v11 = vld [vmem:[#allocation96_spill] sm:$0xff]  ;;  %v9518_v27 = vld [vmem:[#allocation95_spill] sm:$0xff] }
 0x296   : > { %5878 = vmatpush3.bf16.msk.msra.mxu0 %vm9415_vm4, %v9042_v62  ;;  %vm9420_vm13 = vmpackc.low %vm9417_vm5, %vm9419_vm3  ;;  %vm9433_vm4 = vnez %v9432_v39  ;;  %vm9435_vm5 = vnez %v9434_v40  ;;  %v9521_v58 = vld [vmem:[#allocation98_spill] sm:$0xff]  ;;  %v9523_v22 = vld [vmem:[#allocation97_spill] sm:$0xff] }
 0x297   : > { %5910 = vmatpush3.bf16.msk.msra.mxu1 %vm9420_vm13, %v9042_v62  ;;  %vm9425_vm0 = vmpackc.low %vm9422_vm9, %vm9424_vm15  ;;  %vm9438_vm13 = vnez %v9139_v5  ;;  %vm9440_vm9 = vnez %v9439_v2  ;;  %v3554_v5 = vrot.slane %v8022_v46, %v6519_v34  ;;  %v9526_v38 = vld [vmem:[#allocation100_spill] sm:$0xff]  ;;  %v9528_v49 = vld [vmem:[#allocation99_spill] sm:$0xff] }
 0x298   : > { %5880 = vmatprep.subr.msk.bf16.mxu0 %vm9425_vm0, %v9042_v62  ;;  %vm9430_vm2 = vmpackc.low %vm9427_vm6, %vm9429_vm1  ;;  %vm9442_vm0 = vnez %v9144_v54  ;;  %vm9444_vm6 = vnez %v9443_v14  ;;  %v9451_v54 = vld [vmem:[#allocation70_spill] sm:$0xff]  ;;  %v9533_v39 = vld [vmem:[#allocation101_spill] sm:$0xff] }
 0x299   : > { %5912 = vmatprep.subr.msk.bf16.mxu1 %vm9430_vm2, %v9042_v62  ;;  %vm9436_vm3 = vmpackc.low %vm9433_vm4, %vm9435_vm5  ;;  %vm9447_vm2 = vnez %v9446_v21  ;;  %vm9449_vm4 = vnez %v9448_v23  ;;  %v9536_v40 = vld [vmem:[#allocation104_spill] sm:$0xff]  ;;  %v9541_v2 = vld [vmem:[#allocation106_spill] sm:$0xff] }
 0x29a   : > { %5882 = vmatpush3.bf16.msk.msra.mxu0 %vm9436_vm3, %v9042_v62  ;;  %vm9441_vm15 = vmpackc.low %vm9438_vm13, %vm9440_vm9  ;;  %vm9452_vm3 = vnez %v9451_v54  ;;  %vm9454_vm13 = vnez %v9453_v12  ;;  %v9543_v14 = vld [vmem:[#allocation105_spill] sm:$0xff]  ;;  %v9546_v21 = vld [vmem:[#allocation108_spill] sm:$0xff] }
 0x29b   : > { %5914 = vmatpush3.bf16.msk.msra.mxu1 %vm9441_vm15, %v9042_v62  ;;  %vm9445_vm1 = vmpackc.low %vm9442_vm0, %vm9444_vm6  ;;  %vm9457_vm15 = vnez %v9456_v47  ;;  %vm9459_vm0 = vnez %v9458_v50  ;;  %v9548_v23 = vld [vmem:[#allocation107_spill] sm:$0xff]  ;;  %v9556_v54 = vld [vmem:[#allocation112_spill] sm:$0xff] }
 0x29c   : > { %5916 = vmatprep.subr.msk.bf16.mxu0 %vm9445_vm1, %v9042_v62  ;;  %vm9450_vm5 = vmpackc.low %vm9447_vm2, %vm9449_vm4  ;;  %vm9462_vm1 = vnez %v9461_v45  ;;  %vm9464_vm2 = vnez %v9463_v31  ;;  %v9558_v12 = vld [vmem:[#allocation111_spill] sm:$0xff]  ;;  %v9561_v47 = vld [vmem:[#allocation114_spill] sm:$0xff] }
 0x29d   : > { %5948 = vmatprep.subr.msk.bf16.mxu1 %vm9450_vm5, %v9042_v62  ;;  %3636 = vmatmul.mubr.f32.vlgmr.msra.gmra.mrb[4].mxu0 %v3534_v3  ;;  %vm9455_vm9 = vmpackc.low %vm9452_vm3, %vm9454_vm13  ;;  %vm9467_vm5 = vnez %v9466_v56  ;;  %vm9469_vm3 = vnez %v9468_v19  ;;  %v9531_v3 = vld [vmem:[#allocation102_spill] sm:$0xff]  ;;  %v9563_v50 = vld [vmem:[#allocation113_spill] sm:$0xff] }
 0x29e   : > { %3706 = vmatmul.mubr.f32.vlgmr.msra.gmra.mrb[4].mxu1 %v3542_v1  ;;  %5918 = vmatpush3.bf16.msk.msra.mxu0 %vm9455_vm9, %v9042_v62  ;;  %vm9460_vm6 = vmpackc.low %vm9457_vm15, %vm9459_vm0  ;;  %vm9472_vm9 = vnez %v9471_v42  ;;  %vm9474_vm15 = vnez %v9473_v24  ;;  %v9538_v1 = vld [vmem:[#allocation103_spill] sm:$0xff]  ;;  %v9566_v45 = vld [vmem:[#allocation116_spill] sm:$0xff] }
 0x29f   : > { %5950 = vmatpush3.bf16.msk.msra.mxu1 %vm9460_vm6, %v9042_v62  ;;  %vm9465_vm4 = vmpackc.low %vm9462_vm1, %vm9464_vm2  ;;  %3775 = vmatprep.mubr.f32.mxu0 %v3554_v5  ;;  %vm9477_vm6 = vnez %v9476_v51  ;;  %vm9479_vm1 = vnez %v9478_v28  ;;  %v9551_v5 = vld [vmem:[#allocation110_spill] sm:$0xff]  ;;  %v9568_v31 = vld [vmem:[#allocation115_spill] sm:$0xff]  ;;  %v3084_v51 = vadd.s32 640, %v6614_v16  ;;  %v6276_v28 = vmov 0.0  }
 0x2a0   : > { %5920 = vmatprep.subr.msk.bf16.mxu0 %vm9465_vm4, %v9042_v62  ;;  %vm9470_vm13 = vmpackc.low %vm9467_vm5, %vm9469_vm3  ;;  %3845 = vmatprep.mubr.f32.mxu1 %v3562_v25  ;;  %vm9482_vm4 = vnez %v9481_v52  ;;  %vm9484_vm5 = vnez %v9483_v55  ;;  %v9553_v25 = vld [vmem:[#allocation109_spill] sm:$0xff]  ;;  %v9571_v56 = vld [vmem:[#allocation118_spill] sm:$0xff]  ;;  %v3086_v52 = vadd.s32 896, %v6614_v16 }
 0x2a1   : > { %5952 = vmatprep.subr.msk.bf16.mxu1 %vm9470_vm13, %v9042_v62  ;;  %vm9475_vm0 = vmpackc.low %vm9472_vm9, %vm9474_vm15  ;;  %vm9487_vm13 = vnez %v9486_v61  ;;  %vm9489_vm9 = vnez %v9488_v4  ;;  %v9573_v19 = vld [vmem:[#allocation117_spill] sm:$0xff]  ;;  %v3126_v55 = vand.u32 7, %v3084_v51 }
 0x2a2   : > { %5922 = vmatpush3.bf16.msk.msra.mxu0 %vm9475_vm0, %v9042_v62  ;;  %vm9480_vm2 = vmpackc.low %vm9477_vm6, %vm9479_vm1  ;;  %vm9492_vm0 = vnez %v9491_v10  ;;  %vm9494_vm6 = vnez %v9493_v15  ;;  %v3140_v61 = vand.u32 7, %v3086_v52 }
 0x2a3   : > { %5954 = vmatpush3.bf16.msk.msra.mxu1 %vm9480_vm2, %v9042_v62  ;;  %vm9485_vm3 = vmpackc.low %vm9482_vm4, %vm9484_vm5  ;;  %vm9497_vm2 = vnez %v9496_v18  ;;  %vm9499_vm4 = vnez %v9498_v30 }
 0x2a4   : > { %5924 = vmatprep.subr.msk.bf16.mxu0 %vm9485_vm3, %v9042_v62  ;;  %vm9490_vm15 = vmpackc.low %vm9487_vm13, %vm9489_vm9  ;;  %vm9502_vm3 = vnez %v9501_v43  ;;  %vm9504_vm13 = vnez %v9503_v60 }
 0x2a5   : > { %5956 = vmatprep.subr.msk.bf16.mxu1 %vm9490_vm15, %v9042_v62  ;;  %vm9495_vm1 = vmpackc.low %vm9492_vm0, %vm9494_vm6  ;;  %vm9507_vm15 = vnez %v9506_v36  ;;  %vm9509_vm0 = vnez %v9508_v37 }
 0x2a6   : > { %5926 = vmatpush3.bf16.msk.msra.mxu0 %vm9495_vm1, %v9042_v62  ;;  %vm9500_vm5 = vmpackc.low %vm9497_vm2, %vm9499_vm4  ;;  %vm9512_vm1 = vnez %v9511_v63  ;;  %vm9514_vm2 = vnez %v9513_v6  ;;  %v3083_v6 = vadd.s32 512, %v6614_v16 }
 0x2a7   : > { %5958 = vmatpush3.bf16.msk.msra.mxu1 %vm9500_vm5, %v9042_v62  ;;  %vm9505_vm9 = vmpackc.low %vm9502_vm3, %vm9504_vm13  ;;  %vm9517_vm5 = vnez %v9516_v11  ;;  %vm9519_vm3 = vnez %v9518_v27 }
 0x2a8   : > { %5928 = vmatprep.subr.msk.bf16.mxu0 %vm9505_vm9, %v9042_v62  ;;  %vm9510_vm6 = vmpackc.low %vm9507_vm15, %vm9509_vm0  ;;  %vm9522_vm9 = vnez %v9521_v58  ;;  %vm9524_vm15 = vnez %v9523_v22  ;;  %v3085_v58 = vadd.s32 768, %v6614_v16 }
 0x2a9   : > { %5960 = vmatprep.subr.msk.bf16.mxu1 %vm9510_vm6, %v9042_v62  ;;  %vm9515_vm4 = vmpackc.low %vm9512_vm1, %vm9514_vm2  ;;  %vm9527_vm6 = vnez %v9526_v38  ;;  %vm9529_vm1 = vnez %v9528_v49 }
 0x2aa   : > { %5930 = vmatpush3.bf16.msk.msra.mxu0 %vm9515_vm4, %v9042_v62  ;;  %vm9520_vm13 = vmpackc.low %vm9517_vm5, %vm9519_vm3  ;;  %vm9532_vm4 = vnez %v9531_v3  ;;  %vm9534_vm5 = vnez %v9533_v39  ;;  %v3119_v39 = vand.u32 7, %v3083_v6 }
 0x2ab   : > { %5962 = vmatpush3.bf16.msk.msra.mxu1 %vm9520_vm13, %v9042_v62  ;;  %vm9525_vm0 = vmpackc.low %vm9522_vm9, %vm9524_vm15  ;;  %vm9537_vm13 = vnez %v9536_v40  ;;  %vm9539_vm9 = vnez %v9538_v1  ;;  %v3133_v40 = vand.u32 7, %v3085_v58 }
 0x2ac   : > { %5932 = vmatprep.subr.msk.bf16.mxu0 %vm9525_vm0, %v9042_v62  ;;  %vm9530_vm2 = vmpackc.low %vm9527_vm6, %vm9529_vm1  ;;  %vm9542_vm0 = vnez %v9541_v2  ;;  %vm9544_vm6 = vnez %v9543_v14 }
 0x2ad   : > { %5964 = vmatprep.subr.msk.bf16.mxu1 %vm9530_vm2, %v9042_v62  ;;  %vm9535_vm3 = vmpackc.low %vm9532_vm4, %vm9534_vm5  ;;  %vm9547_vm2 = vnez %v9546_v21  ;;  %vm9549_vm4 = vnez %v9548_v23 }
 0x2ae   : > { %5934 = vmatpush3.bf16.msk.msra.mxu0 %vm9535_vm3, %v9042_v62  ;;  %vm9540_vm15 = vmpackc.low %vm9537_vm13, %vm9539_vm9  ;;  %vm9552_vm3 = vnez %v9551_v5  ;;  %vm9554_vm13 = vnez %v9553_v25 }
 0x2af   : > { %5966 = vmatpush3.bf16.msk.msra.mxu1 %vm9540_vm15, %v9042_v62  ;;  %vm9545_vm1 = vmpackc.low %vm9542_vm0, %vm9544_vm6  ;;  %vm9557_vm15 = vnez %v9556_v54  ;;  %vm9559_vm0 = vnez %v9558_v12 }
 0x2b0   : > { %5936 = vmatprep.subr.msk.bf16.mxu0 %vm9545_vm1, %v9042_v62  ;;  %vm9550_vm5 = vmpackc.low %vm9547_vm2, %vm9549_vm4  ;;  %vm9562_vm1 = vnez %v9561_v47  ;;  %vm9564_vm2 = vnez %v9563_v50 }
 0x2b1   : > { %5968 = vmatprep.subr.msk.bf16.mxu1 %vm9550_vm5, %v9042_v62  ;;  %vm9555_vm9 = vmpackc.low %vm9552_vm3, %vm9554_vm13  ;;  %vm9567_vm5 = vnez %v9566_v45  ;;  %vm9569_vm3 = vnez %v9568_v31 }
 0x2b2   : > { %5938 = vmatpush3.bf16.msk.msra.mxu0 %vm9555_vm9, %v9042_v62  ;;  %vm9560_vm6 = vmpackc.low %vm9557_vm15, %vm9559_vm0  ;;  %vm9572_vm9 = vnez %v9571_v56  ;;  %vm9574_vm15 = vnez %v9573_v19 }
 0x2b3   : > { %5970 = vmatpush3.bf16.msk.msra.mxu1 %vm9560_vm6, %v9042_v62  ;;  %vm9565_vm4 = vmpackc.low %vm9562_vm1, %vm9564_vm2  ;;  %vm9576_vm6 = vnez %v9304_v53  ;;  %vm9577_vm1 = vnez %v9302_v9  ;;  %v3550_v53 = vrot.slane %v8022_v46, %v6513_v32  ;;  %v3080_v9 = vadd.s32 128, %v6614_v16 }
 0x2b4   : > { %5940 = vmatprep.subr.msk.bf16.mxu0 %vm9565_vm4, %v9042_v62  ;;  %vm9570_vm13 = vmpackc.low %vm9567_vm5, %vm9569_vm3  ;;  %vm9581_vm3 = vnez %v9314_v41  ;;  %v3112_v41 = vand.u32 7, %v3082_v20  ;;  %v3105_v46 = vand.u32 7, %v3081_v29 }
 0x2b5   : > { %5972 = vmatprep.subr.msk.bf16.mxu1 %vm9570_vm13, %v9042_v62  ;;  %vm9575_vm0 = vmpackc.low %vm9572_vm9, %vm9574_vm15  ;;  %v3098_v44 = vand.u32 7, %v3080_v9  ;;  %vm8483_vm9 = vcmp.eq.s32.totalorder %v3126_v55, %v6478_v8  ;;  %vm8491_vm15 = vcmp.eq.s32.totalorder %v3140_v61, %v6478_v8 }
 0x2b6   : > { %5942 = vmatpush3.bf16.msk.msra.mxu0 %vm9575_vm0, %v9042_v62  ;;  %vm9578_vm2 = vmpackc.low %vm9576_vm6, %vm9577_vm1  ;;  %vm3855_vm0 = vcmask 64512   ;;  %vm8501_vm6 = vcmp.eq.s32.totalorder %v3119_v39, %v6478_v8  ;;  %vm8506_vm1 = vcmp.eq.s32.totalorder %v3133_v40, %v6478_v8 }
 0x2b7   : > { %5974 = vmatpush3.bf16.msk.msra.mxu1 %vm9578_vm2, %v9042_v62  ;;  %vm9579_vm4 = vmpackc.low %vm7958_vm7, %vm7953_vm12  ;;  %vm9583_vm7 = vnez %v9318_v17  ;;  %v6275_v17 = vmov 1.0   ;;  %vm8463_vm12 = vcmp.eq.s32.totalorder %v3091_v7, %v6478_v8 }
 0x2b8   : > { %5944 = vmatprep.subr.msk.bf16.mxu0 %vm9579_vm4, %v9042_v62  ;;  %vm9580_vm5 = vmpackc.low %vm7972_vm8, %vm7963_vm14  ;;  %vm8468_vm14 = vcmp.eq.s32.totalorder %v3105_v46, %v6478_v8 }
 0x2b9   : > { %5976 = vmatprep.subr.msk.bf16.mxu1 %vm9580_vm5, %v9042_v62  ;;  %vm9582_vm13 = vmpackc.low %vm7982_vm11, %vm9581_vm3  ;;  %vm8447_vm11 = vcmp.eq.s32.totalorder %v3098_v44, %v6478_v8 }
 0x2ba   : > { %5946 = vmatpush3.bf16.msk.msra.mxu0 %vm9582_vm13, %v9042_v62  ;;  %vm9584_vm8 = vmpackc.low %vm8002_vm10, %vm9583_vm7  ;;  %vm8452_vm10 = vcmp.eq.s32.totalorder %v3112_v41, %v6478_v8 }
 0x2bb   : > { %5978 = vmatpush3.bf16.msk.msra.mxu1 %vm9584_vm8, %v9042_v62  ;;  %5284 = vmatprep.subr.msk.mxu0 %vm8447_vm11, %v6275_v17 }
 0x2bc   : > { %5287 = vmatprep.subr.msk.mxu1 %vm8452_vm10, %v6275_v17 }
 0x2bd   : > { %3776 = vmatmul.mubr.f32.vlgmr.msra.gmra.mrb[6].mxu0 %v3550_v53 }
 0x2be   : > { %3846 = vmatmul.mubr.f32.vlgmr.msra.gmra.mrb[6].mxu1 %v3558_v26  ;;  %5285 = vmatpush1.msk.msra.mxu0 %vm8463_vm12, %v6275_v17 }
 0x2bf   : > { %3923 = vmatprep.mubr.f32.mxu0 %v6276_v28  ;;  %5288 = vmatpush1.msk.msra.mxu1 %vm8468_vm14, %v6275_v17 }
 0x2c0   : > { %3994 = vmatprep.mubr.f32.mxu1 %v6276_v28  ;;  %5290 = vmatprep.subr.msk.mxu0 %vm8483_vm9, %v6275_v17 }
 0x2c1   : > { %5293 = vmatprep.subr.msk.mxu1 %vm8491_vm15, %v6275_v17 }
 0x302   : > { %v5347_v15 = vpop.f32.mrb[0].mxu0 }
 0x303   : > { %v5382_v18 = vpop.f32.mrb[0].mxu1  ;;  %v5348_v30 = vpop.f32.mrb[1].mxu0 }
 0x304   : > { %v5349_v43 = vadd.f32 %v5348_v30, %v5347_v15  ;;  %v5383_v60 = vpop.f32.mrb[1].mxu1 }
 0x305   : > { %v5384_v36 = vadd.f32 %v5383_v60, %v5382_v18 }
 0x307   : > { %v3386_v37 = vadd.f32 %v5384_v36, %v5349_v43 }
 0x350   : > { %v5417_v63 = vpop.f32.mrb[2].mxu0 }
 0x351   : > { %v5418_v11 = vpop.f32.mrb[3].mxu0  ;;  %v5452_v27 = vpop.f32.mrb[2].mxu1 }
 0x352   : > { %v5419_v22 = vadd.f32 %v5418_v11, %v5417_v63  ;;  %v5453_v38 = vpop.f32.mrb[3].mxu1  ;;  %v6277_v63 = vmov 1966171168  }
 0x353   : > { %v5454_v49 = vadd.f32 %v5453_v38, %v5452_v27  ;;  %v4452_v6 = vunpack.c.l.s4 %v6277_v63 }
 0x354   : > { %v3456_v3 = vadd.f32 %v5419_v22, %v3386_v37 }
 0x355   : > { %v4453_v58 = vunpack.c.0.s8 %v4452_v6 }
 0x356   : > { %v3526_v1 = vadd.f32 %v5454_v49, %v3456_v3 }
 0x357   : > { %v4456_v49 = vsub.s32 %v4453_v58, %v6478_v8  ;;  %v4143_v8 = vld [vmem:[%s8662_s3] sm:$0xff] }
 0x358   : > { %v3851_v2 = vmul.f32 0.00048828125, %v3526_v1 }
 0x35a   : > { %5286 = vmatmul.mubr.msk.f32.vlgmr.msra.gmra.mrb[8].mxu0 %vm3855_vm0, %v3851_v2  ;;  %5289 = vmatmul.mubr.msk.f32.vlgmr.msra.gmra.mrb[8].mxu1 %vm3855_vm0, %v3851_v2  ;;  %v3853_v29 = vmul.f32 %v3851_v2, %v3851_v2 }
 0x35b   : > { %5291 = vmatpush1.msk.msra.mxu0 %vm8501_vm6, %v6275_v17  ;;  %4065 = vmatprep.mubr.f32.mxu0 %v6276_v28 }
 0x35c   : > { %5294 = vmatpush1.msk.msra.mxu1 %vm8506_vm1, %v6275_v17  ;;  %4136 = vmatprep.mubr.f32.mxu1 %v6276_v28 }
 0x35d   : > { %5296 = vmatprep.subr.msk.mxu0 %vm8447_vm11, %v6275_v17  ;;  %5299 = vmatprep.subr.msk.mxu1 %vm8452_vm10, %v6275_v17 }
 0x35e   : > { %5292 = vmatmul.mubr.msk.f32.vlgmr.msra.gmra.mrb[10].mxu0 %vm3855_vm0, %v3851_v2  ;;  %5295 = vmatmul.mubr.msk.f32.vlgmr.msra.gmra.mrb[10].mxu1 %vm3855_vm0, %v3851_v2 }
 0x35f   : > { %5297 = vmatpush1.msk.msra.mxu0 %vm8463_vm12, %v6275_v17  ;;  %5300 = vmatpush1.msk.msra.mxu1 %vm8468_vm14, %v6275_v17 }
 0x360   : > { %4211 = vmatprep.mubr.f32.mxu0 %v6276_v28  ;;  %4282 = vmatprep.mubr.f32.mxu1 %v6276_v28 }
 0x361   : > { %5302 = vmatprep.subr.msk.mxu0 %vm8483_vm9, %v6275_v17  ;;  %5305 = vmatprep.subr.msk.mxu1 %vm8491_vm15, %v6275_v17 }
 0x370   : > { %v5487_v16 = vpop.f32.mrb[4].mxu0 }
 0x371   : > { %v5522_v23 = vpop.f32.mrb[4].mxu1  ;;  %v5488_v5 = vpop.f32.mrb[5].mxu0 }
 0x372   : > { %v5489_v25 = vadd.f32 %v5488_v5, %v5487_v16  ;;  %v5523_v54 = vpop.f32.mrb[5].mxu1 }
 0x373   : > { %v5524_v12 = vadd.f32 %v5523_v54, %v5522_v23 }
 0x375   : > { %v3708_v47 = vadd.f32 %v5524_v12, %v5489_v25 }
 0x390   : > { %v5557_v50 = vpop.f32.mrb[6].mxu0 }
 0x391   : > { %v5558_v45 = vpop.f32.mrb[7].mxu0  ;;  %v5592_v31 = vpop.f32.mrb[6].mxu1 }
 0x392   : > { %v5559_v56 = vadd.f32 %v5558_v45, %v5557_v50  ;;  %v5593_v19 = vpop.f32.mrb[7].mxu1 }
 0x393   : > { %v5594_v53 = vadd.f32 %v5593_v19, %v5592_v31 }
 0x394   : > { %v3778_v26 = vadd.f32 %v5559_v56, %v3708_v47 }
 0x396   : > { %v3848_v9 = vadd.f32 %v5594_v53, %v3778_v26 }
 0x398   : > { %v3852_v20 = vmul.f32 0.00048828125, %v3848_v9 }
 0x39a   : > { %v3854_v44 = vsub.f32 %v3852_v20, %v3853_v29 }
 0x39c   : > { %5298 = vmatmul.mubr.msk.f32.vlgmr.msra.gmra.mrb[12].mxu0 %vm3855_vm0, %v3854_v44  ;;  %5301 = vmatmul.mubr.msk.f32.vlgmr.msra.gmra.mrb[12].mxu1 %vm3855_vm0, %v3854_v44 }
 0x39d   : > { %5303 = vmatpush1.msk.msra.mxu0 %vm8501_vm6, %v6275_v17  ;;  %5306 = vmatpush1.msk.msra.mxu1 %vm8506_vm1, %v6275_v17 }
 0x39e   : > { %4353 = vmatprep.mubr.f32.mxu0 %v6276_v28  ;;  %4424 = vmatprep.mubr.f32.mxu1 %v6276_v28 }
 0x3a0   : > { %5304 = vmatmul.mubr.msk.f32.vlgmr.msra.gmra.mrb[14].mxu0 %vm3855_vm0, %v3854_v44  ;;  %5307 = vmatmul.mubr.msk.f32.vlgmr.msra.gmra.mrb[14].mxu1 %vm3855_vm0, %v3854_v44 }
 0x42d   : > { %v8554_v41 = vpop.f32.mrb[8].mxu0  ;;  %v8556_v7 = vpop.f32.mrb[8].mxu1 }
 0x42e   : > { %v8558_v46 = vpop.f32.mrb[9].mxu0  ;;  %v8560_v59 = vpop.f32.mrb[9].mxu1 }
 0x431   : > { %v8562_v62 = vpop.f32.mrb[10].mxu0  ;;  %v8564_v42 = vpop.f32.mrb[10].mxu1 }
 0x432   : > { %v8566_v17 = vpop.f32.mrb[11].mxu0  ;;  %v8568_v24 = vpop.f32.mrb[11].mxu1 }
 0x46f   : > { %v4213_v51 = vpop.f32.mrb[12].mxu0  ;;  %v4284_v28 = vpop.f32.mrb[12].mxu1 }
 0x470   : > { %v4214_v52 = vadd.f32 1e-05, %v4213_v51  ;;  %v4285_v55 = vadd.f32 1e-05, %v4284_v28  ;;  %v4215_v61 = vpop.f32.mrb[13].mxu0  ;;  %v4286_v4 = vpop.f32.mrb[13].mxu1 }
 0x471   : > { %v4216_v10 = vadd.f32 1e-05, %v4215_v61  ;;  %v4287_v15 = vadd.f32 1e-05, %v4286_v4 }
 0x472   : > { %6069 = vrsqrt.f32 %v4214_v52 }
 0x473   : > { %6071 = vrsqrt.f32 %v4285_v55  ;;  %v4355_v18 = vpop.f32.mrb[14].mxu0  ;;  %v4426_v30 = vpop.f32.mrb[14].mxu1 }
 0x474   : > { %6073 = vrsqrt.f32 %v4216_v10  ;;  %v4356_v43 = vadd.f32 1e-05, %v4355_v18  ;;  %v4427_v60 = vadd.f32 1e-05, %v4426_v30  ;;  %v4357_v36 = vpop.f32.mrb[15].mxu0  ;;  %v4428_v37 = vpop.f32.mrb[15].mxu1 }
 0x475   : > { %6075 = vrsqrt.f32 %v4287_v15  ;;  %v4358_v11 = vadd.f32 1e-05, %v4357_v36  ;;  %v4429_v27 = vadd.f32 1e-05, %v4428_v37 }
 0x476   : > { %6077 = vrsqrt.f32 %v4356_v43 }
 0x477   : > { %6079 = vrsqrt.f32 %v4427_v60 }
 0x478   : > { %6081 = vrsqrt.f32 %v4358_v11 }
 0x479   : > { %6083 = vrsqrt.f32 %v4429_v27  ;;  %v4499_v27 = vld [vmem:[#allocation12] sm:$0xff] }
 0x47c   : > { %v6070_v22 = vpop.eup %6069 }
 0x47d   : > { %v6072_v38 = vpop.eup %6071 }
 0x47e   : > { %v6074_v3 = vpop.eup %6073 }
 0x47f   : > { %v6076_v39 = vpop.eup %6075  ;;  %v4447_v40 = vcombine.low %v6070_v22, %v6074_v3 }
 0x480   : > { %v6078_v1 = vpop.eup %6077  ;;  %v4448_v2 = vcombine.low %v6072_v38, %v6076_v39 }
 0x481   : > { %v6080_v14 = vpop.eup %6079  ;;  %v4457_v21 = vrot.slane %v4447_v40, %v4456_v49 }
 0x482   : > { %v6082_v16 = vpop.eup %6081  ;;  %v4464_v23 = vrot.slane %v4448_v2, %v4456_v49 }
 0x483   : > { %v6084_v5 = vpop.eup %6083  ;;  %v4449_v25 = vcombine.low %v6078_v1, %v6082_v16 }
 0x484   : > { %v4479_v54 = vcombine.low %v4457_v21, %v4464_v23  ;;  %v4450_v12 = vcombine.low %v6080_v14, %v6084_v5 }
 0x485   : > { %v4471_v47 = vrot.slane %v4449_v25, %v4456_v49 }
 0x486   : > { %v4478_v50 = vrot.slane %v4450_v12, %v4456_v49  ;;  %v4487_v31 = vrot.slane %v4479_v54, %v4456_v49 }
 0x488   : > { %v4480_v45 = vcombine.low %v4471_v47, %v4478_v50 }
 0x48a   : > { %v4494_v56 = vrot.slane %v4480_v45, %v4456_v49 }
 0x48c   : > { %v4495_v19 = vcombine.low %v4487_v31, %v4494_v56 }
 0x48e   : > { %v4497_v53 = vmul.f32 %v4495_v19, %v4143_v8 }
 0x490   : > { %4498 = vst [vmem:[#allocation4] sm:$0xff] %v4497_v53  ;;  %v4504_v26 = vrot.slane %v4497_v53, %v9431_v13  ;;  %v4508_v9 = vrot.slane %v4497_v53, %v6487_v48  ;;  %v4512_v20 = vrot.slane %v4497_v53, %v9437_v57  ;;  %v4516_v29 = vrot.slane %v4497_v53, %v6490_v0 }
 0x491   : > { %v4520_v44 = vrot.slane %v4497_v53, %v6513_v32  ;;  %v4524_v51 = vrot.slane %v4497_v53, %v6519_v34  ;;  %v4528_v28 = vrot.slane %v4497_v53, %v6516_v33  ;;  %v4532_v52 = vrot.slane %v4497_v53, %v6522_v35 }
 0x492   : > { %v4541_v55 = vmul.f32 %v4504_v26, %v8554_v41  ;;  %v4542_v61 = vmul.f32 %v4508_v9, %v8558_v46  ;;  %v4543_v13 = vmul.f32 %v4512_v20, %v8556_v7  ;;  %v4544_v4 = vmul.f32 %v4516_v29, %v8560_v59 }
 0x493   : > { %v4545_v57 = vmul.f32 %v4520_v44, %v8562_v62  ;;  %v4546_v10 = vmul.f32 %v4524_v51, %v8566_v17  ;;  %v4547_v15 = vmul.f32 %v4528_v28, %v8564_v42  ;;  %v4548_v18 = vmul.f32 %v4532_v52, %v8568_v24 }
 0x494   : > { %v4557_v30 = vcombine.low %v4541_v55, %v4542_v61  ;;  %v4558_v43 = vcombine.low %v4543_v13, %v4544_v4 }
 0x495   : > { %v4559_v60 = vcombine.low %v4545_v57, %v4546_v10  ;;  %v4560_v36 = vcombine.low %v4547_v15, %v4548_v18 }
 0x496   : > { %v4567_v37 = vrot.slane %v4557_v30, %v4456_v49  ;;  %v4574_v41 = vrot.slane %v4558_v43, %v4456_v49 }
 0x497   : > { %v4581_v63 = vrot.slane %v4559_v60, %v4456_v49  ;;  %v4588_v46 = vrot.slane %v4560_v36, %v4456_v49 }
 0x498   : > { %v4589_v6 = vcombine.low %v4567_v37, %v4574_v41 }
 0x499   : > { %v4590_v7 = vcombine.low %v4581_v63, %v4588_v46 }
 0x49a   : > { %v4597_v11 = vrot.slane %v4589_v6, %v4456_v49 }
 0x49b   : > { %v4604_v59 = vrot.slane %v4590_v7, %v4456_v49 }
 0x49d   : > { %v4605_v62 = vcombine.low %v4597_v11, %v4604_v59 }
 0x49f   : > { %v4607_v58 = vsub.f32 %v4499_v27, %v4605_v62 }
 0x4a1   : > { %4608 = vst [vmem:[#allocation5] sm:$0xff] %v4607_v58 }
 0x4a2 PF: > { %p5308_p9 = scmp.ne.s32.totalorder %s6253_s18, 1 }
 0x4a3   : > { %v4612_v42 = vld [vmem:[#allocation4] sm:$0xff] (!%p5308_p9)  ;;  %v9601_v24 = vld [vmem:[#allocation19_spill] sm:$0xff] (!%p5308_p9)  ;;  %v9602_v40 = vld [vmem:[#allocation20_spill] sm:$0xff] (!%p5308_p9) }
 0x4a4   : > { %4611 = sbr.rel (%p5308_p9) target bundleno = 1209 (0x4b9), region = 72  ;;  %v4617_v22 = vrot.slane (!%p5308_p9), %v4612_v42, %v9601_v24  ;;  %v4621_v3 = vrot.slane (!%p5308_p9), %v4612_v42, %v6487_v48  ;;  %v4625_v49 = vrot.slane (!%p5308_p9), %v4612_v42, %v9602_v40  ;;  %v4629_v2 = vrot.slane (!%p5308_p9), %v4612_v42, %v6490_v0  ;;  %v9603_v21 = vld [vmem:[#allocation21_spill] sm:$0xff] (!%p5308_p9)  ;;  %v9604_v23 = vld [vmem:[#allocation23_spill] sm:$0xff] (!%p5308_p9)  ;;  %v9605_v12 = vld [vmem:[#allocation22_spill] sm:$0xff] (!%p5308_p9) }
 0x4a5   : > { %v4633_v25 = vrot.slane (!%p5308_p9), %v4612_v42, %v6513_v32  ;;  %v9606_v50 = vld [vmem:[#allocation24_spill] sm:$0xff] (!%p5308_p9)  ;;  %v4637_v45 = vrot.slane (!%p5308_p9), %v4612_v42, %v6519_v34  ;;  %v9607_v19 = vld [vmem:[#allocation29_spill] sm:$0xff] (!%p5308_p9)  ;;  %v4641_v53 = vrot.slane (!%p5308_p9), %v4612_v42, %v6516_v33  ;;  %v9608_v20 = vld [vmem:[#allocation31_spill] sm:$0xff] (!%p5308_p9)  ;;  %v4645_v4 = vrot.slane (!%p5308_p9), %v4612_v42, %v6522_v35 }
 0x4a6   : > { %v4654_v16 = vmul.f32 (!%p5308_p9), %v4617_v22, %v9603_v21  ;;  %v4655_v5 = vmul.f32 (!%p5308_p9), %v4621_v3, %v9604_v23  ;;  %v4656_v47 = vmul.f32 (!%p5308_p9), %v4625_v49, %v9605_v12  ;;  %v9609_v52 = vld [vmem:[#allocation30_spill] sm:$0xff] (!%p5308_p9)  ;;  %v9610_v18 = vld [vmem:[#allocation25_spill] sm:$0xff] (!%p5308_p9)  ;;  %v9611_v43 = vld [vmem:[#allocation32_spill] sm:$0xff] (!%p5308_p9) }
 0x4a7   : > { %v4659_v29 = vmul.f32 (!%p5308_p9), %v4637_v45, %v9608_v20  ;;  %v4660_v55 = vmul.f32 (!%p5308_p9), %v4641_v53, %v9609_v52  ;;  %v4662_v30 = vmul.f32 (!%p5308_p9), %v4617_v22, %v9610_v18  ;;  %v4661_v60 = vmul.f32 (!%p5308_p9), %v4645_v4, %v9611_v43  ;;  %v9612_v36 = vld [vmem:[#allocation27_spill] sm:$0xff] (!%p5308_p9)  ;;  %v9613_v41 = vld [vmem:[#allocation26_spill] sm:$0xff] (!%p5308_p9)  ;;  %v9614_v7 = vld [vmem:[#allocation28_spill] sm:$0xff] (!%p5308_p9) }
 0x4a8   : > { %v4670_v17 = vld [vmem:[#allocation5] sm:$0xff] (!%p5308_p9)  ;;  %v4663_v37 = vmul.f32 (!%p5308_p9), %v4621_v3, %v9612_v36  ;;  %v4664_v63 = vmul.f32 (!%p5308_p9), %v4625_v49, %v9613_v41  ;;  %v4665_v11 = vmul.f32 (!%p5308_p9), %v4629_v2, %v9614_v7  ;;  %v9615_v59 = vld [vmem:[#allocation33_spill] sm:$0xff] (!%p5308_p9)  ;;  %v9616_v42 = vld [vmem:[#allocation35_spill] sm:$0xff] (!%p5308_p9) }
 0x4a9   : > { %v4675_v38 = vrot.slane (!%p5308_p9), %v4670_v17, %v9601_v24  ;;  %v4679_v39 = vrot.slane (!%p5308_p9), %v4670_v17, %v6487_v48  ;;  %v4683_v1 = vrot.slane (!%p5308_p9), %v4670_v17, %v9602_v40  ;;  %v4687_v14 = vrot.slane (!%p5308_p9), %v4670_v17, %v6490_v0  ;;  %v9617_v3 = vld [vmem:[#allocation34_spill] sm:$0xff] (!%p5308_p9)  ;;  %v9618_v12 = vld [vmem:[#allocation36_spill] sm:$0xff] (!%p5308_p9) }
 0x4aa   : > { %v4691_v54 = vrot.slane (!%p5308_p9), %v4670_v17, %v6513_v32  ;;  %v4657_v48 = vmul.f32 (!%p5308_p9), %v4629_v2, %v9606_v50  ;;  %v4695_v31 = vrot.slane (!%p5308_p9), %v4670_v17, %v6519_v34  ;;  %v4658_v0 = vmul.f32 (!%p5308_p9), %v4633_v25, %v9607_v19 }
 0x4ab   : > { %v4712_v56 = vadd.f32 %v4675_v38, %v4654_v16  ;;  %v4713_v8 = vadd.f32 %v4679_v39, %v4655_v5  ;;  %v4714_v26 = vadd.f32 %v4683_v1, %v4656_v47  ;;  %v4699_v32 = vrot.slane %v4670_v17, %v6516_v33 }
 0x4ac   : > { %v4715_v9 = vadd.f32 %v4687_v14, %v4657_v48  ;;  %v4716_v28 = vadd.f32 %v4691_v54, %v4658_v0  ;;  %v4717_v34 = vadd.f32 %v4695_v31, %v4659_v29  ;;  %v4703_v15 = vrot.slane %v4670_v17, %v6522_v35 }
 0x4ad   : > { %v4728_v44 = vmax.f32 %v4712_v56, 0.0  ;;  %v4729_v51 = vmax.f32 %v4713_v8, 0.0  ;;  %v4730_v61 = vmax.f32 %v4714_v26, 0.0  ;;  %v4718_v10 = vadd.f32 %v4699_v32, %v4660_v55 }
 0x4ae   : > { %v4731_v13 = vmax.f32 %v4715_v9, 0.0  ;;  %v4732_v57 = vmax.f32 %v4716_v28, 0.0  ;;  %v4733_v33 = vmax.f32 %v4717_v34, 0.0  ;;  %v4720_v6 = vadd.f32 %v4675_v38, %v4662_v30 }
 0x4af   : > { %4744 = vst [vmem:[#allocation14] sm:$0xff] %v4728_v44  ;;  %4745 = vst [vmem:[#allocation14 + $0x8] sm:$0xff] %v4729_v51  ;;  %v4734_v46 = vmax.f32 %v4718_v10, 0.0  ;;  %v4666_v27 = vmul.f32 %v4633_v25, %v9615_v59  ;;  %v4719_v35 = vadd.f32 %v4703_v15, %v4661_v60  ;;  %v4721_v62 = vadd.f32 %v4679_v39, %v4663_v37 }
 0x4b0   : > { %4746 = vst [vmem:[#allocation14 + $0x10] sm:$0xff] %v4730_v61  ;;  %4747 = vst [vmem:[#allocation14 + $0x18] sm:$0xff] %v4731_v13  ;;  %v4722_v58 = vadd.f32 %v4683_v1, %v4664_v63  ;;  %v4667_v17 = vmul.f32 %v4637_v45, %v9616_v42  ;;  %v4736_v24 = vmax.f32 %v4720_v6, 0.0  ;;  %v4723_v22 = vadd.f32 %v4687_v14, %v4665_v11 }
 0x4b1   : > { %4748 = vst [vmem:[#allocation14 + $0x20] sm:$0xff] %v4732_v57  ;;  %4749 = vst [vmem:[#allocation14 + $0x28] sm:$0xff] %v4733_v33  ;;  %v4724_v40 = vadd.f32 %v4691_v54, %v4666_v27  ;;  %v4668_v21 = vmul.f32 %v4641_v53, %v9617_v3  ;;  %v4735_v49 = vmax.f32 %v4719_v35, 0.0  ;;  %v4737_v16 = vmax.f32 %v4721_v62, 0.0 }
 0x4b2   : > { %4750 = vst [vmem:[#allocation14 + $0x30] sm:$0xff] %v4734_v46  ;;  %v4738_v23 = vmax.f32 %v4722_v58, 0.0  ;;  %v4725_v38 = vadd.f32 %v4695_v31, %v4667_v17  ;;  %4752 = vst [vmem:[#allocation14 + $0x40] sm:$0xff] %v4736_v24  ;;  %v4739_v2 = vmax.f32 %v4723_v22, 0.0  ;;  %v4669_v47 = vmul.f32 %v4645_v4, %v9618_v12 }
 0x4b3   : > { %v4740_v5 = vmax.f32 %v4724_v40, 0.0  ;;  %v4726_v25 = vadd.f32 %v4699_v32, %v4668_v21  ;;  %4751 = vst [vmem:[#allocation14 + $0x38] sm:$0xff] %v4735_v49  ;;  %4753 = vst [vmem:[#allocation14 + $0x48] sm:$0xff] %v4737_v16 }
 0x4b4   : > { %4754 = vst [vmem:[#allocation14 + $0x50] sm:$0xff] %v4738_v23  ;;  %v4741_v39 = vmax.f32 %v4725_v38, 0.0  ;;  %4755 = vst [vmem:[#allocation14 + $0x58] sm:$0xff] %v4739_v2  ;;  %v4727_v14 = vadd.f32 %v4703_v15, %v4669_v47 }
 0x4b5   : > { %4756 = vst [vmem:[#allocation14 + $0x60] sm:$0xff] %v4740_v5  ;;  %v4742_v1 = vmax.f32 %v4726_v25, 0.0 }
 0x4b6   : > { %4757 = vst [vmem:[#allocation14 + $0x68] sm:$0xff] %v4741_v39  ;;  %v4743_v54 = vmax.f32 %v4727_v14, 0.0 }
 0x4b7   : > { %4758 = vst [vmem:[#allocation14 + $0x70] sm:$0xff] %v4742_v1 }
 0x4b8   : > { %4759 = vst [vmem:[#allocation14 + $0x78] sm:$0xff] %v4743_v54 }
 0x4b9 PF: > { %p8625_p10 = scmp.eq.s32.totalorder %s4877_s23, 1  ;;  %s6278_s27 = smov [#allocation14]  }
 0x4ba   : > { %s4776_s10 = sshll.u32 %s6278_s27, 4  ;;  %s4777_s10 = int_to_ptr.vmem [resolvable:$true] %s4776_s10 }
 0x4bb   : > { %s6197_s7 = scalar_lea.vmem %s4777_s10, 2048  ;;  %s6203_s30 = scalar_lea.vmem %s4777_s10, 4096 }
 0x4bc   : > { %p6198_p11 = scmp.ne.s32.totalorder %s4777_s10, %s6197_s7  ;;  %p6204_p0 = scmp.lt.s32.totalorder %s4777_s10, %s4777_s10 }
 0x4bd   : > { %p6205_p1 = scmp.lt.s32.totalorder %s6203_s30, %s6197_s7 }
 0x4be   : > { %p6199_p12 = pnand %p6198_p11, %p8625_p10 }
 0x4bf   : > { %p6206_p4 = por %p6205_p1, %p6204_p0 }
 0x4c0   : > { %p6200_p13 = pneg %p6199_p12 }
 0x4c2   : > { %p6207_p7 = pnand %p6206_p4, %p6200_p13 }
 0x4c4   : > { %6210 = shalt.err (!%p6207_p7)
}
 0x4c5   : > { %s6211_s14 = scalar_lea.hbm %s8664_s5, 2048 }
 0x4c6   : > { %p6212_p2 = scmp.ne.s32.totalorder %s8664_s5, %s6211_s14  ;;  %p6217_p8 = scmp.lt.u32.totalorder %s6211_s14, %s8664_s5 }
 0x4c8   : > { %p6213_p3 = pnand %p6212_p2, %p8625_p10 }
 0x4ca   : > { %p6214_p5 = pneg %p6213_p3 }
 0x4cc   : > { %p6219_p6 = pnand %p6217_p8, %p6214_p5 }
 0x4ce   : > { %6222 = shalt.err (!%p6219_p6)
}
 0x4cf   : > { %s6279_s8 = smov 1024   ;;  %s6280_s9 = smov 64  }
 0x4d0   : > { %5996 = dma.vmem_to_hbm [thread:$0]  (%p8625_p10), %s4777_s10, 2048, %s8664_s5, [#allocation8], %s6279_s8, %s6279_s8, %s6280_s9  }
 0x4d1 PF: > { %p6025_p9 = scmp.ge.s32.totalorder %s6261_s20, 2  ;;  %p6026_p11 = scmp.eq.s32.totalorder %s4878_s24, 1 }
 0x4d3   : > { %p6013_p12 = pnand %p6026_p11, %p6025_p9 }
 0x4d5   : > { %6248 = dma.done.wait (!%p6013_p12), [#allocation8], 2048  }
 0x4d6   : > { %6250 = vsyncadd (!%p6013_p12), [#allocation8], 4294965248  ;;  %s21_s20 = sadd.s32 1, %s6261_s20   ;;  %s9620_s18 = smov %s6257_s19 }
 0x4d7   : > { %p18_p13 = scmp.ge.s32.totalorder %s21_s20, 4   ;;  %s9621_s19 = smov %s9623_s28 }
 0x4d9   :  { %20 = sbr.rel (!%p18_p13) target bundleno = 6 (0x6), region = 106 }
 0x4e0   :  { %4797 = vsyncpa [#allocation7], 1 }
 0x4e1   :  { %4799 = vsyncpa [#allocation7 + $0x1], 1 }
 0x4e2   :  { %4800 = vsyncpa [#allocation10], 1 }
 0x4e3   :  { %4801 = vsyncpa [#allocation13], 1 }
 0x4e4   :  { %4802 = vsyncpa [#allocation8], 1 }
 0x4e5   :  { %4804 = vsyncpa [#allocation8 + $0x1], 1 }

</bundles_post_ra>
